<compile_context>
chip_gen: v7x
topology: tpu7x:2x2x1
jax: 0.10.0
libtpu: 0.0.40
codegen_flags: <defaults>
</compile_context>

<pallas_src>
import jax
import jax.numpy as jnp
import numpy as np
from jax import lax
from jax.experimental import pallas as pl
from jax.experimental.pallas import tpu as pltpu


# ------------------------------ fused kernel ------------------------------- #

def _denoise_fused_kernel(x_ref, w1_ref, wmid_ref, w3t_ref, bmid_ref, b3_ref,
                          o_ref, buf0, buf1):
    """One batch element: conv1..conv6(+LeakyReLU) then conv3 (1x1), fused.

    x_ref:    (1, H, W, Cin0)      unpadded network input, bf16
    w1_ref:   (3*Cin0, 3*C)        conv1 weights (rows=(kw,ci), cols=(kh,co)), bf16
    wmid_ref: (4, 3*C, 3*C)        conv2/4/5/6 weights, same packing, bf16
    w3t_ref:  (Cout0, C)           conv3 1x1 weights (transposed), bf16
    bmid_ref: (5, C)               biases of conv1,2,4,5,6, f32
    b3_ref:   (Cout0, 1)           conv3 bias, f32
    o_ref:    (1, Cout0, H*W)      output (channel-major -> NCHW), f32
    buf0/1:   (H, W, C)            ping-pong UNPADDED activation scratch, bf16
    """
    H, W = x_ref.shape[1], x_ref.shape[2]
    Hp = H + 2
    C = buf0.shape[-1]

    def conv3x3_act(src, wbig, b_row):
        """3x3 'same' conv + LeakyReLU(0.2); src is UNPADDED.

        src: (H, W, cin) bf16; wbig: (3*cin, 3*cout) bf16, column blocks
        grouped by kh; b_row: (1, cout) f32 -> returns (H, W, cout) f32.
        """
        cin = src.shape[-1]
        cout = wbig.shape[-1] // 3
        # Width im2col with the zero halo injected here (scratch stays dense):
        # cols[h, w, dw*cin + ci] = x_padded[h+1, w + dw, ci]
        zc = jnp.zeros((H, 1, cin), jnp.bfloat16)
        cols = jnp.concatenate(
            [jnp.concatenate([zc, src[:, :W - 1, :]], axis=1),   # dw=0 -> w-1
             src,                                                # dw=1 -> w
             jnp.concatenate([src[:, 1:, :], zc], axis=1)],      # dw=2 -> w+1
            axis=-1)                                             # (H, W, 3*cin)
        zr = jnp.zeros((1, W, 3 * cin), jnp.bfloat16)
        cols_p = jnp.concatenate([zr, cols, zr], axis=0)         # (Hp, W, 3*cin)

        # ONE deep MXU matmul produces all three kh partial sums side-by-side
        # (output columns 3*cout instead of cout -> 3x fewer MXU passes).
        p = jnp.dot(cols_p.reshape(Hp * W, 3 * cin), wbig,
                    preferred_element_type=jnp.float32)          # (Hp*W, 3*cout)
        p = p.reshape(Hp, W, 3 * cout)

        # Combine the kh blocks: two row shifts + column-block extraction.
        y = (p[0:H, :, 0:cout]
             + p[1:H + 1, :, cout:2 * cout]
             + p[2:H + 2, :, 2 * cout:3 * cout])
        y = y + b_row.reshape(1, 1, cout)
        return jnp.maximum(y, 0.2 * y)                           # LeakyReLU(0.2)

    # conv1: network input -> buf0 (full, tile-aligned store)
    a = conv3x3_act(x_ref[0], w1_ref[...], bmid_ref[0:1, :])
    buf0[...] = a.astype(jnp.bfloat16)

    # conv2, conv4, conv5: ping-pong between the two VMEM buffers
    for li, (src, dst) in enumerate(((buf0, buf1), (buf1, buf0), (buf0, buf1))):
        a = conv3x3_act(src[...], wmid_ref[li], bmid_ref[li + 1:li + 2, :])
        dst[...] = a.astype(jnp.bfloat16)

    # conv6: keep the result as a value (the following 1x1 conv needs no halo)
    a6 = conv3x3_act(buf1[...], wmid_ref[3], bmid_ref[4:5, :])   # (H, W, C) f32

    # conv3 (1x1, no activation), fused. Compute (Cout0, H*W) directly so the
    # HBM store is lane-dense and the result is already in NCHW element order.
    y_t = lax.dot_general(
        w3t_ref[...], a6.reshape(H * W, C).astype(jnp.bfloat16),
        dimension_numbers=(((1,), (1,)), ((), ())),
        preferred_element_type=jnp.float32)                      # (Cout0, H*W)
    o_ref[0] = (y_t + b3_ref[...]).astype(o_ref.dtype)


# ------------------------------ forward pass ------------------------------- #

def _vmem_limit_bytes(H, W, C, Cin0, Cout0):
    """Explicit scoped-VMEM budget (re-derived from shapes, v7x-safe clamp)."""
    px = H * W
    bytes_per_px = (
        2 * 2 * 128        # two bf16 activation buffers, 64 lanes padded to 128
        + 2 * 256          # im2col operand bf16, 192 lanes padded to 256
        + 4 * 256          # matmul result f32, 192 lanes padded to 256
        + 2 * 4 * 128      # f32 epilogue temporaries
    )
    est = px * bytes_per_px
    est += 4 * (3 * C) * (3 * C) * 2 * 2          # mid-layer weights, 2x buffered
    est += 2 * px * max(Cin0, 8) * 2 * 2          # input block, 2x buffered
    est += 2 * px * Cout0 * 4                     # output block
    return int(min(max(2 * est, 32 * 1024 * 1024), 56 * 1024 * 1024))


def denoise_net_forward(x_nchw, packed):
    """DenoiseNet.forward; input/output in PyTorch NCHW layout."""
    w1p, wmid, w3t, bmid, b3 = packed
    N, Cin0, H, W = x_nchw.shape
    C = w3t.shape[1]
    Cout0 = w3t.shape[0]
    # Best performance when W is a multiple of 8 (f32) / 16 (bf16); correctness
    # does not depend on it.

    # NCHW -> NHWC, pre-cast to bf16 (half the input DMA bytes). No pre-pad:
    # the kernel injects the 'same' zero halo on the read side.
    x_nhwc = jnp.transpose(x_nchw, (0, 2, 3, 1)).astype(jnp.bfloat16)

    out = pl.pallas_call(
        _denoise_fused_kernel,
        out_shape=jax.ShapeDtypeStruct((N, Cout0, H * W), x_nchw.dtype),
        grid=(N,),
        in_specs=[
            pl.BlockSpec((1, H, W, Cin0), lambda n: (n, 0, 0, 0)),
            pl.BlockSpec((3 * Cin0, 3 * C), lambda n: (0, 0)),
            pl.BlockSpec((4, 3 * C, 3 * C), lambda n: (0, 0, 0)),
            pl.BlockSpec((Cout0, C), lambda n: (0, 0)),
            pl.BlockSpec((5, C), lambda n: (0, 0)),
            pl.BlockSpec((Cout0, 1), lambda n: (0, 0)),
        ],
        out_specs=pl.BlockSpec((1, Cout0, H * W), lambda n: (n, 0, 0)),
        scratch_shapes=[pltpu.VMEM((H, W, C), jnp.bfloat16),
                        pltpu.VMEM((H, W, C), jnp.bfloat16)],
        compiler_params=pltpu.CompilerParams(
            dimension_semantics=("parallel",),
            vmem_limit_bytes=_vmem_limit_bytes(H, W, C, Cin0, Cout0)),
    )(x_nhwc, w1p, wmid, w3t, bmid, b3)

    # (N, Cout0, H*W) is already channel-major -> free reshape to NCHW.
    return out.reshape(N, Cout0, H, W)


# --------------------------- parameter creation ---------------------------- #

def _orthogonal(key, torch_shape):
    """Deterministic orthogonal init mirroring torch.nn.init.orthogonal_."""
    rows = torch_shape[0]
    cols = int(np.prod(torch_shape[1:]))
    flat = jax.random.normal(key, (rows, cols), dtype=jnp.float32)
    if rows < cols:
        flat = flat.T
    q, r = jnp.linalg.qr(flat)
    q = q * jnp.sign(jnp.diag(r))
    if rows < cols:
        q = q.T
    return q.reshape(torch_shape)


def make_params(key, n_chan, chan_embed):
    """List of (w_hwio, bias, apply_act) in forward order (conv1,2,4,5,6,3)."""
    defs = [
        (chan_embed, n_chan, 3, True),      # conv1 + act
        (chan_embed, chan_embed, 3, True),  # conv2 + act
        (chan_embed, chan_embed, 3, True),  # conv4 + act
        (chan_embed, chan_embed, 3, True),  # conv5 + act
        (chan_embed, chan_embed, 3, True),  # conv6 + act
        (n_chan, chan_embed, 1, False),     # conv3 (1x1), no act
    ]
    params = []
    for i, (cout, cin, k, act) in enumerate(defs):
        w_oihw = _orthogonal(jax.random.fold_in(key, i), (cout, cin, k, k))
        w_hwio = jnp.transpose(w_oihw, (2, 3, 1, 0))      # (kh, kw, Cin, Cout)
        b = jnp.zeros((cout,), jnp.float32)
        params.append((w_hwio, b, act))
    return params


def pack_params(params):
    """Pack/cast params into the kernel-ready layout (done once)."""
    (w1, b1, _), (w2, b2, _), (w4, b4, _), (w5, b5, _), (w6, b6, _), (w3, b3, _) = params
    C = w1.shape[3]
    cout0 = w3.shape[3]

    def big(w):
        # (kh, kw, cin, cout) -> (3*cin, 3*cout); rows=(kw,cin), cols=(kh,cout)
        cin, cout = w.shape[2], w.shape[3]
        return jnp.transpose(w, (1, 2, 0, 3)).reshape(3 * cin, 3 * cout)

    w1p = big(w1).astype(jnp.bfloat16)                               # (3*Cin0, 3*C)
    wmid = jnp.stack([big(w) for w in (w2, w4, w5, w6)]
                     ).astype(jnp.bfloat16)                          # (4, 3C, 3C)
    w3t = jnp.transpose(w3.reshape(C, cout0)).astype(jnp.bfloat16)   # (Cout0, C)
    bmid = jnp.stack([b1, b2, b4, b5, b6]).astype(jnp.float32)       # (5, C)
    b3r = b3.reshape(cout0, 1).astype(jnp.float32)                   # (Cout0, 1)
    return (w1p, wmid, w3t, bmid, b3r)


# ----------------------------- pure-JAX reference -------------------------- #

def _ref_forward(x_nchw, params):
    x = jnp.transpose(x_nchw, (0, 2, 3, 1))
    for w, b, act in params:
        k = w.shape[0]
        pad = (k - 1) // 2
        y = lax.conv_general_dilated(
            x, w, window_strides=(1, 1),
            padding=((pad, pad), (pad, pad)),
            dimension_numbers=("NHWC", "HWIO", "NHWC"),
        ) + b[None, None, None, :]
        x = jnp.where(y > 0, y, 0.2 * y) if act else y
    return jnp.transpose(x, (0, 3, 1, 2))


# ---------------------------------- main ----------------------------------- #

if __name__ == "__main__":
    key = jax.random.PRNGKey(0)
    n_chan, chan_embed = 4, 64
    N, H, W = 2, 16, 16

    x = jax.random.normal(jax.random.fold_in(key, 100),
                          (N, n_chan, H, W), dtype=jnp.float32)
    params = make_params(jax.random.fold_in(key, 200), n_chan, chan_embed)
    packed = pack_params(params)

    out = jax.block_until_ready(jax.jit(denoise_net_forward)(x, packed))

    ref = jax.block_until_ready(_ref_forward(x, params))
    assert out.shape == (N, n_chan, H, W)
    # Kernel uses bf16 MXU inputs with f32 accumulation -> tolerance is set for
    # bf16 rounding through 6 layers (structural bugs would be O(1) errors).
    np.testing.assert_allclose(np.asarray(out), np.asarray(ref),
                               rtol=3e-2, atol=3e-2)

    print("KERNEL_OK")
</pallas_src>

<mosaic_0001>
module attributes {stable_mosaic.version = 11 : i64} {
  func.func @_denoise_fused_kernel(%arg0: i32, %arg1: memref<1x16x16x4xbf16, #tpu.memory_space<vmem>>, %arg2: memref<12x192xbf16, #tpu.memory_space<vmem>>, %arg3: memref<4x192x192xbf16, #tpu.memory_space<vmem>>, %arg4: memref<4x64xbf16, #tpu.memory_space<vmem>>, %arg5: memref<5x64xf32, #tpu.memory_space<vmem>>, %arg6: memref<4x1xf32, #tpu.memory_space<vmem>>, %arg7: memref<1x4x256xf32, #tpu.memory_space<vmem>>, %arg8: memref<16x16x64xbf16, #tpu.memory_space<vmem>>, %arg9: memref<16x16x64xbf16, #tpu.memory_space<vmem>>) attributes {dimension_semantics = [#tpu.dimension_semantics<parallel>], iteration_bounds = array<i64: 2>, scalar_prefetch = 0 : i64, scratch_operands = 2 : i64, tpu.core_type = #tpu.core_type<tc>, window_params = [{transform_indices = @transform_0, window_bounds = array<i64: 1, 16, 16, 4>}, {pipeline_mode = #tpu.pipeline_mode<synchronous>, transform_indices = @transform_1, window_bounds = array<i64: 12, 192>}, {pipeline_mode = #tpu.pipeline_mode<synchronous>, transform_indices = @transform_2, window_bounds = array<i64: 4, 192, 192>}, {pipeline_mode = #tpu.pipeline_mode<synchronous>, transform_indices = @transform_3, window_bounds = array<i64: 4, 64>}, {pipeline_mode = #tpu.pipeline_mode<synchronous>, transform_indices = @transform_4, window_bounds = array<i64: 5, 64>}, {pipeline_mode = #tpu.pipeline_mode<synchronous>, transform_indices = @transform_5, window_bounds = array<i64: 4, 1>}, {transform_indices = @transform_6, window_bounds = array<i64: 1, 4, 256>}]} {
    %c0 = arith.constant 0 : index
    %c0_0 = arith.constant 0 : index
    %c0_1 = arith.constant 0 : index
    %c0_2 = arith.constant 0 : index
    %0 = vector.load %arg1[%c0, %c0_0, %c0_1, %c0_2] : memref<1x16x16x4xbf16, #tpu.memory_space<vmem>>, vector<1x16x16x4xbf16>
    %1 = vector.shape_cast %0 : vector<1x16x16x4xbf16> to vector<16x16x4xbf16>
    %c0_3 = arith.constant 0 : index
    %c0_4 = arith.constant 0 : index
    %2 = vector.load %arg2[%c0_3, %c0_4] : memref<12x192xbf16, #tpu.memory_space<vmem>>, vector<12x192xbf16>
    %c0_5 = arith.constant 0 : index
    %c0_6 = arith.constant 0 : index
    %3 = vector.load %arg5[%c0_5, %c0_6] : memref<5x64xf32, #tpu.memory_space<vmem>>, vector<1x64xf32>
    %cst = arith.constant 0.000000e+00 : bf16
    %4 = vector.broadcast %cst : bf16 to vector<16x1x4xbf16>
    %5 = vector.extract_strided_slice %1 {offsets = [0, 0, 0], sizes = [16, 15, 4], strides = [1, 1, 1]} : vector<16x16x4xbf16> to vector<16x15x4xbf16>
    %6 = tpu.concatenate %4, %5 in 1 : vector<16x1x4xbf16>, vector<16x15x4xbf16> -> vector<16x16x4xbf16>
    %7 = vector.extract_strided_slice %1 {offsets = [0, 1, 0], sizes = [16, 15, 4], strides = [1, 1, 1]} : vector<16x16x4xbf16> to vector<16x15x4xbf16>
    %8 = tpu.concatenate %7, %4 in 1 : vector<16x15x4xbf16>, vector<16x1x4xbf16> -> vector<16x16x4xbf16>
    %9 = tpu.concatenate %6, %1, %8 in 2 : vector<16x16x4xbf16>, vector<16x16x4xbf16>, vector<16x16x4xbf16> -> vector<16x16x12xbf16>
    %cst_7 = arith.constant 0.000000e+00 : bf16
    %10 = vector.broadcast %cst_7 : bf16 to vector<1x16x12xbf16>
    %11 = tpu.concatenate %10, %9, %10 in 0 : vector<1x16x12xbf16>, vector<16x16x12xbf16>, vector<1x16x12xbf16> -> vector<18x16x12xbf16>
    %12 = vector.shape_cast %11 : vector<18x16x12xbf16> to vector<288x12xbf16>
    %cst_8 = arith.constant dense<0.000000e+00> : vector<288x192xf32>
    %13 = tpu.matmul %12, %2, %cst_8 {dimension_numbers = #tpu.dot_dimension_numbers<[1], [0], [0], [1], [0, 0, 1, 1], [], []>} : vector<288x12xbf16>, vector<12x192xbf16>, vector<288x192xf32> -> vector<288x192xf32>
    %14 = vector.shape_cast %13 : vector<288x192xf32> to vector<18x16x192xf32>
    %15 = vector.extract_strided_slice %14 {offsets = [0, 0, 0], sizes = [16, 16, 64], strides = [1, 1, 1]} : vector<18x16x192xf32> to vector<16x16x64xf32>
    %16 = vector.extract_strided_slice %14 {offsets = [1, 0, 64], sizes = [16, 16, 64], strides = [1, 1, 1]} : vector<18x16x192xf32> to vector<16x16x64xf32>
    %17 = arith.addf %15, %16 : vector<16x16x64xf32>
    %18 = vector.extract_strided_slice %14 {offsets = [2, 0, 128], sizes = [16, 16, 64], strides = [1, 1, 1]} : vector<18x16x192xf32> to vector<16x16x64xf32>
    %19 = arith.addf %17, %18 : vector<16x16x64xf32>
    %20 = vector.shape_cast %3 : vector<1x64xf32> to vector<1x1x64xf32>
    %21 = vector.broadcast %20 : vector<1x1x64xf32> to vector<16x16x64xf32>
    %22 = arith.addf %19, %21 : vector<16x16x64xf32>
    %cst_9 = arith.constant 2.000000e-01 : f32
    %23 = vector.broadcast %cst_9 : f32 to vector<16x16x64xf32>
    %24 = arith.mulf %23, %22 : vector<16x16x64xf32>
    %25 = arith.maximumf %22, %24 : vector<16x16x64xf32>
    %26 = arith.truncf %25 : vector<16x16x64xf32> to vector<16x16x64xbf16>
    %c0_10 = arith.constant 0 : index
    %c0_11 = arith.constant 0 : index
    %c0_12 = arith.constant 0 : index
    %27 = vector.load %arg8[%c0_10, %c0_11, %c0_12] : memref<16x16x64xbf16, #tpu.memory_space<vmem>>, vector<16x16x64xbf16>
    tpu.vector_store %arg8[%c0_10, %c0_11, %c0_12], %26 {strides = array<i32>} : memref<16x16x64xbf16, #tpu.memory_space<vmem>>, vector<16x16x64xbf16>,
    %c0_13 = arith.constant 0 : index
    %c0_14 = arith.constant 0 : index
    %c0_15 = arith.constant 0 : index
    %28 = vector.load %arg8[%c0_13, %c0_14, %c0_15] : memref<16x16x64xbf16, #tpu.memory_space<vmem>>, vector<16x16x64xbf16>
    %c0_16 = arith.constant 0 : index
    %c0_17 = arith.constant 0 : index
    %c0_18 = arith.constant 0 : index
    %29 = vector.load %arg3[%c0_16, %c0_17, %c0_18] : memref<4x192x192xbf16, #tpu.memory_space<vmem>>, vector<1x192x192xbf16>
    %30 = vector.shape_cast %29 : vector<1x192x192xbf16> to vector<192x192xbf16>
    %c1 = arith.constant 1 : index
    %c0_19 = arith.constant 0 : index
    %31 = vector.load %arg5[%c1, %c0_19] : memref<5x64xf32, #tpu.memory_space<vmem>>, vector<1x64xf32>
    %cst_20 = arith.constant 0.000000e+00 : bf16
    %32 = vector.broadcast %cst_20 : bf16 to vector<16x1x64xbf16>
    %33 = vector.extract_strided_slice %28 {offsets = [0, 0, 0], sizes = [16, 15, 64], strides = [1, 1, 1]} : vector<16x16x64xbf16> to vector<16x15x64xbf16>
    %34 = tpu.concatenate %32, %33 in 1 : vector<16x1x64xbf16>, vector<16x15x64xbf16> -> vector<16x16x64xbf16>
    %35 = vector.extract_strided_slice %28 {offsets = [0, 1, 0], sizes = [16, 15, 64], strides = [1, 1, 1]} : vector<16x16x64xbf16> to vector<16x15x64xbf16>
    %36 = tpu.concatenate %35, %32 in 1 : vector<16x15x64xbf16>, vector<16x1x64xbf16> -> vector<16x16x64xbf16>
    %37 = tpu.concatenate %34, %28, %36 in 2 : vector<16x16x64xbf16>, vector<16x16x64xbf16>, vector<16x16x64xbf16> -> vector<16x16x192xbf16>
    %cst_21 = arith.constant 0.000000e+00 : bf16
    %38 = vector.broadcast %cst_21 : bf16 to vector<1x16x192xbf16>
    %39 = tpu.concatenate %38, %37, %38 in 0 : vector<1x16x192xbf16>, vector<16x16x192xbf16>, vector<1x16x192xbf16> -> vector<18x16x192xbf16>
    %40 = vector.shape_cast %39 : vector<18x16x192xbf16> to vector<288x192xbf16>
    %cst_22 = arith.constant dense<0.000000e+00> : vector<288x192xf32>
    %41 = tpu.matmul %40, %30, %cst_22 {dimension_numbers = #tpu.dot_dimension_numbers<[1], [0], [0], [1], [0, 0, 1, 1], [], []>} : vector<288x192xbf16>, vector<192x192xbf16>, vector<288x192xf32> -> vector<288x192xf32>
    %42 = vector.shape_cast %41 : vector<288x192xf32> to vector<18x16x192xf32>
    %43 = vector.extract_strided_slice %42 {offsets = [0, 0, 0], sizes = [16, 16, 64], strides = [1, 1, 1]} : vector<18x16x192xf32> to vector<16x16x64xf32>
    %44 = vector.extract_strided_slice %42 {offsets = [1, 0, 64], sizes = [16, 16, 64], strides = [1, 1, 1]} : vector<18x16x192xf32> to vector<16x16x64xf32>
    %45 = arith.addf %43, %44 : vector<16x16x64xf32>
    %46 = vector.extract_strided_slice %42 {offsets = [2, 0, 128], sizes = [16, 16, 64], strides = [1, 1, 1]} : vector<18x16x192xf32> to vector<16x16x64xf32>
    %47 = arith.addf %45, %46 : vector<16x16x64xf32>
    %48 = vector.shape_cast %31 : vector<1x64xf32> to vector<1x1x64xf32>
    %49 = vector.broadcast %48 : vector<1x1x64xf32> to vector<16x16x64xf32>
    %50 = arith.addf %47, %49 : vector<16x16x64xf32>
    %cst_23 = arith.constant 2.000000e-01 : f32
    %51 = vector.broadcast %cst_23 : f32 to vector<16x16x64xf32>
    %52 = arith.mulf %51, %50 : vector<16x16x64xf32>
    %53 = arith.maximumf %50, %52 : vector<16x16x64xf32>
    %54 = arith.truncf %53 : vector<16x16x64xf32> to vector<16x16x64xbf16>
    %c0_24 = arith.constant 0 : index
    %c0_25 = arith.constant 0 : index
    %c0_26 = arith.constant 0 : index
    %55 = vector.load %arg9[%c0_24, %c0_25, %c0_26] : memref<16x16x64xbf16, #tpu.memory_space<vmem>>, vector<16x16x64xbf16>
    tpu.vector_store %arg9[%c0_24, %c0_25, %c0_26], %54 {strides = array<i32>} : memref<16x16x64xbf16, #tpu.memory_space<vmem>>, vector<16x16x64xbf16>,
    %c0_27 = arith.constant 0 : index
    %c0_28 = arith.constant 0 : index
    %c0_29 = arith.constant 0 : index
    %56 = vector.load %arg9[%c0_27, %c0_28, %c0_29] : memref<16x16x64xbf16, #tpu.memory_space<vmem>>, vector<16x16x64xbf16>
    %c1_30 = arith.constant 1 : index
    %c0_31 = arith.constant 0 : index
    %c0_32 = arith.constant 0 : index
    %57 = vector.load %arg3[%c1_30, %c0_31, %c0_32] : memref<4x192x192xbf16, #tpu.memory_space<vmem>>, vector<1x192x192xbf16>
    %58 = vector.shape_cast %57 : vector<1x192x192xbf16> to vector<192x192xbf16>
    %c2 = arith.constant 2 : index
    %c0_33 = arith.constant 0 : index
    %59 = vector.load %arg5[%c2, %c0_33] : memref<5x64xf32, #tpu.memory_space<vmem>>, vector<1x64xf32>
    %cst_34 = arith.constant 0.000000e+00 : bf16
    %60 = vector.broadcast %cst_34 : bf16 to vector<16x1x64xbf16>
    %61 = vector.extract_strided_slice %56 {offsets = [0, 0, 0], sizes = [16, 15, 64], strides = [1, 1, 1]} : vector<16x16x64xbf16> to vector<16x15x64xbf16>
    %62 = tpu.concatenate %60, %61 in 1 : vector<16x1x64xbf16>, vector<16x15x64xbf16> -> vector<16x16x64xbf16>
    %63 = vector.extract_strided_slice %56 {offsets = [0, 1, 0], sizes = [16, 15, 64], strides = [1, 1, 1]} : vector<16x16x64xbf16> to vector<16x15x64xbf16>
    %64 = tpu.concatenate %63, %60 in 1 : vector<16x15x64xbf16>, vector<16x1x64xbf16> -> vector<16x16x64xbf16>
    %65 = tpu.concatenate %62, %56, %64 in 2 : vector<16x16x64xbf16>, vector<16x16x64xbf16>, vector<16x16x64xbf16> -> vector<16x16x192xbf16>
    %cst_35 = arith.constant 0.000000e+00 : bf16
    %66 = vector.broadcast %cst_35 : bf16 to vector<1x16x192xbf16>
    %67 = tpu.concatenate %66, %65, %66 in 0 : vector<1x16x192xbf16>, vector<16x16x192xbf16>, vector<1x16x192xbf16> -> vector<18x16x192xbf16>
    %68 = vector.shape_cast %67 : vector<18x16x192xbf16> to vector<288x192xbf16>
    %cst_36 = arith.constant dense<0.000000e+00> : vector<288x192xf32>
    %69 = tpu.matmul %68, %58, %cst_36 {dimension_numbers = #tpu.dot_dimension_numbers<[1], [0], [0], [1], [0, 0, 1, 1], [], []>} : vector<288x192xbf16>, vector<192x192xbf16>, vector<288x192xf32> -> vector<288x192xf32>
    %70 = vector.shape_cast %69 : vector<288x192xf32> to vector<18x16x192xf32>
    %71 = vector.extract_strided_slice %70 {offsets = [0, 0, 0], sizes = [16, 16, 64], strides = [1, 1, 1]} : vector<18x16x192xf32> to vector<16x16x64xf32>
    %72 = vector.extract_strided_slice %70 {offsets = [1, 0, 64], sizes = [16, 16, 64], strides = [1, 1, 1]} : vector<18x16x192xf32> to vector<16x16x64xf32>
    %73 = arith.addf %71, %72 : vector<16x16x64xf32>
    %74 = vector.extract_strided_slice %70 {offsets = [2, 0, 128], sizes = [16, 16, 64], strides = [1, 1, 1]} : vector<18x16x192xf32> to vector<16x16x64xf32>
    %75 = arith.addf %73, %74 : vector<16x16x64xf32>
    %76 = vector.shape_cast %59 : vector<1x64xf32> to vector<1x1x64xf32>
    %77 = vector.broadcast %76 : vector<1x1x64xf32> to vector<16x16x64xf32>
    %78 = arith.addf %75, %77 : vector<16x16x64xf32>
    %cst_37 = arith.constant 2.000000e-01 : f32
    %79 = vector.broadcast %cst_37 : f32 to vector<16x16x64xf32>
    %80 = arith.mulf %79, %78 : vector<16x16x64xf32>
    %81 = arith.maximumf %78, %80 : vector<16x16x64xf32>
    %82 = arith.truncf %81 : vector<16x16x64xf32> to vector<16x16x64xbf16>
    %c0_38 = arith.constant 0 : index
    %c0_39 = arith.constant 0 : index
    %c0_40 = arith.constant 0 : index
    %83 = vector.load %arg8[%c0_38, %c0_39, %c0_40] : memref<16x16x64xbf16, #tpu.memory_space<vmem>>, vector<16x16x64xbf16>
    tpu.vector_store %arg8[%c0_38, %c0_39, %c0_40], %82 {strides = array<i32>} : memref<16x16x64xbf16, #tpu.memory_space<vmem>>, vector<16x16x64xbf16>,
    %c0_41 = arith.constant 0 : index
    %c0_42 = arith.constant 0 : index
    %c0_43 = arith.constant 0 : index
    %84 = vector.load %arg8[%c0_41, %c0_42, %c0_43] : memref<16x16x64xbf16, #tpu.memory_space<vmem>>, vector<16x16x64xbf16>
    %c2_44 = arith.constant 2 : index
    %c0_45 = arith.constant 0 : index
    %c0_46 = arith.constant 0 : index
    %85 = vector.load %arg3[%c2_44, %c0_45, %c0_46] : memref<4x192x192xbf16, #tpu.memory_space<vmem>>, vector<1x192x192xbf16>
    %86 = vector.shape_cast %85 : vector<1x192x192xbf16> to vector<192x192xbf16>
    %c3 = arith.constant 3 : index
    %c0_47 = arith.constant 0 : index
    %87 = vector.load %arg5[%c3, %c0_47] : memref<5x64xf32, #tpu.memory_space<vmem>>, vector<1x64xf32>
    %cst_48 = arith.constant 0.000000e+00 : bf16
    %88 = vector.broadcast %cst_48 : bf16 to vector<16x1x64xbf16>
    %89 = vector.extract_strided_slice %84 {offsets = [0, 0, 0], sizes = [16, 15, 64], strides = [1, 1, 1]} : vector<16x16x64xbf16> to vector<16x15x64xbf16>
    %90 = tpu.concatenate %88, %89 in 1 : vector<16x1x64xbf16>, vector<16x15x64xbf16> -> vector<16x16x64xbf16>
    %91 = vector.extract_strided_slice %84 {offsets = [0, 1, 0], sizes = [16, 15, 64], strides = [1, 1, 1]} : vector<16x16x64xbf16> to vector<16x15x64xbf16>
    %92 = tpu.concatenate %91, %88 in 1 : vector<16x15x64xbf16>, vector<16x1x64xbf16> -> vector<16x16x64xbf16>
    %93 = tpu.concatenate %90, %84, %92 in 2 : vector<16x16x64xbf16>, vector<16x16x64xbf16>, vector<16x16x64xbf16> -> vector<16x16x192xbf16>
    %cst_49 = arith.constant 0.000000e+00 : bf16
    %94 = vector.broadcast %cst_49 : bf16 to vector<1x16x192xbf16>
    %95 = tpu.concatenate %94, %93, %94 in 0 : vector<1x16x192xbf16>, vector<16x16x192xbf16>, vector<1x16x192xbf16> -> vector<18x16x192xbf16>
    %96 = vector.shape_cast %95 : vector<18x16x192xbf16> to vector<288x192xbf16>
    %cst_50 = arith.constant dense<0.000000e+00> : vector<288x192xf32>
    %97 = tpu.matmul %96, %86, %cst_50 {dimension_numbers = #tpu.dot_dimension_numbers<[1], [0], [0], [1], [0, 0, 1, 1], [], []>} : vector<288x192xbf16>, vector<192x192xbf16>, vector<288x192xf32> -> vector<288x192xf32>
    %98 = vector.shape_cast %97 : vector<288x192xf32> to vector<18x16x192xf32>
    %99 = vector.extract_strided_slice %98 {offsets = [0, 0, 0], sizes = [16, 16, 64], strides = [1, 1, 1]} : vector<18x16x192xf32> to vector<16x16x64xf32>
    %100 = vector.extract_strided_slice %98 {offsets = [1, 0, 64], sizes = [16, 16, 64], strides = [1, 1, 1]} : vector<18x16x192xf32> to vector<16x16x64xf32>
    %101 = arith.addf %99, %100 : vector<16x16x64xf32>
    %102 = vector.extract_strided_slice %98 {offsets = [2, 0, 128], sizes = [16, 16, 64], strides = [1, 1, 1]} : vector<18x16x192xf32> to vector<16x16x64xf32>
    %103 = arith.addf %101, %102 : vector<16x16x64xf32>
    %104 = vector.shape_cast %87 : vector<1x64xf32> to vector<1x1x64xf32>
    %105 = vector.broadcast %104 : vector<1x1x64xf32> to vector<16x16x64xf32>
    %106 = arith.addf %103, %105 : vector<16x16x64xf32>
    %cst_51 = arith.constant 2.000000e-01 : f32
    %107 = vector.broadcast %cst_51 : f32 to vector<16x16x64xf32>
    %108 = arith.mulf %107, %106 : vector<16x16x64xf32>
    %109 = arith.maximumf %106, %108 : vector<16x16x64xf32>
    %110 = arith.truncf %109 : vector<16x16x64xf32> to vector<16x16x64xbf16>
    %c0_52 = arith.constant 0 : index
    %c0_53 = arith.constant 0 : index
    %c0_54 = arith.constant 0 : index
    %111 = vector.load %arg9[%c0_52, %c0_53, %c0_54] : memref<16x16x64xbf16, #tpu.memory_space<vmem>>, vector<16x16x64xbf16>
    tpu.vector_store %arg9[%c0_52, %c0_53, %c0_54], %110 {strides = array<i32>} : memref<16x16x64xbf16, #tpu.memory_space<vmem>>, vector<16x16x64xbf16>,
    %c0_55 = arith.constant 0 : index
    %c0_56 = arith.constant 0 : index
    %c0_57 = arith.constant 0 : index
    %112 = vector.load %arg9[%c0_55, %c0_56, %c0_57] : memref<16x16x64xbf16, #tpu.memory_space<vmem>>, vector<16x16x64xbf16>
    %c3_58 = arith.constant 3 : index
    %c0_59 = arith.constant 0 : index
    %c0_60 = arith.constant 0 : index
    %113 = vector.load %arg3[%c3_58, %c0_59, %c0_60] : memref<4x192x192xbf16, #tpu.memory_space<vmem>>, vector<1x192x192xbf16>
    %114 = vector.shape_cast %113 : vector<1x192x192xbf16> to vector<192x192xbf16>
    %c4 = arith.constant 4 : index
    %c0_61 = arith.constant 0 : index
    %115 = vector.load %arg5[%c4, %c0_61] : memref<5x64xf32, #tpu.memory_space<vmem>>, vector<1x64xf32>
    %cst_62 = arith.constant 0.000000e+00 : bf16
    %116 = vector.broadcast %cst_62 : bf16 to vector<16x1x64xbf16>
    %117 = vector.extract_strided_slice %112 {offsets = [0, 0, 0], sizes = [16, 15, 64], strides = [1, 1, 1]} : vector<16x16x64xbf16> to vector<16x15x64xbf16>
    %118 = tpu.concatenate %116, %117 in 1 : vector<16x1x64xbf16>, vector<16x15x64xbf16> -> vector<16x16x64xbf16>
    %119 = vector.extract_strided_slice %112 {offsets = [0, 1, 0], sizes = [16, 15, 64], strides = [1, 1, 1]} : vector<16x16x64xbf16> to vector<16x15x64xbf16>
    %120 = tpu.concatenate %119, %116 in 1 : vector<16x15x64xbf16>, vector<16x1x64xbf16> -> vector<16x16x64xbf16>
    %121 = tpu.concatenate %118, %112, %120 in 2 : vector<16x16x64xbf16>, vector<16x16x64xbf16>, vector<16x16x64xbf16> -> vector<16x16x192xbf16>
    %cst_63 = arith.constant 0.000000e+00 : bf16
    %122 = vector.broadcast %cst_63 : bf16 to vector<1x16x192xbf16>
    %123 = tpu.concatenate %122, %121, %122 in 0 : vector<1x16x192xbf16>, vector<16x16x192xbf16>, vector<1x16x192xbf16> -> vector<18x16x192xbf16>
    %124 = vector.shape_cast %123 : vector<18x16x192xbf16> to vector<288x192xbf16>
    %cst_64 = arith.constant dense<0.000000e+00> : vector<288x192xf32>
    %125 = tpu.matmul %124, %114, %cst_64 {dimension_numbers = #tpu.dot_dimension_numbers<[1], [0], [0], [1], [0, 0, 1, 1], [], []>} : vector<288x192xbf16>, vector<192x192xbf16>, vector<288x192xf32> -> vector<288x192xf32>
    %126 = vector.shape_cast %125 : vector<288x192xf32> to vector<18x16x192xf32>
    %127 = vector.extract_strided_slice %126 {offsets = [0, 0, 0], sizes = [16, 16, 64], strides = [1, 1, 1]} : vector<18x16x192xf32> to vector<16x16x64xf32>
    %128 = vector.extract_strided_slice %126 {offsets = [1, 0, 64], sizes = [16, 16, 64], strides = [1, 1, 1]} : vector<18x16x192xf32> to vector<16x16x64xf32>
    %129 = arith.addf %127, %128 : vector<16x16x64xf32>
    %130 = vector.extract_strided_slice %126 {offsets = [2, 0, 128], sizes = [16, 16, 64], strides = [1, 1, 1]} : vector<18x16x192xf32> to vector<16x16x64xf32>
    %131 = arith.addf %129, %130 : vector<16x16x64xf32>
    %132 = vector.shape_cast %115 : vector<1x64xf32> to vector<1x1x64xf32>
    %133 = vector.broadcast %132 : vector<1x1x64xf32> to vector<16x16x64xf32>
    %134 = arith.addf %131, %133 : vector<16x16x64xf32>
    %cst_65 = arith.constant 2.000000e-01 : f32
    %135 = vector.broadcast %cst_65 : f32 to vector<16x16x64xf32>
    %136 = arith.mulf %135, %134 : vector<16x16x64xf32>
    %137 = arith.maximumf %134, %136 : vector<16x16x64xf32>
    %c0_66 = arith.constant 0 : index
    %c0_67 = arith.constant 0 : index
    %138 = vector.load %arg4[%c0_66, %c0_67] : memref<4x64xbf16, #tpu.memory_space<vmem>>, vector<4x64xbf16>
    %139 = vector.shape_cast %137 : vector<16x16x64xf32> to vector<256x64xf32>
    %140 = arith.truncf %139 : vector<256x64xf32> to vector<256x64xbf16>
    %cst_68 = arith.constant dense<0.000000e+00> : vector<4x256xf32>
    %141 = tpu.matmul %138, %140, %cst_68 {dimension_numbers = #tpu.dot_dimension_numbers<[1], [1], [0], [0], [0, 0, 1, 0], [], []>} : vector<4x64xbf16>, vector<256x64xbf16>, vector<4x256xf32> -> vector<4x256xf32>
    %c0_69 = arith.constant 0 : index
    %c0_70 = arith.constant 0 : index
    %142 = vector.load %arg6[%c0_69, %c0_70] : memref<4x1xf32, #tpu.memory_space<vmem>>, vector<4x1xf32>
    %143 = vector.broadcast %142 : vector<4x1xf32> to vector<4x256xf32>
    %144 = arith.addf %141, %143 : vector<4x256xf32>
    %c0_71 = arith.constant 0 : index
    %c0_72 = arith.constant 0 : index
    %c0_73 = arith.constant 0 : index
    %145 = vector.load %arg7[%c0_71, %c0_72, %c0_73] : memref<1x4x256xf32, #tpu.memory_space<vmem>>, vector<1x4x256xf32>
    %146 = vector.shape_cast %145 : vector<1x4x256xf32> to vector<4x256xf32>
    %147 = vector.shape_cast %144 : vector<4x256xf32> to vector<1x4x256xf32>
    tpu.vector_store %arg7[%c0_71, %c0_72, %c0_73], %147 {strides = array<i32>} : memref<1x4x256xf32, #tpu.memory_space<vmem>>, vector<1x4x256xf32>,
    return
  }
  func.func @transform_0(%arg0: i32) -> (i32, i32, i32, i32) {
    %c0_i32 = arith.constant 0 : i32
    %c0_i32_0 = arith.constant 0 : i32
    %c0_i32_1 = arith.constant 0 : i32
    %c0_i32_2 = arith.constant 0 : i32
    return %arg0, %c0_i32, %c0_i32_0, %c0_i32_1 : i32, i32, i32, i32
  }
  func.func @transform_1(%arg0: i32) -> (i32, i32) {
    %c0_i32 = arith.constant 0 : i32
    %c0_i32_0 = arith.constant 0 : i32
    %c0_i32_1 = arith.constant 0 : i32
    return %c0_i32, %c0_i32_0 : i32, i32
  }
  func.func @transform_2(%arg0: i32) -> (i32, i32, i32) {
    %c0_i32 = arith.constant 0 : i32
    %c0_i32_0 = arith.constant 0 : i32
    %c0_i32_1 = arith.constant 0 : i32
    %c0_i32_2 = arith.constant 0 : i32
    return %c0_i32, %c0_i32_0, %c0_i32_1 : i32, i32, i32
  }
  func.func @transform_3(%arg0: i32) -> (i32, i32) {
    %c0_i32 = arith.constant 0 : i32
    %c0_i32_0 = arith.constant 0 : i32
    %c0_i32_1 = arith.constant 0 : i32
    return %c0_i32, %c0_i32_0 : i32, i32
  }
  func.func @transform_4(%arg0: i32) -> (i32, i32) {
    %c0_i32 = arith.constant 0 : i32
    %c0_i32_0 = arith.constant 0 : i32
    %c0_i32_1 = arith.constant 0 : i32
    return %c0_i32, %c0_i32_0 : i32, i32
  }
  func.func @transform_5(%arg0: i32) -> (i32, i32) {
    %c0_i32 = arith.constant 0 : i32
    %c0_i32_0 = arith.constant 0 : i32
    %c0_i32_1 = arith.constant 0 : i32
    return %c0_i32, %c0_i32_0 : i32, i32
  }
  func.func @transform_6(%arg0: i32) -> (i32, i32, i32) {
    %c0_i32 = arith.constant 0 : i32
    %c0_i32_0 = arith.constant 0 : i32
    %c0_i32_1 = arith.constant 0 : i32
    return %arg0, %c0_i32, %c0_i32_0 : i32, i32, i32
  }
}

</mosaic_0001>

<bundles_post_ra>
// kernel: denoise_net_forward.1
= control target key start
LH: loop header
LB: loop body
LE: loop exit
PB: predicated region body
PF: predicated region fallthrough
CT: control target
= control target key end

     0   :  { %11 = vsyncpa [#allocation5], 0  ;;  %s6257_s21 = smov 0   ;;  %s8938_s0 = inlined_call_operand.vmem [shape: bf16[2,16,16,4], index: 0, kind: input, shape index: {}]   ;;  %s8939_s1 = inlined_call_operand.vmem [shape: bf16[12,192], index: 1, kind: input, shape index: {}]   ;;  %s8940_s2 = inlined_call_operand.hbm [shape: bf16[4,192,192], index: 2, kind: input, shape index: {}]   ;;  %s8941_s3 = inlined_call_operand.vmem [shape: bf16[4,64], index: 3, kind: input, shape index: {}]   ;;  %s8942_s4 = inlined_call_operand.vmem [shape: f32[5,64], index: 4, kind: input, shape index: {}]   ;;  %s8943_s5 = inlined_call_operand.vmem [shape: f32[4,1], index: 5, kind: input, shape index: {}]   ;;  %s8944_s6 = inlined_call_operand.vmem [shape: f32[2,4,256], index: 6, kind: output, shape index: {}]  }
   0x1 LB: > { %s6263_s22 = sadd.s32 4294967295, %s6213_s21   ;;  %p5744_p0 = scmp.ge.s32.totalorder %s6213_s21, 1  ;;  %s6213_s21 = sphi %s6257_s21, %s17_s21  }
   0x2   : > { %p179_p1 = scmp.lt.s32.totalorder %s6213_s21, 3  ;;  %s6215_s23 = smov [#allocation4]  }
   0x3   : > { %s194_s24 = sshll.u32 %s6215_s23, 4  ;;  %p8945_p3 = scmp.eq.s32.totalorder %s6263_s22, 0  ;;  %s195_s24 = int_to_ptr.vmem [resolvable:$true] %s194_s24 }
   0x4   : > { %p6267_p2 = pnand %p5744_p0, %p179_p1  ;;  %s6175_s29 = scalar_lea.hbm %s8940_s2, 12288 }
   0x5   : > { %p6176_p6 = scmp.ne.s32.totalorder %s8940_s2, %s6175_s29  ;;  %p6182_p10 = scmp.lt.u32.totalorder %s6175_s29, %s8940_s2 }
   0x6   : > { %s8961_s25 = scalar_select %p6267_p2, 1, 0 }
   0x7   : > { %p5990_p4 = pneg %p6267_p2 }
   0x9   : > { %p6276_p5 = pnand %p8945_p3, %p5990_p4 }
   0xb   : > { %p6177_p7 = pneg %p6276_p5 }
   0xd   : > { %p6178_p8 = pnand %p6177_p7, %p6176_p6 }
   0xf   : > { %p6179_p9 = pneg %p6178_p8 }
  0x11   : > { %p6184_p11 = pnand %p6182_p10, %p6179_p9 }
  0x13   : > { %6187 = shalt.err (!%p6184_p11)
}
  0x14   : > { %s6188_s10 = scalar_lea.vmem %s195_s24, 12288  ;;  %p6196_p1 = scmp.lt.s32.totalorder %s195_s24, %s195_s24 }
  0x15   : > { %p6189_p12 = scmp.ne.s32.totalorder %s195_s24, %s6188_s10  ;;  %p6197_p4 = scmp.lt.s32.totalorder %s6188_s10, %s6188_s10 }
  0x17   : > { %p6191_p13 = pnand %p6189_p12, %p6177_p7  ;;  %p6198_p3 = por %p6197_p4, %p6196_p1 }
  0x19   : > { %p6192_p0 = pneg %p6191_p13 }
  0x1b   : > { %p6199_p2 = pnand %p6198_p3, %p6192_p0 }
  0x1d   : > { %6202 = shalt.err (!%p6199_p2)
}
  0x1e   : > { %s6216_s11 = smov 128   ;;  %s6217_s12 = smov 8  }
  0x1f   : > { %5993 = dma.hbm_to_vmem [thread:$0]  (!%p6276_p5), %s8940_s2, 12288, %s195_s24, [#allocation5], %s6216_s11, %s6216_s11, %s6217_s12  }
  0x20   : > { %p8963_p6 = scmp.ne.s32.totalorder %s8961_s25, 0 }
  0x22   : > { %227 = sbr.rel (%p8963_p6) target bundleno = 2780 (0xadc), region = 44 }
  0x29   : > { %p8964_p8 = scmp.eq.s32.totalorder %s6263_s22, 0 }
  0x2b   : > { %6208 = dma.done.wait (%p8964_p8), [#allocation5], 12288   ;;  %p8965_p7 = pmov %p8964_p8 }
  0x2c   : > { %p257_p2 = scmp.lt.s32.totalorder %s6263_s22, 1  ;;  %v8947_v0 = vmov 0   ;;  %vm579_vm0 = vsmask.f32 7424  ;;  %vm578_vm1 = vcmask 1047552   ;;  %s6219_s19 = smov 4  }
  0x2d   : > { %6210 = vsyncadd (%p8965_p7), [#allocation5], 4294955008  ;;  %842 = vmatprep.mubr.bf16.mxu0 %v8947_v0  ;;  %938 = vmatprep.mubr.bf16.mxu1 %v8947_v0  ;;  %s6220_s20 = smov 8   ;;  %vm803_vm3 = vcmask 1045504   ;;  %vm511_vm4 = vcmask 1040384   ;;  %vm677_vm7 = vcmask 31744  }
  0x2e   : > { %s9030_s22 = smov (!%p257_p2, %s6263_s22), 1  ;;  %6011 = vset.pattern.permute.xlu0 %v8947_v0  ;;  %vm6322_vm2 = vmand %vm578_vm1, %vm579_vm0  ;;  %v6023_v49 = vld [vmem:[%s8939_s1 + $0x4] ss:$8 sps:$4 sm:$0x3f]   ;;  %vm512_vm5 = vsmask.f32 256 }
  0x2f   : > { %s5956_s15 = sshll.u32 %s9030_s22, 7  ;;  %v6025_v53 = vld [vmem:[%s8939_s1] ss:$8 sps:$4 sm:$0x3f]   ;;  %5771 = vmatprep.subr.msk.bf16.mxu0 %vm803_vm3, %v6023_v49  ;;  %5976 = vmatprep.subr.msk.bf16.mxu1 %vm803_vm3, %v6023_v49  ;;  %vm6492_vm6 = vmand %vm511_vm4, %vm512_vm5  ;;  %vm726_vm8 = vcmask 64512   ;;  %vm767_vm9 = vcmask 97280  }
  0x30   : > { %s6313_s18 = scalar_lea.vmem %s8938_s0, %s5956_s15  ;;  %v805_v56 = vsel %vm803_vm3, %v6025_v53, 0  ;;  %s6221_s27 = smov 64   ;;  %vm1325_vm10 = vcmask 523264  }
  0x31   : > { %v6012_v1 = vld [vmem:[%s6313_s18] sm:$0xff]   ;;  %v6013_v2 = vld [vmem:[%s6313_s18 + $0x8] sm:$0xff]   ;;  %v6014_v7 = vld [vmem:[%s6313_s18 + $0x10] sm:$0xff]   ;;  %811 = vmatpush1.bf16.msra.mxu0 %v805_v56  ;;  %5977 = vmatpush1.bf16.msra.mxu1 %v805_v56 }
  0x32   : > { %597 = vrot.lane.b32.xlu0 %v6012_v1, %s6219_s19  ;;  %v384_v3 = vshrl.u32 %v6012_v1, 16  ;;  %v387_v4 = vshll.u32 %v6012_v1, 16  ;;  %599 = vrot.lane.b32.xlu1 %v6013_v2, %s6219_s19  ;;  %v391_v5 = vshrl.u32 %v6013_v2, 16  ;;  %v394_v6 = vshll.u32 %v6013_v2, 16  ;;  %v6015_v8 = vld [vmem:[%s6313_s18 + $0x18] sm:$0xff]   ;;  %v6016_v19 = vld [vmem:[%s6313_s18 + $0x20] sm:$0xff]  }
  0x33   : > { %v398_v14 = vshrl.u32 %v6014_v7, 16  ;;  %v401_v15 = vshll.u32 %v6014_v7, 16  ;;  %v405_v17 = vshrl.u32 %v6015_v8, 16  ;;  %v408_v18 = vshll.u32 %v6015_v8, 16  ;;  %v6328_v20 = vld [vmem:[%s6313_s18 + $0x28] sm:$0xff]   ;;  %v6346_v37 = vld [vmem:[%s6313_s18 + $0x30] sm:$0xff]  }
  0x34   : > { %v530_v9 = vrot.slane %v387_v4, 1  ;;  %v386_v10 = vrot.slane %v384_v3, 7  ;;  %v532_v12 = vrot.slane %v394_v6, 1  ;;  %v393_v13 = vrot.slane %v391_v5, 7  ;;  %v6352_v40 = vld [vmem:[%s6313_s18 + $0x38] sm:$0xff]   ;;  %v6362_v48 = vld [vmem:[%s6313_s18 + $0x40] sm:$0xff]   ;;  %843 = vmatmul.mubr.bf16.vlgmr.msra.gmra.mrb[0].mxu0 %v8947_v0 }
  0x35   : > { %v400_v23 = vrot.slane %v398_v14, 7  ;;  %v534_v24 = vrot.slane %v401_v15, 1  ;;  %v536_v27 = vrot.slane %v408_v18, 1  ;;  %v415_v30 = vshll.u32 %v6016_v19, 16  ;;  %v6379_v58 = vld [vmem:[%s6313_s18 + $0x48] sm:$0xff]   ;;  %v6390_v1 = vld [vmem:[%s6313_s18 + $0x50] sm:$0xff]   ;;  %850 = vmatprep.mubr.bf16.mxu0 %v8947_v0 }
  0x36   : > { %v531_v16 = vor.u32 %v530_v9, %v384_v3  ;;  %v6330_v21 = vor.u32 %v387_v4, %v386_v10  ;;  %v533_v22 = vor.u32 %v532_v12, %v391_v5  ;;  %v6332_v25 = vor.u32 %v394_v6, %v393_v13 }
  0x37   : > { %v535_v29 = vor.u32 %v534_v24, %v398_v14  ;;  %v412_v31 = vshrl.u32 %v6016_v19, 16  ;;  %v6340_v32 = vor.u32 %v401_v15, %v400_v23  ;;  %v537_v34 = vor.u32 %v536_v27, %v405_v17  ;;  %v6414_v15 = vld [vmem:[%s6313_s18 + $0x60] sm:$0xff]   ;;  %v6028_v23 = vld [vmem:[%s6313_s18 + $0x68] sm:$0xff]  }
  0x38   : > { %v581_v26 = vsel %vm6322_vm2, %v531_v16, 0  ;;  %v582_v28 = vsel %vm6322_vm2, %v533_v22, 0  ;;  %v538_v35 = vrot.slane %v415_v30, 1  ;;  %v422_v36 = vshll.u32 %v6328_v20, 16 }
  0x39   : > { %645 = vrot.lane.b32.xlu0 %v581_v26, %s6220_s20  ;;  %647 = vrot.lane.b32.xlu1 %v582_v28, %s6220_s20  ;;  %v583_v33 = vsel %vm6322_vm2, %v535_v29, 0  ;;  %v407_v38 = vrot.slane %v405_v17, 7  ;;  %v419_v39 = vshrl.u32 %v6328_v20, 16  ;;  %v584_v41 = vsel %vm6322_vm2, %v537_v34, 0 }
  0x3a   : > { %v539_v42 = vor.u32 %v538_v35, %v412_v31  ;;  %v540_v43 = vrot.slane %v422_v36, 1  ;;  %v429_v44 = vshll.u32 %v6346_v37, 16  ;;  %v414_v45 = vrot.slane %v412_v31, 7 }
  0x3b   : > { %v426_v46 = vshrl.u32 %v6346_v37, 16  ;;  %v436_v47 = vshll.u32 %v6352_v40, 16  ;;  %v6372_v54 = vor.u32 %v408_v18, %v407_v38  ;;  %v433_v55 = vshrl.u32 %v6352_v40, 16 }
  0x3c   : > { %v585_v50 = vsel %vm6322_vm2, %v539_v42, 0  ;;  %v541_v51 = vor.u32 %v540_v43, %v419_v39  ;;  %v542_v52 = vrot.slane %v429_v44, 1  ;;  %v443_v57 = vshll.u32 %v6362_v48, 16 }
  0x3d   : > { %601 = vrot.lane.b32.xlu0 %v6014_v7, %s6219_s19  ;;  %649 = vrot.lane.b32.xlu1 %v583_v33, %s6220_s20  ;;  %v6381_v59 = vor.u32 %v415_v30, %v414_v45  ;;  %v544_v62 = vrot.slane %v436_v47, 1  ;;  %v421_v63 = vrot.slane %v419_v39, 7  ;;  %v440_v2 = vshrl.u32 %v6362_v48, 16  ;;  %v6402_v7 = vld [vmem:[%s6313_s18 + $0x58] sm:$0xff]   ;;  %v6029_v33 = vld [vmem:[%s6313_s18 + $0x70] sm:$0xff]  }
  0x3e   : > { %v586_v60 = vsel %vm6322_vm2, %v541_v51, 0  ;;  %v543_v61 = vor.u32 %v542_v52, %v426_v46  ;;  %v546_v5 = vrot.slane %v443_v57, 1  ;;  %v450_v6 = vshll.u32 %v6379_v58, 16 }
  0x3f   : > { %v545_v4 = vor.u32 %v544_v62, %v433_v55  ;;  %v447_v9 = vshrl.u32 %v6379_v58, 16  ;;  %v457_v14 = vshll.u32 %v6390_v1, 16  ;;  %v428_v16 = vrot.slane %v426_v46, 7  ;;  %v6030_v46 = vld [vmem:[%s6313_s18 + $0x78] sm:$0xff]   ;;  %s5957_s18 = sshll.u32 %s9030_s22, 3 }
  0x40   : > { %v587_v3 = vsel %vm6322_vm2, %v543_v61, 0  ;;  %v547_v12 = vor.u32 %v546_v5, %v440_v2  ;;  %v548_v13 = vrot.slane %v450_v6, 1  ;;  %v464_v17 = vshll.u32 %v6402_v7, 16  ;;  %s266_s23 = scalar_lea.vmem %s8944_s6, %s5957_s18 }
  0x41   : > { %603 = vrot.lane.b32.xlu0 %v6015_v8, %s6219_s19  ;;  %651 = vrot.lane.b32.xlu1 %v584_v41, %s6220_s20  ;;  %v6406_v8 = vor.u32 %v422_v36, %v421_v63  ;;  %v588_v10 = vsel %vm6322_vm2, %v545_v4, 0  ;;  %v550_v22 = vrot.slane %v457_v14, 1  ;;  %v6428_v24 = vor.u32 %v429_v44, %v428_v16 }
  0x42   : > { %v589_v18 = vsel %vm6322_vm2, %v547_v12, 0  ;;  %v461_v26 = vshrl.u32 %v6402_v7, 16  ;;  %v552_v27 = vrot.slane %v464_v17, 1  ;;  %v471_v28 = vshll.u32 %v6414_v15, 16 }
  0x43   : > { %v435_v31 = vrot.slane %v433_v55, 7  ;;  %v468_v35 = vshrl.u32 %v6414_v15, 16  ;;  %v478_v38 = vshll.u32 %v6028_v23, 16  ;;  %v475_v43 = vshrl.u32 %v6028_v23, 16 }
  0x44   : > { %v553_v34 = vor.u32 %v552_v27, %v461_v26  ;;  %v554_v36 = vrot.slane %v471_v28, 1  ;;  %v485_v45 = vshll.u32 %v6029_v33, 16  ;;  %v442_v49 = vrot.slane %v440_v2, 7 }
  0x45   : > { %605 = vrot.lane.b32.xlu0 %v6016_v19, %s6219_s19  ;;  %653 = vrot.lane.b32.xlu1 %v585_v50, %s6220_s20  ;;  %v549_v19 = vor.u32 %v548_v13, %v447_v9  ;;  %v6446_v39 = vor.u32 %v436_v47, %v435_v31  ;;  %v556_v44 = vrot.slane %v478_v38, 1  ;;  %v449_v50 = vrot.slane %v447_v9, 7 }
  0x46   : > { %v592_v41 = vsel %vm6322_vm2, %v553_v34, 0  ;;  %v555_v42 = vor.u32 %v554_v36, %v468_v35  ;;  %v482_v51 = vshrl.u32 %v6029_v33, 16  ;;  %v558_v52 = vrot.slane %v485_v45, 1 }
  0x47   : > { %v590_v29 = vsel %vm6322_vm2, %v549_v19, 0  ;;  %v557_v47 = vor.u32 %v556_v44, %v475_v43  ;;  %v492_v53 = vshll.u32 %v6030_v46, 16  ;;  %v6461_v55 = vor.u32 %v443_v57, %v442_v49 }
  0x48   : > { %v6463_v56 = vor.u32 %v450_v6, %v449_v50  ;;  %v489_v61 = vshrl.u32 %v6030_v46, 16  ;;  %v463_v2 = vrot.slane %v461_v26, 7  ;;  %v477_v4 = vrot.slane %v475_v43, 7 }
  0x49   : > { %607 = vrot.lane.b32.xlu0 %v6328_v20, %s6219_s19  ;;  %655 = vrot.lane.b32.xlu1 %v586_v60, %s6220_s20  ;;  %v454_v20 = vshrl.u32 %v6390_v1, 16  ;;  %v559_v60 = vor.u32 %v558_v52, %v482_v51  ;;  %v560_v62 = vrot.slane %v492_v53, 1  ;;  %v515_v26 = vsel %vm6492_vm6, 0, %v6332_v25 }
  0x4a   : > { %v516_v31 = vsel %vm6492_vm6, 0, %v6340_v32 }
  0x4b   : > { %v551_v30 = vor.u32 %v550_v22, %v454_v20  ;;  %v456_v63 = vrot.slane %v454_v20, 7  ;;  %v595_v57 = vsel %vm6322_vm2, %v559_v60, 0  ;;  %v561_v5 = vor.u32 %v560_v62, %v489_v61 }
  0x4d   : > { %609 = vrot.lane.b32.xlu0 %v6346_v37, %s6219_s19  ;;  %657 = vrot.lane.b32.xlu1 %v587_v3, %s6220_s20  ;;  %v591_v37 = vsel %vm6322_vm2, %v551_v30, 0  ;;  %v470_v3 = vrot.slane %v468_v35, 7  ;;  %v6475_v6 = vor.u32 %v457_v14, %v456_v63  ;;  %v596_v13 = vsel %vm6322_vm2, %v561_v5, 0 }
  0x4e   : > { %v8968_v14 = vmov 0  ;;  %v520_v5 = vsel %vm6492_vm6, 0, %v6428_v24 }
  0x4f   : > { %v6479_v9 = vor.u32 %v471_v28, %v470_v3  ;;  %v8969_v14 = vsel %vm6492_vm6, 4294967295, %v8968_v14  ;;  %v524_v63 = vsel %vm6492_vm6, 0, %v6475_v6 }
  0x50   : > { %8970 = vst [vmem:[#allocation7_spill] sm:$0xff] %v8969_v14 }
  0x51   : > { %611 = vrot.lane.b32.xlu0 %v6352_v40, %s6219_s19  ;;  %659 = vrot.lane.b32.xlu1 %v588_v10, %s6220_s20  ;;  %v593_v40 = vsel %vm6322_vm2, %v555_v42, 0  ;;  %v6481_v10 = vor.u32 %v478_v38, %v477_v4  ;;  %v517_v38 = vsel %vm6492_vm6, 0, %v6372_v54  ;;  %v522_v54 = vsel %vm6492_vm6, 0, %v6461_v55 }
  0x52   : > { %v519_v55 = vsel %vm6492_vm6, 0, %v6406_v8 }
  0x53   : > { %v527_v24 = vsel %vm6492_vm6, 0, %v6481_v10 }
  0x55   : > { %613 = vrot.lane.b32.xlu0 %v6362_v48, %s6219_s19  ;;  %661 = vrot.lane.b32.xlu1 %v589_v18, %s6220_s20  ;;  %v484_v48 = vrot.slane %v482_v51, 7  ;;  %v514_v18 = vsel %vm6492_vm6, 0, %v6330_v21 }
  0x57   : > { %v6484_v12 = vor.u32 %v485_v45, %v484_v48 }
  0x59   : > { %615 = vrot.lane.b32.xlu0 %v6379_v58, %s6219_s19  ;;  %663 = vrot.lane.b32.xlu1 %v590_v29, %s6220_s20  ;;  %v594_v58 = vsel %vm6322_vm2, %v557_v47, 0 }
  0x5d   : > { %617 = vrot.lane.b32.xlu0 %v6390_v1, %s6219_s19  ;;  %665 = vrot.lane.b32.xlu1 %v591_v37, %s6220_s20 }
  0x61   : > { %619 = vrot.lane.b32.xlu0 %v6402_v7, %s6219_s19  ;;  %667 = vrot.lane.b32.xlu1 %v592_v41, %s6220_s20  ;;  %v6477_v7 = vor.u32 %v464_v17, %v463_v2 }
  0x65   : > { %621 = vrot.lane.b32.xlu0 %v6414_v15, %s6219_s19  ;;  %669 = vrot.lane.b32.xlu1 %v593_v40, %s6220_s20  ;;  %v491_v15 = vrot.slane %v489_v61, 7 }
  0x67   : > { %v6490_v1 = vor.u32 %v492_v53, %v491_v15 }
  0x69   : > { %623 = vrot.lane.b32.xlu0 %v6028_v23, %s6219_s19  ;;  %671 = vrot.lane.b32.xlu1 %v594_v58, %s6220_s20 }
  0x6d   : > { %625 = vrot.lane.b32.xlu0 %v6029_v33, %s6219_s19  ;;  %673 = vrot.lane.b32.xlu1 %v595_v57, %s6220_s20 }
  0x71   : > { %627 = vrot.lane.b32.xlu0 %v6030_v46, %s6219_s19  ;;  %675 = vrot.lane.b32.xlu1 %v596_v13, %s6220_s20  ;;  %v518_v46 = vsel %vm6492_vm6, 0, %v6381_v59  ;;  %v523_v59 = vsel %vm6492_vm6, 0, %v6463_v56  ;;  %v525_v13 = vsel %vm6492_vm6, 0, %v6477_v7 }
  0xa4   : > { %v598_v16 = vpop.permute.xlu0 %597  ;;  %v600_v17 = vpop.permute.xlu1 %599 }
  0xa5   : > { %v680_v19 = vsel %vm677_vm7, %v514_v18, %v598_v16  ;;  %v683_v21 = vsel %vm677_vm7, %v515_v26, %v600_v17 }
  0xab   : > { %v646_v20 = vpop.permute.xlu0 %645  ;;  %v648_v23 = vpop.permute.xlu1 %647 }
  0xac   : > { %v728_v22 = vsel %vm726_vm8, %v680_v19, %v646_v20  ;;  %v730_v30 = vsel %vm726_vm8, %v683_v21, %v648_v23 }
  0xad   : > { %5772 = vmatmul.mubr.msk.bf16.gmra.mrb[4].mxu0 %vm767_vm9, %v728_v22  ;;  %v521_v22 = vsel %vm6492_vm6, 0, %v6446_v39 }
  0xae   : > { %858 = vmatprep.mubr.bf16.mxu0 %v8947_v0 }
  0xaf   : > { %v602_v27 = vpop.permute.xlu0 %601  ;;  %v650_v28 = vpop.permute.xlu1 %649 }
  0xb0   : > { %v686_v25 = vsel %vm677_vm7, %v516_v31, %v602_v27  ;;  %v526_v27 = vsel %vm6492_vm6, 0, %v6479_v9 }
  0xb1   : > { %v732_v36 = vsel %vm726_vm8, %v686_v25, %v650_v28  ;;  %v528_v28 = vsel %vm6492_vm6, 0, %v6484_v12  ;;  %v529_v12 = vsel %vm6492_vm6, 0, %v6490_v1 }
  0xb3   : > { %v604_v29 = vpop.permute.xlu0 %603  ;;  %v652_v33 = vpop.permute.xlu1 %651 }
  0xb4   : > { %v689_v32 = vsel %vm677_vm7, %v517_v38, %v604_v29 }
  0xb5   : > { %5773 = vmatmul.mubr.msk.bf16.gmra.mrb[8].mxu0 %vm767_vm9, %v730_v30  ;;  %v734_v44 = vsel %vm726_vm8, %v689_v32, %v652_v33 }
  0xb6   : > { %868 = vmatprep.mubr.bf16.mxu0 %v8947_v0 }
  0xb7   : > { %v606_v34 = vpop.permute.xlu0 %605  ;;  %v654_v35 = vpop.permute.xlu1 %653 }
  0xb8   : > { %v692_v50 = vsel %vm677_vm7, %v518_v46, %v606_v34  ;;  %v6039_v46 = vld [vmem:[#allocation4 + $0x24] ss:$8 sps:$4 sm:$0xff]  }
  0xb9   : > { %v736_v53 = vsel %vm726_vm8, %v692_v50, %v654_v35  ;;  %v6040_v50 = vld [vmem:[#allocation4 + $0x30] ss:$8 sps:$4 sm:$0xff]  }
  0xbb   : > { %v608_v37 = vpop.permute.xlu0 %607  ;;  %v656_v41 = vpop.permute.xlu1 %655 }
  0xbc   : > { %v695_v56 = vsel %vm677_vm7, %v519_v55, %v608_v37  ;;  %v6052_v55 = vld [vmem:[#allocation4 + $0x70] ss:$8 sps:$4 sm:$0xff]  }
  0xbd   : > { %5774 = vmatmul.mubr.msk.bf16.gmra.mrb[12].mxu0 %vm767_vm9, %v732_v36  ;;  %v738_v4 = vsel %vm726_vm8, %v695_v56, %v656_v41 }
  0xbe   : > { %878 = vmatprep.mubr.bf16.mxu0 %v8947_v0 }
  0xbf   : > { %v610_v42 = vpop.permute.xlu0 %609  ;;  %v658_v43 = vpop.permute.xlu1 %657 }
  0xc0   : > { %v698_v15 = vsel %vm677_vm7, %v520_v5, %v610_v42  ;;  %v6031_v42 = vld [vmem:[#allocation4] ss:$8 sps:$4 sm:$0xff]  }
  0xc1   : > { %v740_v19 = vsel %vm726_vm8, %v698_v15, %v658_v43  ;;  %v6033_v43 = vld [vmem:[#allocation4 + $0x4] ss:$8 sps:$4 sm:$0xff]  }
  0xc2   : > { %1873 = vmatprep.subr.bf16.mxu1 %v6033_v43 }
  0xc3   : > { %v612_v45 = vpop.permute.xlu0 %611  ;;  %v660_v49 = vpop.permute.xlu1 %659 }
  0xc4   : > { %v701_v39 = vsel %vm677_vm7, %v521_v22, %v612_v45  ;;  %v6034_v45 = vld [vmem:[#allocation4 + $0x10] ss:$8 sps:$4 sm:$0xff]  }
  0xc5   : > { %5775 = vmatmul.mubr.msk.bf16.gmra.mrb[16].mxu0 %vm767_vm9, %v734_v44  ;;  %v742_v33 = vsel %vm726_vm8, %v701_v39, %v660_v49  ;;  %v6036_v44 = vld [vmem:[#allocation4 + $0x14] ss:$8 sps:$4 sm:$0xff]   ;;  %v6037_v49 = vld [vmem:[#allocation4 + $0x20] ss:$8 sps:$4 sm:$0xff]  }
  0xc6   : > { %888 = vmatprep.mubr.bf16.mxu0 %v8947_v0 }
  0xc7   : > { %v614_v40 = vpop.permute.xlu0 %613  ;;  %v662_v51 = vpop.permute.xlu1 %661 }
  0xc8   : > { %v704_v47 = vsel %vm677_vm7, %v522_v54, %v614_v40  ;;  %v6042_v54 = vld [vmem:[#allocation4 + $0x34] ss:$8 sps:$4 sm:$0xff]   ;;  %v6045_v40 = vld [vmem:[#allocation4 + $0x44] ss:$8 sps:$4 sm:$0xff]  }
  0xc9   : > { %v744_v52 = vsel %vm726_vm8, %v704_v47, %v662_v51  ;;  %v6043_v47 = vld [vmem:[#allocation4 + $0x40] ss:$8 sps:$4 sm:$0xff]   ;;  %v6048_v51 = vld [vmem:[#allocation4 + $0x54] ss:$8 sps:$4 sm:$0xff]  }
  0xcb   : > { %v616_v58 = vpop.permute.xlu0 %615  ;;  %v664_v61 = vpop.permute.xlu1 %663 }
  0xcc   : > { %v707_v60 = vsel %vm677_vm7, %v523_v59, %v616_v58  ;;  %v6051_v59 = vld [vmem:[#allocation4 + $0x64] ss:$8 sps:$4 sm:$0xff]   ;;  %v6054_v58 = vld [vmem:[#allocation4 + $0x74] ss:$8 sps:$4 sm:$0xff]  }
  0xcd   : > { %5776 = vmatmul.mubr.msk.bf16.gmra.mrb[20].mxu0 %vm767_vm9, %v736_v53  ;;  %v746_v62 = vsel %vm726_vm8, %v707_v60, %v664_v61  ;;  %v6049_v53 = vld [vmem:[#allocation4 + $0x60] ss:$8 sps:$4 sm:$0xff]   ;;  %v6057_v60 = vld [vmem:[#allocation4 + $0x84] ss:$8 sps:$4 sm:$0xff]  }
  0xce   : > { %898 = vmatprep.mubr.bf16.mxu0 %v8947_v0  ;;  %5781 = vmatmul.mubr.msk.bf16.vlgmr.msra.gmra.mrb[0].mxu1 %vm767_vm9, %v746_v62  ;;  %v6055_v61 = vld [vmem:[#allocation4 + $0x80] ss:$8 sps:$4 sm:$0xff]  }
  0xcf   : > { %v618_v2 = vpop.permute.xlu0 %617  ;;  %948 = vmatprep.mubr.bf16.mxu1 %v8947_v0  ;;  %v666_v3 = vpop.permute.xlu1 %665  ;;  %1874 = vmatpush1.bf16.msra.mxu1 %v6031_v42 }
  0xd0   : > { %v710_v8 = vsel %vm677_vm7, %v524_v63, %v618_v2  ;;  %1875 = vmatprep.subr.bf16.mxu1 %v6036_v44  ;;  %v6060_v2 = vld [vmem:[#allocation4 + $0x94] ss:$8 sps:$4 sm:$0xff]  }
  0xd1   : > { %v748_v48 = vsel %vm726_vm8, %v710_v8, %v666_v3  ;;  %v6058_v3 = vld [vmem:[#allocation4 + $0x90] ss:$8 sps:$4 sm:$0xff]  }
  0xd3   : > { %v620_v57 = vpop.permute.xlu0 %619  ;;  %v668_v6 = vpop.permute.xlu1 %667  ;;  %1876 = vmatpush1.bf16.msra.mxu1 %v6034_v45 }
  0xd4   : > { %v713_v17 = vsel %vm677_vm7, %v525_v13, %v620_v57  ;;  %1877 = vmatprep.subr.bf16.mxu1 %v6039_v46  ;;  %v6066_v13 = vld [vmem:[#allocation4 + $0xb4] ss:$8 sps:$4 sm:$0xff]  }
  0xd5   : > { %5777 = vmatmul.mubr.msk.bf16.gmra.mrb[24].mxu0 %vm767_vm9, %v738_v4  ;;  %v750_v7 = vsel %vm726_vm8, %v713_v17, %v668_v6  ;;  %v6063_v4 = vld [vmem:[#allocation4 + $0xa4] ss:$8 sps:$4 sm:$0xff]  }
  0xd6   : > { %908 = vmatprep.mubr.bf16.mxu0 %v8947_v0  ;;  %5782 = vmatmul.mubr.msk.bf16.gmra.mrb[4].mxu1 %vm767_vm9, %v748_v48  ;;  %v6061_v48 = vld [vmem:[#allocation4 + $0xa0] ss:$8 sps:$4 sm:$0xff]  }
  0xd7   : > { %958 = vmatprep.mubr.bf16.mxu1 %v8947_v0  ;;  %v622_v16 = vpop.permute.xlu0 %621  ;;  %v670_v18 = vpop.permute.xlu1 %669  ;;  %1878 = vmatpush1.bf16.msra.mxu1 %v6037_v49 }
  0xd8   : > { %v716_v29 = vsel %vm677_vm7, %v526_v27, %v622_v16  ;;  %1879 = vmatprep.subr.bf16.mxu1 %v6042_v54  ;;  %v6064_v16 = vld [vmem:[#allocation4 + $0xb0] ss:$8 sps:$4 sm:$0xff]  }
  0xd9   : > { %v752_v25 = vsel %vm726_vm8, %v716_v29, %v670_v18 }
  0xdb   : > { %v624_v20 = vpop.permute.xlu0 %623  ;;  %v672_v26 = vpop.permute.xlu1 %671  ;;  %1880 = vmatpush1.bf16.msra.mxu1 %v6040_v50 }
  0xdc   : > { %v719_v23 = vsel %vm677_vm7, %v527_v24, %v624_v20  ;;  %1881 = vmatprep.subr.bf16.mxu1 %v6045_v40 }
  0xdd   : > { %5778 = vmatmul.mubr.msk.bf16.gmra.mrb[28].mxu0 %vm767_vm9, %v740_v19  ;;  %v754_v10 = vsel %vm726_vm8, %v719_v23, %v672_v26 }
  0xde   : > { %918 = vmatprep.mubr.bf16.mxu0 %v8947_v0  ;;  %5783 = vmatmul.mubr.msk.bf16.gmra.mrb[8].mxu1 %vm767_vm9, %v750_v7 }
  0xdf   : > { %968 = vmatprep.mubr.bf16.mxu1 %v8947_v0  ;;  %v626_v21 = vpop.permute.xlu0 %625  ;;  %v674_v9 = vpop.permute.xlu1 %673  ;;  %1882 = vmatpush1.bf16.msra.mxu1 %v6043_v47 }
  0xe0   : > { %v722_v30 = vsel %vm677_vm7, %v528_v28, %v626_v21  ;;  %1883 = vmatprep.subr.bf16.mxu1 %v6048_v51 }
  0xe1   : > { %v756_v31 = vsel %vm726_vm8, %v722_v30, %v674_v9 }
  0xe3   : > { %v628_v34 = vpop.permute.xlu0 %627  ;;  %v676_v36 = vpop.permute.xlu1 %675 }
  0xe4   : > { %v725_v35 = vsel %vm677_vm7, %v529_v12, %v628_v34 }
  0xe5   : > { %5779 = vmatmul.mubr.msk.bf16.gmra.mrb[32].mxu0 %vm767_vm9, %v742_v33  ;;  %v758_v37 = vsel %vm726_vm8, %v725_v35, %v676_v36 }
  0xe6   : > { %928 = vmatprep.mubr.bf16.mxu0 %v8947_v0  ;;  %5784 = vmatmul.mubr.msk.bf16.gmra.mrb[12].mxu1 %vm767_vm9, %v752_v25 }
  0xe7   : > { %978 = vmatprep.mubr.bf16.mxu1 %v8947_v0 }
  0xed   : > { %5780 = vmatmul.mubr.msk.bf16.gmra.mrb[36].mxu0 %vm767_vm9, %v744_v52  ;;  %v6046_v52 = vld [vmem:[#allocation4 + $0x50] ss:$8 sps:$4 sm:$0xff]  }
  0xee   : > { %5785 = vmatmul.mubr.msk.bf16.gmra.mrb[16].mxu1 %vm767_vm9, %v754_v10  ;;  %2966 = vmatprep.mubr.bf16.mxu0 %v8947_v0 }
  0xef   : > { %988 = vmatprep.mubr.bf16.mxu1 %v8947_v0  ;;  %1884 = vmatpush1.bf16.msra.mxu1 %v6046_v52 }
  0xf0   : > { %1885 = vmatprep.subr.bf16.mxu1 %v6051_v59 }
  0xf3   : > { %1886 = vmatpush1.bf16.msra.mxu1 %v6049_v53 }
  0xf4   : > { %1887 = vmatprep.subr.bf16.mxu1 %v6054_v58 }
  0xf6   : > { %5786 = vmatmul.mubr.msk.bf16.gmra.mrb[20].mxu1 %vm767_vm9, %v756_v31 }
  0xf7   : > { %998 = vmatprep.mubr.bf16.mxu1 %v8947_v0  ;;  %1888 = vmatpush1.bf16.msra.mxu1 %v6052_v55 }
  0xf8   : > { %1889 = vmatprep.subr.bf16.mxu1 %v6057_v60 }
  0xfb   : > { %1890 = vmatpush1.bf16.msra.mxu1 %v6055_v61 }
  0xfc   : > { %1891 = vmatprep.subr.bf16.mxu1 %v6060_v2 }
  0xfe   : > { %5787 = vmatmul.mubr.msk.bf16.gmra.mrb[24].mxu1 %vm767_vm9, %v758_v37 }
  0xff   : > { %1008 = vmatprep.mubr.bf16.mxu1 %v8947_v0  ;;  %1892 = vmatpush1.bf16.msra.mxu1 %v6058_v3 }
 0x100   : > { %1893 = vmatprep.subr.bf16.mxu1 %v6063_v4 }
 0x103   : > { %1894 = vmatpush1.bf16.msra.mxu1 %v6061_v48 }
 0x104   : > { %1895 = vmatprep.subr.bf16.mxu1 %v6066_v13 }
 0x106   : > { %1009 = vmatmul.mubr.bf16.gmra.mrb[28].mxu1 %v8947_v0 }
 0x107   : > { %1905 = vmatprep.mubr.bf16.mxu1 %v8947_v0  ;;  %v6610_v1 = vpop.f32.mrb[0].mxu0  ;;  %1896 = vmatpush1.bf16.msra.mxu1 %v6064_v16 }
 0x108   : > { %v846_v38 = vpop.f32.mrb[1].mxu0 }
 0x109   : > { %v6612_v41 = vpop.f32.mrb[2].mxu0 }
 0x10a   : > { %v849_v32 = vpop.f32.mrb[3].mxu0 }
 0x10e   : > { %1906 = vmatmul.mubr.bf16.vlgmr.msra.gmra.mrb[32].mxu1 %v8947_v0 }
 0x180   : > { %v6614_v62 = vpop.f32.mrb[4].mxu0 }
 0x181   : > { %1049 = vrot.lane.b32.xlu0 %v6614_v62, %s6221_s27  ;;  %v854_v63 = vpop.f32.mrb[5].mxu0 }
 0x182   : > { %v6618_v56 = vpop.f32.mrb[6].mxu0 }
 0x183   : > { %1051 = vrot.lane.b32.xlu1 %v6618_v56, %s6221_s27  ;;  %v857_v8 = vpop.f32.mrb[7].mxu0 }
 0x188   : > { %v6622_v57 = vpop.f32.mrb[8].mxu0 }
 0x189   : > { %1053 = vrot.lane.b32.xlu0 %v6622_v57, %s6221_s27  ;;  %v6626_v5 = vpop.f32.mrb[9].mxu0 }
 0x18a   : > { %v6628_v6 = vpop.f32.mrb[10].mxu0 }
 0x18b   : > { %1055 = vrot.lane.b32.xlu1 %v6628_v6, %s6221_s27  ;;  %v6632_v15 = vpop.f32.mrb[11].mxu0 }
 0x190   : > { %v6634_v17 = vpop.f32.mrb[12].mxu0 }
 0x191   : > { %1057 = vrot.lane.b32.xlu0 %v6634_v17, %s6221_s27  ;;  %v6639_v18 = vpop.f32.mrb[13].mxu0 }
 0x192   : > { %v6641_v24 = vpop.f32.mrb[14].mxu0 }
 0x193   : > { %1059 = vrot.lane.b32.xlu1 %v6641_v24, %s6221_s27  ;;  %v6645_v19 = vpop.f32.mrb[15].mxu0 }
 0x198   : > { %v6647_v7 = vpop.f32.mrb[16].mxu0 }
 0x199   : > { %1061 = vrot.lane.b32.xlu0 %v6647_v7, %s6221_s27  ;;  %v6651_v20 = vpop.f32.mrb[17].mxu0 }
 0x19a   : > { %v6653_v22 = vpop.f32.mrb[18].mxu0 }
 0x19b   : > { %1063 = vrot.lane.b32.xlu1 %v6653_v22, %s6221_s27  ;;  %v6657_v23 = vpop.f32.mrb[19].mxu0 }
 0x1a0   : > { %v6659_v26 = vpop.f32.mrb[20].mxu0 }
 0x1a1   : > { %1065 = vrot.lane.b32.xlu0 %v6659_v26, %s6221_s27  ;;  %v6663_v27 = vpop.f32.mrb[21].mxu0  ;;  %v6665_v10 = vpop.f32.mrb[0].mxu1 }
 0x1a2   : > { %8971 = vst [vmem:[#allocation8_spill] sm:$0xff] %v6665_v10  ;;  %v6667_v28 = vpop.f32.mrb[22].mxu0  ;;  %v6669_v39 = vpop.f32.mrb[1].mxu1 }
 0x1a3   : > { %1067 = vrot.lane.b32.xlu1 %v6667_v28, %s6221_s27  ;;  %v6673_v21 = vpop.f32.mrb[23].mxu0  ;;  %v6675_v29 = vpop.f32.mrb[2].mxu1 }
 0x1a4   : > { %8972 = vst [vmem:[#allocation9_spill] sm:$0xff] %v6675_v29  ;;  %v6677_v30 = vpop.f32.mrb[3].mxu1 }
 0x1a8   : > { %v6679_v9 = vpop.f32.mrb[24].mxu0 }
 0x1a9   : > { %1069 = vrot.lane.b32.xlu0 %v6679_v9, %s6221_s27  ;;  %v6683_v31 = vpop.f32.mrb[25].mxu0  ;;  %v6685_v12 = vpop.f32.mrb[4].mxu1 }
 0x1aa   : > { %8973 = vst [vmem:[#allocation10_spill] sm:$0xff] %v6685_v12  ;;  %v6687_v33 = vpop.f32.mrb[26].mxu0  ;;  %v6689_v25 = vpop.f32.mrb[5].mxu1 }
 0x1ab   : > { %8974 = vst [vmem:[#allocation11_spill] sm:$0xff] %v6689_v25  ;;  %1071 = vrot.lane.b32.xlu1 %v6687_v33, %s6221_s27  ;;  %v6693_v34 = vpop.f32.mrb[27].mxu0  ;;  %v6695_v35 = vpop.f32.mrb[6].mxu1 }
 0x1ac   : > { %v6697_v36 = vpop.f32.mrb[7].mxu1 }
 0x1ad   : > { %8975 = vst [vmem:[#allocation12_spill] sm:$0xff] %v6697_v36 }
 0x1b0   : > { %v6699_v37 = vpop.f32.mrb[28].mxu0 }
 0x1b1   : > { %1073 = vrot.lane.b32.xlu0 %v6699_v37, %s6221_s27  ;;  %v6703_v38 = vpop.f32.mrb[29].mxu0  ;;  %v6705_v32 = vpop.f32.mrb[8].mxu1 }
 0x1b2   : > { %v6707_v42 = vpop.f32.mrb[30].mxu0  ;;  %v6709_v43 = vpop.f32.mrb[9].mxu1 }
 0x1b3   : > { %8976 = vst [vmem:[#allocation13_spill] sm:$0xff] %v6709_v43  ;;  %1075 = vrot.lane.b32.xlu1 %v6707_v42, %s6221_s27  ;;  %v6713_v44 = vpop.f32.mrb[31].mxu0  ;;  %v6715_v45 = vpop.f32.mrb[10].mxu1 }
 0x1b4   : > { %v6717_v46 = vpop.f32.mrb[11].mxu1 }
 0x1b5   : > { %8977 = vst [vmem:[#allocation14_spill] sm:$0xff] %v6717_v46 }
 0x1b8   : > { %v6719_v49 = vpop.f32.mrb[32].mxu0 }
 0x1b9   : > { %1077 = vrot.lane.b32.xlu0 %v6719_v49, %s6221_s27  ;;  %v6723_v54 = vpop.f32.mrb[33].mxu0  ;;  %v6725_v50 = vpop.f32.mrb[12].mxu1 }
 0x1ba   : > { %v6727_v40 = vpop.f32.mrb[34].mxu0  ;;  %v6729_v47 = vpop.f32.mrb[13].mxu1 }
 0x1bb   : > { %8978 = vst [vmem:[#allocation15_spill] sm:$0xff] %v6729_v47  ;;  %1079 = vrot.lane.b32.xlu1 %v6727_v40, %s6221_s27  ;;  %v6733_v51 = vpop.f32.mrb[35].mxu0  ;;  %v6735_v52 = vpop.f32.mrb[14].mxu1 }
 0x1bc   : > { %v6737_v59 = vpop.f32.mrb[15].mxu1 }
 0x1bd   : > { %8979 = vst [vmem:[#allocation16_spill] sm:$0xff] %v6737_v59 }
 0x1c0   : > { %v6739_v53 = vpop.f32.mrb[36].mxu0 }
 0x1c1   : > { %1081 = vrot.lane.b32.xlu0 %v6739_v53, %s6221_s27  ;;  %v6743_v58 = vpop.f32.mrb[37].mxu0  ;;  %v6745_v55 = vpop.f32.mrb[16].mxu1 }
 0x1c2   : > { %v6747_v60 = vpop.f32.mrb[38].mxu0  ;;  %v6749_v61 = vpop.f32.mrb[17].mxu1 }
 0x1c3   : > { %8980 = vst [vmem:[#allocation17_spill] sm:$0xff] %v6747_v60  ;;  %8981 = vst [vmem:[#allocation18_spill] sm:$0xff] %v6749_v61  ;;  %1083 = vrot.lane.b32.xlu1 %v6747_v60, %s6221_s27  ;;  %v6753_v63 = vpop.f32.mrb[39].mxu0  ;;  %v6755_v2 = vpop.f32.mrb[18].mxu1 }
 0x1c4   : > { %v6757_v8 = vpop.f32.mrb[19].mxu1 }
 0x1c5   : > { %8982 = vst [vmem:[#allocation19_spill] sm:$0xff] %v6757_v8  ;;  %1085 = vrot.lane.b32.xlu0 %v6665_v10, %s6221_s27 }
 0x1c7   : > { %1087 = vrot.lane.b32.xlu1 %v6675_v29, %s6221_s27 }
 0x1c9   : > { %v6763_v3 = vpop.f32.mrb[20].mxu1 }
 0x1ca   : > { %v6765_v4 = vpop.f32.mrb[21].mxu1 }
 0x1cb   : > { %8983 = vst [vmem:[#allocation20_spill] sm:$0xff] %v6765_v4  ;;  %1089 = vrot.lane.b32.xlu1 %v6685_v12, %s6221_s27  ;;  %v6769_v48 = vpop.f32.mrb[22].mxu1  ;;  %v6785_v4 = vld [vmem:[%s8942_s4] ss:$0 sm:$0xff] }
 0x1cc   : > { %v6771_v13 = vpop.f32.mrb[23].mxu1 }
 0x1cd   : > { %8984 = vst [vmem:[#allocation21_spill] sm:$0xff] %v6771_v13 }
 0x1d1   : > { %v6773_v16 = vpop.f32.mrb[24].mxu1 }
 0x1d2   : > { %v6775_v0 = vpop.f32.mrb[25].mxu1 }
 0x1d3   : > { %8985 = vst [vmem:[#allocation22_spill] sm:$0xff] %v6775_v0  ;;  %v6777_v8 = vpop.f32.mrb[26].mxu1 }
 0x1d4   : > { %v6779_v61 = vpop.f32.mrb[27].mxu1 }
 0x1d5   : > { %8986 = vst [vmem:[#allocation23_spill] sm:$0xff] %v6779_v61 }
 0x1d9   : > { %v1010_v59 = vpop.f32.mrb[28].mxu1 }
 0x1f3   : > { %v1050_v47 = vpop.permute.xlu0 %1049 }
 0x1f4   : > { %v1145_v46 = vadd.f32 %v1050_v47, %v6610_v1 }
 0x1f5   : > { %v1052_v12 = vpop.permute.xlu1 %1051 }
 0x1f6   : > { %v1177_v13 = vadd.f32 %v1145_v46, %v6626_v5  ;;  %v1146_v29 = vadd.f32 %v1052_v12, %v6612_v41 }
 0x1f8   : > { %v1213_v0 = vadd.f32 %v6785_v4, %v1177_v13  ;;  %v1178_v14 = vadd.f32 %v1146_v29, %v6632_v15 }
 0x1fa   : > { %v1245_v43 = vmul.f32 0.2, %v1213_v0  ;;  %v1214_v59 = vadd.f32 %v6785_v4, %v1178_v14 }
 0x1fb   : > { %v1054_v61 = vpop.permute.xlu0 %1053 }
 0x1fc   : > { %v1246_v10 = vmul.f32 0.2, %v1214_v59  ;;  %v1147_v1 = vadd.f32 %v1054_v61, %v6614_v62  ;;  %v1277_v36 = vmax.f32 %v1213_v0, %v1245_v43 }
 0x1fd   : > { %v1056_v47 = vpop.permute.xlu1 %1055 }
 0x1fe   : > { %v1278_v60 = vmax.f32 %v1214_v59, %v1246_v10  ;;  %v1179_v25 = vadd.f32 %v1147_v1, %v6639_v18  ;;  %v1148_v5 = vadd.f32 %v1056_v47, %v6618_v56 }
 0x200   : > { %v1309_v41 = vpack.c.bf16 %v1278_v60, %v1277_v36  ;;  %v1215_v12 = vadd.f32 %v6785_v4, %v1179_v25  ;;  %v1180_v15 = vadd.f32 %v1148_v5, %v6645_v19 }
 0x202   : > { %1326 = vst.msk [vmem:[#allocation2] sm:$0xff] %vm1325_vm10, %v1309_v41  ;;  %v1247_v14 = vmul.f32 0.2, %v1215_v12  ;;  %v1216_v29 = vadd.f32 %v6785_v4, %v1180_v15 }
 0x203   : > { %v1058_v46 = vpop.permute.xlu0 %1057 }
 0x204   : > { %v1248_v62 = vmul.f32 0.2, %v1216_v29  ;;  %v1149_v0 = vadd.f32 %v1058_v46, %v6622_v57  ;;  %v1279_v43 = vmax.f32 %v1215_v12, %v1247_v14 }
 0x205   : > { %v1060_v10 = vpop.permute.xlu1 %1059 }
 0x206   : > { %v1280_v18 = vmax.f32 %v1216_v29, %v1248_v62  ;;  %v1181_v56 = vadd.f32 %v1149_v0, %v6651_v20  ;;  %v1150_v36 = vadd.f32 %v1060_v10, %v6628_v6 }
 0x208   : > { %v1310_v60 = vpack.c.bf16 %v1280_v18, %v1279_v43  ;;  %v1217_v25 = vadd.f32 %v6785_v4, %v1181_v56  ;;  %v1182_v19 = vadd.f32 %v1150_v36, %v6657_v23 }
 0x209   : > { %v1342_v61 = vld [vmem:[#allocation2] sm:$0xff] }
 0x20a   : > { %1327 = vst.msk [vmem:[#allocation2 + $0x8] sm:$0xff] %vm1325_vm10, %v1310_v60  ;;  %v1249_v13 = vmul.f32 0.2, %v1217_v25  ;;  %v1218_v59 = vadd.f32 %v6785_v4, %v1182_v19  ;;  %v1387_v1 = vshll.u32 %v1342_v61, 16  ;;  %1607 = vrot.lane.b32.xlu0 %v1342_v61, %s6221_s27  ;;  %v1384_v57 = vshrl.u32 %v1342_v61, 16 }
 0x20b   : > { %v1062_v47 = vpop.permute.xlu0 %1061 }
 0x20c   : > { %v1250_v5 = vmul.f32 0.2, %v1218_v59  ;;  %v1151_v20 = vadd.f32 %v1062_v47, %v6634_v17  ;;  %v1527_v6 = vrot.slane %v1387_v1, 1  ;;  %v1281_v41 = vmax.f32 %v1217_v25, %v1249_v13 }
 0x20d   : > { %v1064_v12 = vpop.permute.xlu1 %1063  ;;  %v1386_v15 = vrot.slane %v1384_v57, 7 }
 0x20e   : > { %v1282_v14 = vmax.f32 %v1218_v59, %v1250_v5  ;;  %v1183_v23 = vadd.f32 %v1151_v20, %v6663_v27  ;;  %v1152_v29 = vadd.f32 %v1064_v12, %v6641_v24  ;;  %1091 = vrot.lane.b32.xlu0 %v6695_v35, %s6221_s27  ;;  %v1528_v46 = vor.u32 %v1527_v6, %v1384_v57 }
 0x20f   : > { %v6812_v62 = vor.u32 %v1387_v1, %v1386_v15 }
 0x210   : > { %v1311_v0 = vpack.c.bf16 %v1282_v14, %v1281_v41  ;;  %v1219_v10 = vadd.f32 %v6785_v4, %v1183_v23  ;;  %v1184_v17 = vadd.f32 %v1152_v29, %v6673_v21  ;;  %v1575_v43 = vsel %vm6322_vm2, %v1528_v46, 0 }
 0x211   : > { %5813 = vmatprep.mubr.msk.bf16.mxu1 %vm1325_vm10, %v1575_v43  ;;  %v6819_v18 = vld [vmem:[#allocation2 + $0x8] sm:$0xff] }
 0x212   : > { %1328 = vst.msk [vmem:[#allocation2 + $0x10] sm:$0xff] %vm1325_vm10, %v1311_v0  ;;  %v1251_v24 = vmul.f32 0.2, %v1219_v10  ;;  %v1220_v27 = vadd.f32 %v6785_v4, %v1184_v17  ;;  %1093 = vrot.lane.b32.xlu0 %v6705_v32, %s6221_s27  ;;  %1609 = vrot.lane.b32.xlu1 %v6819_v18, %s6221_s27 }
 0x213   : > { %v1066_v56 = vpop.permute.xlu0 %1065 }
 0x214   : > { %v1252_v21 = vmul.f32 0.2, %v1220_v27  ;;  %v1153_v36 = vadd.f32 %v1066_v56, %v6647_v7  ;;  %v1283_v25 = vmax.f32 %v1219_v10, %v1251_v24  ;;  %v6862_v56 = vpop.f32.mrb[29].mxu1 }
 0x215   : > { %v1068_v60 = vpop.permute.xlu1 %1067 }
 0x216   : > { %v1284_v19 = vmax.f32 %v1220_v27, %v1252_v21  ;;  %v1185_v61 = vadd.f32 %v1153_v36, %v6683_v31  ;;  %v1154_v13 = vadd.f32 %v1068_v60, %v6653_v22  ;;  %1095 = vrot.lane.b32.xlu1 %v6715_v45, %s6221_s27  ;;  %v1013_v21 = vpop.f32.mrb[30].mxu1 }
 0x218   : > { %v1312_v59 = vpack.c.bf16 %v1284_v19, %v1283_v25  ;;  %v1221_v1 = vadd.f32 %v6785_v4, %v1185_v61  ;;  %v1186_v57 = vadd.f32 %v1154_v13, %v6693_v34  ;;  %v6866_v19 = vpop.f32.mrb[31].mxu1 }
 0x219   : > { %v6834_v47 = vld [vmem:[#allocation2 + $0x10] sm:$0xff] }
 0x21a   : > { %1329 = vst.msk [vmem:[#allocation2 + $0x18] sm:$0xff] %vm1325_vm10, %v1312_v59  ;;  %v1253_v7 = vmul.f32 0.2, %v1221_v1  ;;  %v1222_v5 = vadd.f32 %v6785_v4, %v1186_v57  ;;  %1611 = vrot.lane.b32.xlu0 %v6834_v47, %s6221_s27  ;;  %1097 = vrot.lane.b32.xlu1 %v6725_v50, %s6221_s27 }
 0x21b   : > { %v1070_v22 = vpop.permute.xlu0 %1069 }
 0x21c   : > { %v1254_v31 = vmul.f32 0.2, %v1222_v5  ;;  %v1155_v20 = vadd.f32 %v1070_v22, %v6659_v26  ;;  %v1285_v41 = vmax.f32 %v1221_v1, %v1253_v7 }
 0x21d   : > { %v1072_v6 = vpop.permute.xlu1 %1071 }
 0x21e   : > { %v1286_v34 = vmax.f32 %v1222_v5, %v1254_v31  ;;  %v1187_v12 = vadd.f32 %v1155_v20, %v6703_v38  ;;  %v1156_v15 = vadd.f32 %v1072_v6, %v6667_v28  ;;  %1099 = vrot.lane.b32.xlu0 %v6735_v52, %s6221_s27 }
 0x220   : > { %v1313_v14 = vpack.c.bf16 %v1286_v34, %v1285_v41  ;;  %v1223_v23 = vadd.f32 %v6785_v4, %v1187_v12  ;;  %v1188_v29 = vadd.f32 %v1156_v15, %v6713_v44 }
 0x221   : > { %v6849_v46 = vld [vmem:[#allocation2 + $0x18] sm:$0xff] }
 0x222   : > { %1330 = vst.msk [vmem:[#allocation2 + $0x20] sm:$0xff] %vm1325_vm10, %v1313_v14  ;;  %v1255_v26 = vmul.f32 0.2, %v1223_v23  ;;  %v1224_v0 = vadd.f32 %v6785_v4, %v1188_v29  ;;  %1101 = vrot.lane.b32.xlu0 %v6745_v55, %s6221_s27  ;;  %1613 = vrot.lane.b32.xlu1 %v6849_v46, %s6221_s27 }
 0x223   : > { %v1074_v28 = vpop.permute.xlu0 %1073 }
 0x224   : > { %v1256_v38 = vmul.f32 0.2, %v1224_v0  ;;  %v1157_v10 = vadd.f32 %v1074_v28, %v6679_v9  ;;  %v1287_v43 = vmax.f32 %v1223_v23, %v1255_v26 }
 0x225   : > { %v1076_v17 = vpop.permute.xlu1 %1075 }
 0x226   : > { %v1288_v44 = vmax.f32 %v1224_v0, %v1256_v38  ;;  %v1189_v24 = vadd.f32 %v1157_v10, %v6723_v54  ;;  %v1158_v27 = vadd.f32 %v1076_v17, %v6687_v33  ;;  %1103 = vrot.lane.b32.xlu1 %v6755_v2, %s6221_s27 }
 0x228   : > { %v1314_v36 = vpack.c.bf16 %v1288_v44, %v1287_v43  ;;  %v1225_v60 = vadd.f32 %v6785_v4, %v1189_v24  ;;  %v1190_v25 = vadd.f32 %v1158_v27, %v6733_v51  ;;  %v8988_v43 = vld [vmem:[#allocation17_spill] sm:$0xff]  ;;  %v8989_v24 = vld [vmem:[#allocation12_spill] sm:$0xff] }
 0x229   : > { %v6868_v9 = vld [vmem:[#allocation2 + $0x20] sm:$0xff] }
 0x22a   : > { %1331 = vst.msk [vmem:[#allocation2 + $0x28] sm:$0xff] %vm1325_vm10, %v1314_v36  ;;  %v1257_v54 = vmul.f32 0.2, %v1225_v60  ;;  %v1226_v33 = vadd.f32 %v6785_v4, %v1190_v25  ;;  %1615 = vrot.lane.b32.xlu0 %v6868_v9, %s6221_s27  ;;  %1105 = vrot.lane.b32.xlu1 %v6763_v3, %s6221_s27 }
 0x22b   : > { %v1078_v61 = vpop.permute.xlu0 %1077 }
 0x22c   : > { %v1258_v13 = vmul.f32 0.2, %v1226_v33  ;;  %v1159_v59 = vadd.f32 %v1078_v61, %v6699_v37  ;;  %v1289_v1 = vmax.f32 %v1225_v60, %v1257_v54  ;;  %v8990_v54 = vld [vmem:[#allocation8_spill] sm:$0xff] }
 0x22d   : > { %v1080_v51 = vpop.permute.xlu1 %1079 }
 0x22e   : > { %v1290_v57 = vmax.f32 %v1226_v33, %v1258_v13  ;;  %v1191_v7 = vadd.f32 %v1159_v59, %v6743_v58  ;;  %v1160_v5 = vadd.f32 %v1080_v51, %v6707_v42  ;;  %1107 = vrot.lane.b32.xlu0 %v6769_v48, %s6221_s27  ;;  %v8991_v59 = vld [vmem:[#allocation13_spill] sm:$0xff] }
 0x230   : > { %v1315_v22 = vpack.c.bf16 %v1290_v57, %v1289_v1  ;;  %v1227_v31 = vadd.f32 %v6785_v4, %v1191_v7  ;;  %v1192_v20 = vadd.f32 %v1160_v5, %v6753_v63 }
 0x231   : > { %v6883_v6 = vld [vmem:[#allocation2 + $0x28] sm:$0xff] }
 0x232   : > { %1332 = vst.msk [vmem:[#allocation2 + $0x30] sm:$0xff] %vm1325_vm10, %v1315_v22  ;;  %v1259_v37 = vmul.f32 0.2, %v1227_v31  ;;  %v1228_v41 = vadd.f32 %v6785_v4, %v1192_v20  ;;  %1109 = vrot.lane.b32.xlu0 %v6773_v16, %s6221_s27  ;;  %1617 = vrot.lane.b32.xlu1 %v6883_v6, %s6221_s27  ;;  %v1394_v20 = vshll.u32 %v6819_v18, 16 }
 0x233   : > { %v1082_v42 = vpop.permute.xlu0 %1081 }
 0x234   : > { %v1260_v58 = vmul.f32 0.2, %v1228_v41  ;;  %v1161_v34 = vadd.f32 %v1082_v42, %v6719_v49  ;;  %v1291_v15 = vmax.f32 %v1227_v31, %v1259_v37  ;;  %v1529_v37 = vrot.slane %v1394_v20, 1 }
 0x235   : > { %v1084_v12 = vpop.permute.xlu1 %1083  ;;  %v1401_v42 = vshll.u32 %v6834_v47, 16 }
 0x236   : > { %v1292_v63 = vmax.f32 %v1228_v41, %v1260_v58  ;;  %v1193_v14 = vadd.f32 %v1161_v34, %v6669_v39  ;;  %v1162_v23 = vadd.f32 %v1084_v12, %v6727_v40  ;;  %1111 = vrot.lane.b32.xlu1 %v6777_v8, %s6221_s27  ;;  %v8987_v40 = vld [vmem:[#allocation11_spill] sm:$0xff]  ;;  %v1391_v41 = vshrl.u32 %v6819_v18, 16 }
 0x237   : > { %v1086_v29 = vpop.permute.xlu0 %1085 }
 0x238   : > { %v1316_v26 = vpack.c.bf16 %v1292_v63, %v1291_v15  ;;  %v1229_v16 = vadd.f32 %v6785_v4, %v1193_v14  ;;  %v1194_v0 = vadd.f32 %v1162_v23, %v6677_v30  ;;  %v1163_v28 = vadd.f32 %v1086_v29, %v6739_v53 }
 0x239   : > { %v1088_v38 = vpop.permute.xlu1 %1087  ;;  %v6899_v49 = vld [vmem:[#allocation2 + $0x30] sm:$0xff]  ;;  %v1530_v58 = vor.u32 %v1529_v37, %v1391_v41  ;;  %v1511_v15 = vsel %vm6492_vm6, 0, %v6812_v62  ;;  %v1393_v63 = vrot.slane %v1391_v41, 7  ;;  %v1531_v29 = vrot.slane %v1401_v42, 1  ;;  %v8997_v41 = vld [vmem:[#allocation16_spill] sm:$0xff] }
 0x23a   : > { %1333 = vst.msk [vmem:[#allocation2 + $0x38] sm:$0xff] %vm1325_vm10, %v1316_v26  ;;  %v1261_v10 = vmul.f32 0.2, %v1229_v16  ;;  %v1230_v39 = vadd.f32 %v6785_v4, %v1194_v0  ;;  %v1195_v17 = vadd.f32 %v1163_v28, %v8987_v40  ;;  %v1164_v8 = vadd.f32 %v1088_v38, %v8988_v43  ;;  %1619 = vrot.lane.b32.xlu0 %v6899_v49, %s6221_s27  ;;  %v8993_v28 = vld [vmem:[#allocation9_spill] sm:$0xff] }
 0x23b   : > { %v1576_v23 = vsel %vm6322_vm2, %v1530_v58, 0  ;;  %v1396_v18 = vor.u32 %v1394_v20, %v1393_v63  ;;  %v1408_v62 = vshll.u32 %v6849_v46, 16  ;;  %v1415_v20 = vshll.u32 %v6868_v9, 16 }
 0x23c   : > { %v1262_v44 = vmul.f32 0.2, %v1230_v39  ;;  %v1231_v30 = vadd.f32 %v6785_v4, %v1195_v17  ;;  %v1196_v53 = vadd.f32 %v1164_v8, %v8989_v24  ;;  %v1293_v27 = vmax.f32 %v1229_v16, %v1261_v10 }
 0x23d   : > { %v1090_v21 = vpop.permute.xlu1 %1089  ;;  %v1398_v16 = vshrl.u32 %v6834_v47, 16  ;;  %v1512_v8 = vsel %vm6492_vm6, 0, %v1396_v18  ;;  %v8998_v18 = vld [vmem:[#allocation18_spill] sm:$0xff] }
 0x23e   : > { %v1294_v36 = vmax.f32 %v1230_v39, %v1262_v44  ;;  %v1263_v60 = vmul.f32 0.2, %v1231_v30  ;;  %v1232_v25 = vadd.f32 %v6785_v4, %v1196_v53  ;;  %v1165_v33 = vadd.f32 %v1090_v21, %v8990_v54  ;;  %v8994_v39 = vld [vmem:[#allocation14_spill] sm:$0xff] }
 0x23f   : > { %v1532_v10 = vor.u32 %v1531_v29, %v1398_v16  ;;  %v1400_v44 = vrot.slane %v1398_v16, 7  ;;  %v8995_v53 = vld [vmem:[#allocation10_spill] sm:$0xff] }
 0x240   : > { %v1317_v61 = vpack.c.bf16 %v1294_v36, %v1293_v27  ;;  %v1264_v13 = vmul.f32 0.2, %v1232_v25  ;;  %v1197_v51 = vadd.f32 %v1165_v33, %v8991_v59  ;;  %v1295_v57 = vmax.f32 %v1231_v30, %v1263_v60 }
 0x241   : > { %v6912_v1 = vld [vmem:[#allocation2 + $0x38] sm:$0xff]  ;;  %v1577_v21 = vsel %vm6322_vm2, %v1532_v10, 0  ;;  %v1533_v36 = vrot.slane %v1408_v62, 1  ;;  %v1412_v10 = vshrl.u32 %v6868_v9, 16 }
 0x242   : > { %1334 = vst.msk [vmem:[#allocation2 + $0x40] sm:$0xff] %vm1325_vm10, %v1317_v61  ;;  %v1296_v7 = vmax.f32 %v1232_v25, %v1264_v13  ;;  %1621 = vrot.lane.b32.xlu1 %v6912_v1, %s6221_s27  ;;  %v1233_v0 = vadd.f32 %v6785_v4, %v1197_v51  ;;  %v8996_v25 = vld [vmem:[#allocation15_spill] sm:$0xff]  ;;  %v1403_v61 = vor.u32 %v1401_v42, %v1400_v44  ;;  %v1405_v13 = vshrl.u32 %v6849_v46, 16 }
 0x243   : > { %v8999_v44 = vld [vmem:[#allocation19_spill] sm:$0xff] }
 0x244   : > { %v1318_v5 = vpack.c.bf16 %v1296_v7, %v1295_v57  ;;  %v1265_v30 = vmul.f32 0.2, %v1233_v0  ;;  %v1513_v63 = vsel %vm6492_vm6, 0, %v1403_v61  ;;  %v1407_v42 = vrot.slane %v1405_v13, 7 }
 0x246   : > { %1335 = vst.msk [vmem:[#allocation2 + $0x48] sm:$0xff] %vm1325_vm10, %v1318_v5  ;;  %v1297_v59 = vmax.f32 %v1233_v0, %v1265_v30  ;;  %v1534_v5 = vor.u32 %v1533_v36, %v1405_v13  ;;  %v1535_v0 = vrot.slane %v1415_v20, 1 }
 0x248   : > { %v1578_v29 = vsel %vm6322_vm2, %v1534_v5, 0 }
 0x249   : > { %v6918_v22 = vld [vmem:[#allocation2 + $0x40] sm:$0xff] }
 0x24a   : > { %1623 = vrot.lane.b32.xlu0 %v6918_v22, %s6221_s27 }
 0x24d   : > { %v6922_v31 = vld [vmem:[#allocation2 + $0x48] sm:$0xff] }
 0x24e   : > { %1625 = vrot.lane.b32.xlu1 %v6922_v31, %s6221_s27 }
 0x27c   : > { %v1608_v34 = vpop.permute.xlu0 %1607 }
 0x27d   : > { %v1641_v14 = vsel %vm1325_vm10, %v1511_v15, %v1608_v34 }
 0x27e   : > { %1914 = vmatmul.mubr.bf16.gmra.mrb[36].mxu1 %v1641_v14 }
 0x27f   : > { %5814 = vmatprep.mubr.msk.bf16.mxu1 %vm1325_vm10, %v1576_v23 }
 0x280   : > { %v1092_v26 = vpop.permute.xlu0 %1091 }
 0x281   : > { %v1166_v38 = vadd.f32 %v1092_v26, %v8993_v28 }
 0x283   : > { %v1198_v40 = vadd.f32 %v1166_v38, %v8994_v39  ;;  %v1410_v38 = vor.u32 %v1408_v62, %v1407_v42 }
 0x284   : > { %v1094_v17 = vpop.permute.xlu0 %1093  ;;  %v1610_v43 = vpop.permute.xlu1 %1609 }
 0x285   : > { %v1234_v24 = vadd.f32 %v6785_v4, %v1198_v40  ;;  %v1167_v47 = vadd.f32 %v1094_v17, %v8995_v53  ;;  %v1645_v27 = vsel %vm1325_vm10, %v1512_v8, %v1610_v43  ;;  %v1422_v43 = vshll.u32 %v6883_v6, 16 }
 0x286   : > { %1922 = vmatmul.mubr.bf16.gmra.mrb[40].mxu1 %v1645_v27 }
 0x287   : > { %v1266_v60 = vmul.f32 0.2, %v1234_v24  ;;  %v1199_v54 = vadd.f32 %v1167_v47, %v8996_v25  ;;  %5815 = vmatprep.mubr.msk.bf16.mxu1 %vm1325_vm10, %v1577_v21  ;;  %v1414_v21 = vrot.slane %v1412_v10, 7  ;;  %v1537_v13 = vrot.slane %v1422_v43, 1 }
 0x288   : > { %v1096_v33 = vpop.permute.xlu1 %1095 }
 0x289   : > { %v1298_v51 = vmax.f32 %v1234_v24, %v1266_v60  ;;  %v1235_v57 = vadd.f32 %v6785_v4, %v1199_v54  ;;  %v1168_v7 = vadd.f32 %v1096_v33, %v6695_v35  ;;  %v1536_v24 = vor.u32 %v1535_v0, %v1412_v10  ;;  %v9000_v54 = vld [vmem:[#allocation20_spill] sm:$0xff] }
 0x28a   : > { %v1426_v10 = vshrl.u32 %v6899_v49, 16 }
 0x28b   : > { %v1319_v37 = vpack.c.bf16 %v1298_v51, %v1297_v59  ;;  %v1200_v58 = vadd.f32 %v1168_v7, %v8997_v41  ;;  %v1267_v46 = vmul.f32 0.2, %v1235_v57  ;;  %v1579_v61 = vsel %vm6322_vm2, %v1536_v24, 0 }
 0x28c   : > { %v1612_v34 = vpop.permute.xlu0 %1611  ;;  %v1098_v15 = vpop.permute.xlu1 %1097  ;;  %v1419_v51 = vshrl.u32 %v6883_v6, 16  ;;  %v1429_v41 = vshll.u32 %v6899_v49, 16 }
 0x28d   : > { %1336 = vst.msk [vmem:[#allocation2 + $0x50] sm:$0xff] %vm1325_vm10, %v1319_v37  ;;  %v1236_v14 = vadd.f32 %v6785_v4, %v1200_v58  ;;  %v1169_v23 = vadd.f32 %v1098_v15, %v6705_v32  ;;  %v1649_v35 = vsel %vm1325_vm10, %v1513_v63, %v1612_v34  ;;  %v1299_v39 = vmax.f32 %v1235_v57, %v1267_v46  ;;  %v9001_v34 = vld [vmem:[#allocation21_spill] sm:$0xff] }
 0x28e   : > { %1932 = vmatmul.mubr.bf16.gmra.mrb[44].mxu1 %v1649_v35  ;;  %v1538_v63 = vor.u32 %v1537_v13, %v1419_v51  ;;  %v1433_v13 = vshrl.u32 %v6912_v1, 16 }
 0x28f   : > { %v1268_v26 = vmul.f32 0.2, %v1236_v14  ;;  %v1201_v16 = vadd.f32 %v1169_v23, %v8998_v18  ;;  %5816 = vmatprep.mubr.msk.bf16.mxu1 %vm1325_vm10, %v1578_v29  ;;  %v1421_v23 = vrot.slane %v1419_v51, 7  ;;  %v9002_v18 = vld [vmem:[#allocation22_spill] sm:$0xff] }
 0x290   : > { %v1100_v28 = vpop.permute.xlu0 %1099  ;;  %v1580_v0 = vsel %vm6322_vm2, %v1538_v63, 0 }
 0x291   : > { %v1300_v40 = vmax.f32 %v1236_v14, %v1268_v26  ;;  %v1237_v32 = vadd.f32 %v6785_v4, %v1201_v16  ;;  %v1170_v17 = vadd.f32 %v1100_v28, %v6715_v45  ;;  %v1514_v45 = vsel %vm6492_vm6, 0, %v1410_v38 }
 0x292   : > { %v1539_v28 = vrot.slane %v1429_v41, 1 }
 0x293   : > { %v1320_v8 = vpack.c.bf16 %v1300_v40, %v1299_v39  ;;  %v1202_v30 = vadd.f32 %v1170_v17, %v8999_v44  ;;  %v1269_v9 = vmul.f32 0.2, %v1237_v32 }
 0x294   : > { %v1102_v53 = vpop.permute.xlu0 %1101  ;;  %v1614_v47 = vpop.permute.xlu1 %1613  ;;  %v6970_v27 = vld [vmem:[#allocation2 + $0x50] sm:$0xff] }
 0x295   : > { %1337 = vst.msk [vmem:[#allocation2 + $0x58] sm:$0xff] %vm1325_vm10, %v1320_v8  ;;  %v1238_v62 = vadd.f32 %v6785_v4, %v1202_v30  ;;  %v1171_v36 = vadd.f32 %v1102_v53, %v6725_v50  ;;  %1627 = vrot.lane.b32.xlu0 %v6970_v27, %s6221_s27  ;;  %v1653_v60 = vsel %vm1325_vm10, %v1514_v45, %v1614_v47  ;;  %v1436_v8 = vshll.u32 %v6912_v1, 16  ;;  %v9003_v30 = vld [vmem:[#allocation23_spill] sm:$0xff] }
 0x296   : > { %1942 = vmatmul.mubr.bf16.gmra.mrb[48].mxu1 %v1653_v60  ;;  %v1417_v50 = vor.u32 %v1415_v20, %v1414_v21  ;;  %v1301_v57 = vmax.f32 %v1237_v32, %v1269_v9  ;;  %v1540_v53 = vor.u32 %v1539_v28, %v1426_v10 }
 0x297   : > { %v1270_v25 = vmul.f32 0.2, %v1238_v62  ;;  %v1203_v33 = vadd.f32 %v1171_v36, %v9000_v54  ;;  %5817 = vmatprep.mubr.msk.bf16.mxu1 %vm1325_vm10, %v1579_v61 }
 0x298   : > { %v1104_v59 = vpop.permute.xlu1 %1103  ;;  %v1581_v54 = vsel %vm6322_vm2, %v1540_v53, 0 }
 0x299   : > { %v1302_v7 = vmax.f32 %v1238_v62, %v1270_v25  ;;  %v1239_v5 = vadd.f32 %v6785_v4, %v1203_v33  ;;  %v1172_v37 = vadd.f32 %v1104_v59, %v6735_v52  ;;  %v1515_v52 = vsel %vm6492_vm6, 0, %v1417_v50 }
 0x29a   : > { %v1428_v62 = vrot.slane %v1426_v10, 7  ;;  %v1541_v33 = vrot.slane %v1436_v8, 1 }
 0x29b   : > { %v1321_v58 = vpack.c.bf16 %v1302_v7, %v1301_v57  ;;  %v1204_v15 = vadd.f32 %v1172_v37, %v9001_v34  ;;  %v1271_v6 = vmul.f32 0.2, %v1239_v5  ;;  %v1443_v7 = vshll.u32 %v6918_v22, 16 }
 0x29c   : > { %v1616_v42 = vpop.permute.xlu0 %1615  ;;  %v1106_v46 = vpop.permute.xlu1 %1105  ;;  %v6989_v14 = vld [vmem:[#allocation2 + $0x58] sm:$0xff]  ;;  %v1542_v37 = vor.u32 %v1541_v33, %v1433_v13 }
 0x29d   : > { %1338 = vst.msk [vmem:[#allocation2 + $0x60] sm:$0xff] %vm1325_vm10, %v1321_v58  ;;  %v1240_v20 = vadd.f32 %v6785_v4, %v1204_v15  ;;  %v1173_v35 = vadd.f32 %v1106_v46, %v6745_v55  ;;  %1629 = vrot.lane.b32.xlu1 %v6989_v14, %s6221_s27  ;;  %v1657_v29 = vsel %vm1325_vm10, %v1515_v52, %v1616_v42  ;;  %v1435_v15 = vrot.slane %v1433_v13, 7  ;;  %v7040_v52 = vpop.f32.mrb[32].mxu1 }
 0x29e   : > { %1952 = vmatmul.mubr.bf16.gmra.mrb[52].mxu1 %v1657_v29  ;;  %v1424_v55 = vor.u32 %v1422_v43, %v1421_v23  ;;  %v1303_v39 = vmax.f32 %v1239_v5, %v1271_v6  ;;  %v1543_v46 = vrot.slane %v1443_v7, 1  ;;  %v1440_v6 = vshrl.u32 %v6918_v22, 16 }
 0x29f   : > { %v1272_v26 = vmul.f32 0.2, %v1240_v20  ;;  %v1205_v16 = vadd.f32 %v1173_v35, %v9002_v18  ;;  %5818 = vmatprep.mubr.msk.bf16.mxu1 %vm1325_vm10, %v1580_v0  ;;  %v1438_v23 = vor.u32 %v1436_v8, %v1435_v15  ;;  %v1450_v29 = vshll.u32 %v6922_v31, 16 }
 0x2a0   : > { %v1108_v38 = vpop.permute.xlu0 %1107  ;;  %v1544_v18 = vor.u32 %v1543_v46, %v1440_v6  ;;  %v1457_v8 = vshll.u32 %v6970_v27, 16 }
 0x2a1   : > { %v1304_v40 = vmax.f32 %v1240_v20, %v1272_v26  ;;  %v1241_v32 = vadd.f32 %v6785_v4, %v1205_v16  ;;  %v1174_v17 = vadd.f32 %v1108_v38, %v6755_v2  ;;  %v1516_v2 = vsel %vm6492_vm6, 0, %v1424_v55 }
 0x2a2   : > { %v1518_v38 = vsel %vm6492_vm6, 0, %v1438_v23  ;;  %v1442_v55 = vrot.slane %v1440_v6, 7 }
 0x2a3   : > { %v1322_v44 = vpack.c.bf16 %v1304_v40, %v1303_v39  ;;  %v1206_v24 = vadd.f32 %v1174_v17, %v9003_v30  ;;  %v1273_v49 = vmul.f32 0.2, %v1241_v32  ;;  %v1583_v39 = vsel %vm6322_vm2, %v1544_v18, 0 }
 0x2a4   : > { %v1110_v47 = vpop.permute.xlu0 %1109  ;;  %v1618_v21 = vpop.permute.xlu1 %1617  ;;  %v7008_v9 = vld [vmem:[#allocation2 + $0x60] sm:$0xff]  ;;  %v1545_v40 = vrot.slane %v1450_v29, 1  ;;  %v1447_v17 = vshrl.u32 %v6922_v31, 16  ;;  %v1547_v31 = vrot.slane %v1457_v8, 1 }
 0x2a5   : > { %1339 = vst.msk [vmem:[#allocation2 + $0x68] sm:$0xff] %vm1325_vm10, %v1322_v44  ;;  %v1242_v43 = vadd.f32 %v6785_v4, %v1206_v24  ;;  %v1175_v36 = vadd.f32 %v1110_v47, %v6763_v3  ;;  %1631 = vrot.lane.b32.xlu0 %v7008_v9, %s6221_s27  ;;  %v1661_v45 = vsel %vm1325_vm10, %v1516_v2, %v1618_v21  ;;  %v1471_v13 = vshll.u32 %v7008_v9, 16 }
 0x2a6   : > { %1962 = vmatmul.mubr.bf16.gmra.mrb[56].mxu1 %v1661_v45  ;;  %v1431_v3 = vor.u32 %v1429_v41, %v1428_v62  ;;  %v1305_v59 = vmax.f32 %v1241_v32, %v1273_v49  ;;  %v1445_v32 = vor.u32 %v1443_v7, %v1442_v55  ;;  %v1546_v44 = vor.u32 %v1545_v40, %v1447_v17 }
 0x2a7   : > { %v1274_v60 = vmul.f32 0.2, %v1242_v43  ;;  %v1207_v25 = vadd.f32 %v1175_v36, %v6862_v56  ;;  %5819 = vmatprep.mubr.msk.bf16.mxu1 %vm1325_vm10, %v1581_v54  ;;  %v1449_v21 = vrot.slane %v1447_v17, 7  ;;  %v1464_v54 = vshll.u32 %v6989_v14, 16 }
 0x2a8   : > { %v1112_v61 = vpop.permute.xlu1 %1111  ;;  %v1517_v41 = vsel %vm6492_vm6, 0, %v1431_v3  ;;  %v1519_v53 = vsel %vm6492_vm6, 0, %v1445_v32  ;;  %v1584_v62 = vsel %vm6322_vm2, %v1546_v44, 0  ;;  %v6070_v44 = vld [vmem:[#allocation4 + $0xd0] ss:$8 sps:$4 sm:$0xff]  }
 0x2a9   : > { %v1306_v50 = vmax.f32 %v1242_v43, %v1274_v60  ;;  %v1243_v51 = vadd.f32 %v6785_v4, %v1207_v25  ;;  %v1176_v57 = vadd.f32 %v1112_v61, %v6769_v48  ;;  %v1452_v49 = vor.u32 %v1450_v29, %v1449_v21 }
 0x2aa   : > { %v1454_v43 = vshrl.u32 %v6970_v27, 16  ;;  %v1549_v61 = vrot.slane %v1464_v54, 1  ;;  %v1461_v27 = vshrl.u32 %v6989_v14, 16  ;;  %v1468_v14 = vshrl.u32 %v7008_v9, 16 }
 0x2ab   : > { %v1323_v56 = vpack.c.bf16 %v1306_v50, %v1305_v59  ;;  %v1208_v5 = vadd.f32 %v1176_v57, %v6866_v19  ;;  %v1275_v1 = vmul.f32 0.2, %v1243_v51  ;;  %v1582_v19 = vsel %vm6322_vm2, %v1542_v37, 0 }
 0x2ac   : > { %v1620_v58 = vpop.permute.xlu0 %1619  ;;  %v7027_v34 = vld [vmem:[#allocation2 + $0x68] sm:$0xff]  ;;  %v1548_v2 = vor.u32 %v1547_v31, %v1454_v43  ;;  %v1520_v45 = vsel %vm6492_vm6, 0, %v1452_v49  ;;  %v1456_v33 = vrot.slane %v1454_v43, 7  ;;  %v1550_v59 = vor.u32 %v1549_v61, %v1461_v27  ;;  %v6078_v49 = vld [vmem:[#allocation4 + $0xf4] ss:$8 sps:$4 sm:$0xff]  }
 0x2ad   : > { %1340 = vst.msk [vmem:[#allocation2 + $0x70] sm:$0xff] %vm1325_vm10, %v1323_v56  ;;  %v1244_v63 = vadd.f32 %v6785_v4, %v1208_v5  ;;  %1633 = vrot.lane.b32.xlu1 %v7027_v34, %s6221_s27  ;;  %v1665_v48 = vsel %vm1325_vm10, %v1517_v41, %v1620_v58  ;;  %v1307_v20 = vmax.f32 %v1243_v51, %v1275_v1  ;;  %v1909_v4 = vpop.f32.mrb[33].mxu1  ;;  %v1463_v57 = vrot.slane %v1461_v27, 7 }
 0x2ae   : > { %1972 = vmatmul.mubr.bf16.gmra.mrb[60].mxu1 %v1665_v48  ;;  %v7043_v16 = vpop.f32.mrb[34].mxu1  ;;  %v1585_v25 = vsel %vm6322_vm2, %v1548_v2, 0  ;;  %v1459_v3 = vor.u32 %v1457_v8, %v1456_v33  ;;  %v1586_v56 = vsel %vm6322_vm2, %v1550_v59, 0  ;;  %v1551_v5 = vrot.slane %v1471_v13, 1  ;;  %v6079_v33 = vld [vmem:[#allocation4 + $0x100] ss:$8 sps:$4 sm:$0xff]  }
 0x2af   : > { %v1276_v42 = vmul.f32 0.2, %v1244_v63  ;;  %5820 = vmatprep.mubr.msk.bf16.mxu1 %vm1325_vm10, %v1582_v19  ;;  %v1912_v10 = vpop.f32.mrb[35].mxu1  ;;  %v1466_v37 = vor.u32 %v1464_v54, %v1463_v57  ;;  %v1478_v58 = vshll.u32 %v7027_v34, 16  ;;  %v1475_v9 = vshrl.u32 %v7027_v34, 16 }
 0x2b0   : > { %v1521_v51 = vsel %vm6492_vm6, 0, %v1459_v3  ;;  %v1552_v41 = vor.u32 %v1551_v5, %v1468_v14  ;;  %v6067_v10 = vld [vmem:[#allocation4 + $0xc0] ss:$8 sps:$4 sm:$0xff]   ;;  %v6084_v59 = vld [vmem:[#allocation4 + $0x114] ss:$8 sps:$4 sm:$0xff]  }
 0x2b1   : > { %v1308_v35 = vmax.f32 %v1244_v63, %v1276_v42  ;;  %v1522_v1 = vsel %vm6492_vm6, 0, %v1466_v37  ;;  %v1470_v63 = vrot.slane %v1468_v14, 7  ;;  %v1553_v19 = vrot.slane %v1478_v58, 1  ;;  %v6085_v57 = vld [vmem:[#allocation4 + $0x120] ss:$8 sps:$4 sm:$0xff]  }
 0x2b2   : > { %v1587_v42 = vsel %vm6322_vm2, %v1552_v41, 0  ;;  %v1477_v4 = vrot.slane %v1475_v9, 7  ;;  %v6093_v5 = vld [vmem:[#allocation4 + $0x144] ss:$8 sps:$4 sm:$0xff]   ;;  %v6091_v14 = vld [vmem:[#allocation4 + $0x140] ss:$8 sps:$4 sm:$0xff]  }
 0x2b3   : > { %v1324_v26 = vpack.c.bf16 %v1308_v35, %v1307_v20  ;;  %v1473_v46 = vor.u32 %v1471_v13, %v1470_v63  ;;  %v1554_v6 = vor.u32 %v1553_v19, %v1475_v9  ;;  %v9004_v13 = vmov 0   ;;  %v6094_v63 = vld [vmem:[#allocation4 + $0x150] ss:$8 sps:$4 sm:$0xff]   ;;  %v6097_v19 = vld [vmem:[#allocation4 + $0x160] ss:$8 sps:$4 sm:$0xff]  }
 0x2b4   : > { %v1622_v0 = vpop.permute.xlu1 %1621  ;;  %v7045_v28 = vld [vmem:[#allocation2 + $0x70] sm:$0xff] }
 0x2b5   : > { %1341 = vst.msk [vmem:[#allocation2 + $0x78] sm:$0xff] %vm1325_vm10, %v1324_v26  ;;  %1635 = vrot.lane.b32.xlu0 %v7045_v28, %s6221_s27  ;;  %v1669_v22 = vsel %vm1325_vm10, %v1518_v38, %v1622_v0  ;;  %v1485_v23 = vshll.u32 %v7045_v28, 16  ;;  %v1523_v35 = vsel %vm6492_vm6, 0, %v1473_v46  ;;  %v1588_v26 = vsel %vm6322_vm2, %v1554_v6, 0  ;;  %v6102_v6 = vld [vmem:[#allocation4 + $0x174] ss:$8 sps:$4 sm:$0xff]  }
 0x2b6   : > { %1982 = vmatmul.mubr.bf16.gmra.mrb[64].mxu1 %v1669_v22  ;;  %v1480_v0 = vor.u32 %v1478_v58, %v1477_v4  ;;  %v1482_v34 = vshrl.u32 %v7045_v28, 16  ;;  %v6069_v22 = vld [vmem:[#allocation4 + $0xc4] ss:$8 sps:$4 sm:$0xff]  }
 0x2b7   : > { %5821 = vmatprep.mubr.msk.bf16.mxu1 %vm1325_vm10, %v1583_v39  ;;  %v1555_v18 = vrot.slane %v1485_v23, 1  ;;  %v6072_v39 = vld [vmem:[#allocation4 + $0xd4] ss:$8 sps:$4 sm:$0xff]   ;;  %2934 = vmatprep.subr.bf16.mxu0 %v6069_v22 }
 0x2b8   : > { %v1524_v32 = vsel %vm6492_vm6, 0, %v1480_v0  ;;  %v1484_v17 = vrot.slane %v1482_v34, 7  ;;  %2935 = vmatpush1.bf16.msra.mxu0 %v6067_v10 }
 0x2b9   : > { %v1556_v55 = vor.u32 %v1555_v18, %v1482_v34  ;;  %2936 = vmatprep.subr.bf16.mxu0 %v6072_v39 }
 0x2bb   : > { %v1589_v28 = vsel %vm6322_vm2, %v1556_v55, 0 }
 0x2bc   : > { %v1624_v30 = vpop.permute.xlu0 %1623  ;;  %v7058_v24 = vld [vmem:[#allocation2 + $0x78] sm:$0xff]  ;;  %2937 = vmatpush1.bf16.msra.mxu0 %v6070_v44 }
 0x2bd   : > { %1637 = vrot.lane.b32.xlu1 %v7058_v24, %s6221_s27  ;;  %v1673_v47 = vsel %vm1325_vm10, %v1519_v53, %v1624_v30  ;;  %v1492_v38 = vshll.u32 %v7058_v24, 16  ;;  %v6075_v53 = vld [vmem:[#allocation4 + $0xe4] ss:$8 sps:$4 sm:$0xff]   ;;  %v1489_v21 = vshrl.u32 %v7058_v24, 16 }
 0x2be   : > { %1992 = vmatmul.mubr.bf16.gmra.mrb[68].mxu1 %v1673_v47  ;;  %v1487_v47 = vor.u32 %v1485_v23, %v1484_v17  ;;  %2938 = vmatprep.subr.bf16.mxu0 %v6075_v53  ;;  %v6081_v24 = vld [vmem:[#allocation4 + $0x104] ss:$8 sps:$4 sm:$0xff]  }
 0x2bf   : > { %5822 = vmatprep.mubr.msk.bf16.mxu1 %vm1325_vm10, %v1584_v62  ;;  %v1557_v30 = vrot.slane %v1492_v38, 1  ;;  %v6073_v62 = vld [vmem:[#allocation4 + $0xe0] ss:$8 sps:$4 sm:$0xff]   ;;  %v1491_v2 = vrot.slane %v1489_v21, 7 }
 0x2c0   : > { %v1626_v36 = vpop.permute.xlu1 %1625  ;;  %2939 = vmatpush1.bf16.msra.mxu0 %v6073_v62 }
 0x2c1   : > { %v1677_v60 = vsel %vm1325_vm10, %v1520_v45, %v1626_v36  ;;  %v1558_v31 = vor.u32 %v1557_v30, %v1489_v21  ;;  %v1525_v36 = vsel %vm6492_vm6, 0, %v1487_v47  ;;  %2940 = vmatprep.subr.bf16.mxu0 %v6078_v49  ;;  %v1494_v54 = vor.u32 %v1492_v38, %v1491_v2 }
 0x2c3   : > { %v1526_v3 = vsel %vm6492_vm6, 0, %v1494_v54 }
 0x2c6   : > { %2002 = vmatmul.mubr.bf16.gmra.mrb[72].mxu1 %v1677_v60  ;;  %v6076_v60 = vld [vmem:[#allocation4 + $0xf0] ss:$8 sps:$4 sm:$0xff]  }
 0x2c7   : > { %5823 = vmatprep.mubr.msk.bf16.mxu1 %vm1325_vm10, %v1585_v25  ;;  %v1590_v25 = vsel %vm6322_vm2, %v1558_v31, 0  ;;  %2941 = vmatpush1.bf16.msra.mxu0 %v6076_v60 }
 0x2c8   : > { %2942 = vmatprep.subr.bf16.mxu0 %v6081_v24 }
 0x2cb   : > { %2943 = vmatpush1.bf16.msra.mxu0 %v6079_v33 }
 0x2cc   : > { %2944 = vmatprep.subr.bf16.mxu0 %v6084_v59 }
 0x307   : > { %v1628_v50 = vpop.permute.xlu0 %1627 }
 0x308   : > { %v1681_v7 = vsel %vm1325_vm10, %v1521_v51, %v1628_v50  ;;  %v6082_v50 = vld [vmem:[#allocation4 + $0x110] ss:$8 sps:$4 sm:$0xff]   ;;  %v6087_v51 = vld [vmem:[#allocation4 + $0x124] ss:$8 sps:$4 sm:$0xff]  }
 0x309   : > { %2012 = vmatmul.mubr.bf16.gmra.mrb[76].mxu1 %v1681_v7  ;;  %2945 = vmatpush1.bf16.msra.mxu0 %v6082_v50  ;;  %v6090_v7 = vld [vmem:[#allocation4 + $0x134] ss:$8 sps:$4 sm:$0xff]  }
 0x30a   : > { %5824 = vmatprep.mubr.msk.bf16.mxu1 %vm1325_vm10, %v1586_v56  ;;  %2946 = vmatprep.subr.bf16.mxu0 %v6087_v51  ;;  %v6088_v56 = vld [vmem:[#allocation4 + $0x130] ss:$8 sps:$4 sm:$0xff]  }
 0x30d   : > { %2947 = vmatpush1.bf16.msra.mxu0 %v6085_v57 }
 0x30e   : > { %2948 = vmatprep.subr.bf16.mxu0 %v6090_v7 }
 0x30f   : > { %v1630_v15 = vpop.permute.xlu1 %1629 }
 0x310   : > { %v1685_v48 = vsel %vm1325_vm10, %v1522_v1, %v1630_v15  ;;  %v6096_v1 = vld [vmem:[#allocation4 + $0x154] ss:$8 sps:$4 sm:$0xff]  }
 0x311   : > { %2022 = vmatmul.mubr.bf16.gmra.mrb[80].mxu1 %v1685_v48  ;;  %2949 = vmatpush1.bf16.msra.mxu0 %v6088_v56  ;;  %v6099_v48 = vld [vmem:[#allocation4 + $0x164] ss:$8 sps:$4 sm:$0xff]  }
 0x312   : > { %5825 = vmatprep.mubr.msk.bf16.mxu1 %vm1325_vm10, %v1587_v42  ;;  %2950 = vmatprep.subr.bf16.mxu0 %v6093_v5 }
 0x315   : > { %2951 = vmatpush1.bf16.msra.mxu0 %v6091_v14 }
 0x316   : > { %2952 = vmatprep.subr.bf16.mxu0 %v6096_v1 }
 0x317   : > { %v1632_v20 = vpop.permute.xlu0 %1631 }
 0x318   : > { %v1689_v29 = vsel %vm1325_vm10, %v1523_v35, %v1632_v20  ;;  %v6100_v20 = vld [vmem:[#allocation4 + $0x170] ss:$8 sps:$4 sm:$0xff]  }
 0x319   : > { %2032 = vmatmul.mubr.bf16.gmra.mrb[84].mxu1 %v1689_v29  ;;  %2953 = vmatpush1.bf16.msra.mxu0 %v6094_v63 }
 0x31a   : > { %5826 = vmatprep.mubr.msk.bf16.mxu1 %vm1325_vm10, %v1588_v26  ;;  %2954 = vmatprep.subr.bf16.mxu0 %v6099_v48 }
 0x31d   : > { %2955 = vmatpush1.bf16.msra.mxu0 %v6097_v19 }
 0x31e   : > { %2956 = vmatprep.subr.bf16.mxu0 %v6102_v6 }
 0x31f   : > { %v1634_v40 = vpop.permute.xlu1 %1633 }
 0x320   : > { %v1693_v8 = vsel %vm1325_vm10, %v1524_v32, %v1634_v40 }
 0x321   : > { %2042 = vmatmul.mubr.bf16.gmra.mrb[88].mxu1 %v1693_v8  ;;  %2957 = vmatpush1.bf16.msra.mxu0 %v6100_v20 }
 0x322   : > { %5827 = vmatprep.mubr.msk.bf16.mxu1 %vm1325_vm10, %v1589_v28 }
 0x324   : > { %2967 = vmatmul.mubr.bf16.vlgmr.msra.gmra.mrb[40].mxu0 %v9004_v13 }
 0x327   : > { %v1636_v43 = vpop.permute.xlu0 %1635 }
 0x328   : > { %v1697_v45 = vsel %vm1325_vm10, %v1525_v36, %v1636_v43 }
 0x329   : > { %2052 = vmatmul.mubr.bf16.gmra.mrb[92].mxu1 %v1697_v45 }
 0x32a   : > { %5828 = vmatprep.mubr.msk.bf16.mxu1 %vm1325_vm10, %v1590_v25 }
 0x32f   : > { %v1638_v61 = vpop.permute.xlu1 %1637 }
 0x330   : > { %v1701_v27 = vsel %vm1325_vm10, %v1526_v3, %v1638_v61  ;;  %v7240_v61 = vld [vmem:[%s8942_s4 + $0x1] ss:$0 sm:$0xff] }
 0x331   : > { %2062 = vmatmul.mubr.bf16.gmra.mrb[96].mxu1 %v1701_v27 }
 0x332   : > { %2071 = vmatprep.mubr.bf16.mxu1 %v9004_v13 }
 0x339   : > { %2072 = vmatmul.mubr.bf16.gmra.mrb[100].mxu1 %v9004_v13 }
 0x33a   : > { %4027 = vmatprep.mubr.bf16.mxu1 %v9004_v13 }
 0x351   : > { %v7121_v37 = vpop.f32.mrb[36].mxu1 }
 0x352   : > { %v1917_v58 = vpop.f32.mrb[37].mxu1  ;;  %2112 = vrot.lane.b32.xlu0 %v7121_v37, %s6221_s27 }
 0x353   : > { %v7125_v41 = vpop.f32.mrb[38].mxu1 }
 0x354   : > { %v1920_v15 = vpop.f32.mrb[39].mxu1  ;;  %2114 = vrot.lane.b32.xlu1 %v7125_v41, %s6221_s27 }
 0x359   : > { %v7129_v42 = vpop.f32.mrb[40].mxu1 }
 0x35a   : > { %v7131_v46 = vpop.f32.mrb[41].mxu1  ;;  %2116 = vrot.lane.b32.xlu0 %v7129_v42, %s6221_s27 }
 0x35b   : > { %v7135_v9 = vpop.f32.mrb[42].mxu1 }
 0x35c   : > { %v1929_v23 = vpop.f32.mrb[43].mxu1  ;;  %2118 = vrot.lane.b32.xlu1 %v7135_v9, %s6221_s27 }
 0x361   : > { %v7139_v35 = vpop.f32.mrb[44].mxu1 }
 0x362   : > { %v7141_v4 = vpop.f32.mrb[45].mxu1  ;;  %2120 = vrot.lane.b32.xlu0 %v7139_v35, %s6221_s27 }
 0x363   : > { %v7146_v29 = vpop.f32.mrb[46].mxu1 }
 0x364   : > { %v7148_v26 = vpop.f32.mrb[47].mxu1  ;;  %2122 = vrot.lane.b32.xlu1 %v7146_v29, %s6221_s27 }
 0x369   : > { %v7152_v18 = vpop.f32.mrb[48].mxu1 }
 0x36a   : > { %v7154_v0 = vpop.f32.mrb[49].mxu1  ;;  %2124 = vrot.lane.b32.xlu0 %v7152_v18, %s6221_s27 }
 0x36b   : > { %v7158_v34 = vpop.f32.mrb[50].mxu1 }
 0x36c   : > { %v7160_v38 = vpop.f32.mrb[51].mxu1  ;;  %2126 = vrot.lane.b32.xlu1 %v7158_v34, %s6221_s27 }
 0x371   : > { %v7164_v55 = vpop.f32.mrb[52].mxu1 }
 0x372   : > { %v7166_v10 = vpop.f32.mrb[53].mxu1  ;;  %2128 = vrot.lane.b32.xlu0 %v7164_v55, %s6221_s27 }
 0x373   : > { %v7170_v22 = vpop.f32.mrb[54].mxu1 }
 0x374   : > { %v7172_v39 = vpop.f32.mrb[55].mxu1  ;;  %2130 = vrot.lane.b32.xlu1 %v7170_v22, %s6221_s27 }
 0x379   : > { %v7176_v40 = vpop.f32.mrb[56].mxu1 }
 0x37a   : > { %2132 = vrot.lane.b32.xlu0 %v7176_v40, %s6221_s27  ;;  %v7180_v32 = vpop.f32.mrb[57].mxu1 }
 0x37b   : > { %v7182_v17 = vpop.f32.mrb[58].mxu1 }
 0x37c   : > { %v7184_v8 = vpop.f32.mrb[59].mxu1  ;;  %2134 = vrot.lane.b32.xlu1 %v7182_v17, %s6221_s27 }
 0x381   : > { %v7188_v44 = vpop.f32.mrb[60].mxu1 }
 0x382   : > { %2136 = vrot.lane.b32.xlu0 %v7188_v44, %s6221_s27  ;;  %v7192_v28 = vpop.f32.mrb[61].mxu1 }
 0x383   : > { %v7194_v30 = vpop.f32.mrb[62].mxu1 }
 0x384   : > { %v7196_v53 = vpop.f32.mrb[63].mxu1  ;;  %2138 = vrot.lane.b32.xlu1 %v7194_v30, %s6221_s27 }
 0x389   : > { %v7200_v47 = vpop.f32.mrb[64].mxu1 }
 0x38a   : > { %2140 = vrot.lane.b32.xlu0 %v7200_v47, %s6221_s27  ;;  %v7204_v21 = vpop.f32.mrb[65].mxu1 }
 0x38b   : > { %v7206_v62 = vpop.f32.mrb[66].mxu1 }
 0x38c   : > { %2142 = vrot.lane.b32.xlu1 %v7206_v62, %s6221_s27  ;;  %v7210_v31 = vpop.f32.mrb[67].mxu1 }
 0x391   : > { %v7212_v49 = vpop.f32.mrb[68].mxu1 }
 0x392   : > { %2144 = vrot.lane.b32.xlu0 %v7212_v49, %s6221_s27  ;;  %v7216_v43 = vpop.f32.mrb[69].mxu1 }
 0x393   : > { %v7218_v36 = vpop.f32.mrb[70].mxu1 }
 0x394   : > { %2146 = vrot.lane.b32.xlu1 %v7218_v36, %s6221_s27  ;;  %v7222_v2 = vpop.f32.mrb[71].mxu1 }
 0x399   : > { %v7224_v45 = vpop.f32.mrb[72].mxu1 }
 0x39a   : > { %2148 = vrot.lane.b32.xlu0 %v7224_v45, %s6221_s27  ;;  %v7228_v60 = vpop.f32.mrb[73].mxu1 }
 0x39b   : > { %v7230_v25 = vpop.f32.mrb[74].mxu1 }
 0x39c   : > { %2150 = vrot.lane.b32.xlu1 %v7230_v25, %s6221_s27  ;;  %v7234_v24 = vpop.f32.mrb[75].mxu1 }
 0x3c4   : > { %v2113_v54 = vpop.permute.xlu0 %2112 }
 0x3c5   : > { %v2208_v33 = vadd.f32 %v2113_v54, %v7040_v52 }
 0x3c6   : > { %v2115_v3 = vpop.permute.xlu1 %2114 }
 0x3c7   : > { %v2240_v27 = vadd.f32 %v2208_v33, %v7131_v46  ;;  %v2209_v59 = vadd.f32 %v2115_v3, %v7043_v16 }
 0x3c9   : > { %v2276_v50 = vadd.f32 %v7240_v61, %v2240_v27  ;;  %v2241_v51 = vadd.f32 %v2209_v59, %v1929_v23 }
 0x3cb   : > { %v2308_v57 = vmul.f32 0.2, %v2276_v50  ;;  %v2277_v7 = vadd.f32 %v7240_v61, %v2241_v51 }
 0x3cc   : > { %v2117_v56 = vpop.permute.xlu0 %2116 }
 0x3cd   : > { %v2309_v5 = vmul.f32 0.2, %v2277_v7  ;;  %v2210_v52 = vadd.f32 %v2117_v56, %v7121_v37  ;;  %v2340_v58 = vmax.f32 %v2276_v50, %v2308_v57 }
 0x3ce   : > { %v2119_v14 = vpop.permute.xlu1 %2118 }
 0x3cf   : > { %v2341_v15 = vmax.f32 %v2277_v7, %v2309_v5  ;;  %v2242_v1 = vadd.f32 %v2210_v52, %v7141_v4  ;;  %v2211_v63 = vadd.f32 %v2119_v14, %v7125_v41 }
 0x3d1   : > { %v2372_v48 = vpack.c.bf16 %v2341_v15, %v2340_v58  ;;  %v2278_v16 = vadd.f32 %v7240_v61, %v2242_v1  ;;  %v2243_v19 = vadd.f32 %v2211_v63, %v7148_v26 }
 0x3d3   : > { %2388 = vst.msk [vmem:[#allocation3] sm:$0xff] %vm1325_vm10, %v2372_v48  ;;  %v2310_v46 = vmul.f32 0.2, %v2278_v16  ;;  %v2279_v23 = vadd.f32 %v7240_v61, %v2243_v19 }
 0x3d4   : > { %v2121_v6 = vpop.permute.xlu0 %2120 }
 0x3d5   : > { %v2311_v20 = vmul.f32 0.2, %v2279_v23  ;;  %v2212_v37 = vadd.f32 %v2121_v6, %v7129_v42  ;;  %v2342_v33 = vmax.f32 %v2278_v16, %v2310_v46 }
 0x3d6   : > { %v2123_v54 = vpop.permute.xlu1 %2122 }
 0x3d7   : > { %v2343_v3 = vmax.f32 %v2279_v23, %v2311_v20  ;;  %v2244_v4 = vadd.f32 %v2212_v37, %v7154_v0  ;;  %v2213_v41 = vadd.f32 %v2123_v54, %v7135_v9 }
 0x3d9   : > { %v2373_v27 = vpack.c.bf16 %v2343_v3, %v2342_v33  ;;  %v2280_v59 = vadd.f32 %v7240_v61, %v2244_v4  ;;  %v2245_v26 = vadd.f32 %v2213_v41, %v7160_v38 }
 0x3da   : > { %v2404_v50 = vld [vmem:[#allocation3] sm:$0xff] }
 0x3db   : > { %2389 = vst.msk [vmem:[#allocation3 + $0x8] sm:$0xff] %vm1325_vm10, %v2373_v27  ;;  %v2312_v51 = vmul.f32 0.2, %v2280_v59  ;;  %v2281_v57 = vadd.f32 %v7240_v61, %v2245_v26  ;;  %v2450_v7 = vshll.u32 %v2404_v50, 16  ;;  %2670 = vrot.lane.b32.xlu0 %v2404_v50, %s6221_s27  ;;  %v2447_v42 = vshrl.u32 %v2404_v50, 16 }
 0x3dc   : > { %v7261_v56 = vpop.f32.mrb[76].mxu1  ;;  %v2125_v5 = vpop.permute.xlu0 %2124 }
 0x3dd   : > { %v2313_v0 = vmul.f32 0.2, %v2281_v57  ;;  %2152 = vrot.lane.b32.xlu1 %v7261_v56, %s6221_s27  ;;  %v7265_v9 = vpop.f32.mrb[77].mxu1  ;;  %v2590_v38 = vrot.slane %v2450_v7, 1  ;;  %v2449_v52 = vrot.slane %v2447_v42, 7  ;;  %v2214_v14 = vadd.f32 %v2125_v5, %v7139_v35 }
 0x3de   : > { %v7268_v58 = vpop.f32.mrb[78].mxu1  ;;  %v2344_v15 = vmax.f32 %v2280_v59, %v2312_v51  ;;  %v2127_v63 = vpop.permute.xlu1 %2126 }
 0x3df   : > { %v2345_v1 = vmax.f32 %v2281_v57, %v2313_v0  ;;  %2154 = vrot.lane.b32.xlu0 %v7268_v58, %s6221_s27  ;;  %v7272_v48 = vpop.f32.mrb[79].mxu1  ;;  %v2591_v16 = vor.u32 %v2590_v38, %v2447_v42  ;;  %v7274_v19 = vor.u32 %v2450_v7, %v2449_v52  ;;  %v2246_v46 = vadd.f32 %v2214_v14, %v7166_v10 }
 0x3e0   : > { %v2215_v23 = vadd.f32 %v2127_v63, %v7146_v29 }
 0x3e1   : > { %v2374_v6 = vpack.c.bf16 %v2345_v1, %v2344_v15  ;;  %v2638_v35 = vsel %vm6322_vm2, %v2591_v16, 0  ;;  %v2282_v20 = vadd.f32 %v7240_v61, %v2246_v46 }
 0x3e2   : > { %v2247_v37 = vadd.f32 %v2215_v23, %v7172_v39  ;;  %5854 = vmatprep.mubr.msk.bf16.mxu0 %vm1325_vm10, %v2638_v35  ;;  %v7283_v54 = vld [vmem:[#allocation3 + $0x8] sm:$0xff] }
 0x3e3   : > { %2390 = vst.msk [vmem:[#allocation3 + $0x10] sm:$0xff] %vm1325_vm10, %v2374_v6  ;;  %2672 = vrot.lane.b32.xlu1 %v7283_v54, %s6221_s27  ;;  %v2314_v10 = vmul.f32 0.2, %v2282_v20 }
 0x3e4   : > { %v2283_v29 = vadd.f32 %v7240_v61, %v2247_v37  ;;  %v7289_v33 = vpop.f32.mrb[80].mxu1  ;;  %v2129_v3 = vpop.permute.xlu0 %2128 }
 0x3e5   : > { %2156 = vrot.lane.b32.xlu0 %v7289_v33, %s6221_s27  ;;  %v7293_v4 = vpop.f32.mrb[81].mxu1  ;;  %v2216_v41 = vadd.f32 %v2129_v3, %v7152_v18  ;;  %v2346_v50 = vmax.f32 %v2282_v20, %v2314_v10 }
 0x3e6   : > { %v2315_v39 = vmul.f32 0.2, %v2283_v29  ;;  %v7296_v27 = vpop.f32.mrb[82].mxu1  ;;  %v2131_v59 = vpop.permute.xlu1 %2130 }
 0x3e7   : > { %2158 = vrot.lane.b32.xlu1 %v7296_v27, %s6221_s27  ;;  %v7300_v26 = vpop.f32.mrb[83].mxu1  ;;  %v2248_v57 = vadd.f32 %v2216_v41, %v7180_v32  ;;  %v2217_v7 = vadd.f32 %v2131_v59, %v7158_v34 }
 0x3e8   : > { %v2347_v51 = vmax.f32 %v2283_v29, %v2315_v39 }
 0x3e9   : > { %v2284_v0 = vadd.f32 %v7240_v61, %v2248_v57  ;;  %v2249_v5 = vadd.f32 %v2217_v7, %v7184_v8 }
 0x3ea   : > { %v2375_v42 = vpack.c.bf16 %v2347_v51, %v2346_v50  ;;  %v7306_v18 = vld [vmem:[#allocation3 + $0x10] sm:$0xff] }
 0x3eb   : > { %2674 = vrot.lane.b32.xlu0 %v7306_v18, %s6221_s27  ;;  %v2316_v38 = vmul.f32 0.2, %v2284_v0  ;;  %v2285_v52 = vadd.f32 %v7240_v61, %v2249_v5 }
 0x3ec   : > { %2391 = vst.msk [vmem:[#allocation3 + $0x18] sm:$0xff] %vm1325_vm10, %v2375_v42  ;;  %v7312_v14 = vpop.f32.mrb[84].mxu1  ;;  %v2133_v32 = vpop.permute.xlu0 %2132 }
 0x3ed   : > { %2160 = vrot.lane.b32.xlu1 %v7312_v14, %s6221_s27  ;;  %v7316_v34 = vpop.f32.mrb[85].mxu1  ;;  %v2317_v15 = vmul.f32 0.2, %v2285_v52  ;;  %v2218_v8 = vadd.f32 %v2133_v32, %v7164_v55  ;;  %v2348_v46 = vmax.f32 %v2284_v0, %v2316_v38 }
 0x3ee   : > { %v7319_v1 = vpop.f32.mrb[86].mxu1  ;;  %v2135_v63 = vpop.permute.xlu1 %2134 }
 0x3ef   : > { %2162 = vrot.lane.b32.xlu0 %v7319_v1, %s6221_s27  ;;  %v7323_v16 = vpop.f32.mrb[87].mxu1  ;;  %v2349_v23 = vmax.f32 %v2285_v52, %v2317_v15  ;;  %v2250_v6 = vadd.f32 %v2218_v8, %v7192_v28  ;;  %v2219_v35 = vadd.f32 %v2135_v63, %v7170_v22 }
 0x3f1   : > { %v2376_v20 = vpack.c.bf16 %v2349_v23, %v2348_v46  ;;  %v2286_v37 = vadd.f32 %v7240_v61, %v2250_v6  ;;  %v2251_v10 = vadd.f32 %v2219_v35, %v7196_v53 }
 0x3f3   : > { %v7329_v55 = vld [vmem:[#allocation3 + $0x18] sm:$0xff]  ;;  %2392 = vst.msk [vmem:[#allocation3 + $0x20] sm:$0xff] %vm1325_vm10, %v2376_v20  ;;  %v2318_v29 = vmul.f32 0.2, %v2286_v37  ;;  %v2287_v3 = vadd.f32 %v7240_v61, %v2251_v10 }
 0x3f4   : > { %2676 = vrot.lane.b32.xlu1 %v7329_v55, %s6221_s27  ;;  %v7335_v39 = vpop.f32.mrb[88].mxu1  ;;  %v2137_v28 = vpop.permute.xlu0 %2136 }
 0x3f5   : > { %2164 = vrot.lane.b32.xlu0 %v7335_v39, %s6221_s27  ;;  %v7339_v22 = vpop.f32.mrb[89].mxu1  ;;  %v2319_v41 = vmul.f32 0.2, %v2287_v3  ;;  %v2220_v53 = vadd.f32 %v2137_v28, %v7176_v40  ;;  %v2350_v57 = vmax.f32 %v2286_v37, %v2318_v29 }
 0x3f6   : > { %v7342_v59 = vpop.f32.mrb[90].mxu1  ;;  %v2139_v50 = vpop.permute.xlu1 %2138 }
 0x3f7   : > { %v7344_v51 = vpop.f32.mrb[91].mxu1  ;;  %v2351_v7 = vmax.f32 %v2287_v3, %v2319_v41  ;;  %v2252_v42 = vadd.f32 %v2220_v53, %v7204_v21  ;;  %v2221_v0 = vadd.f32 %v2139_v50, %v7182_v17 }
 0x3f8   : > { %2166 = vrot.lane.b32.xlu1 %v7342_v59, %s6221_s27 }
 0x3f9   : > { %v2377_v5 = vpack.c.bf16 %v2351_v7, %v2350_v57  ;;  %v2288_v38 = vadd.f32 %v7240_v61, %v2252_v42  ;;  %v2253_v52 = vadd.f32 %v2221_v0, %v7210_v31 }
 0x3fa   : > { %v7352_v40 = vld [vmem:[#allocation3 + $0x20] sm:$0xff] }
 0x3fb   : > { %2393 = vst.msk [vmem:[#allocation3 + $0x28] sm:$0xff] %vm1325_vm10, %v2377_v5  ;;  %v2320_v32 = vmul.f32 0.2, %v2288_v38  ;;  %v2289_v15 = vadd.f32 %v7240_v61, %v2253_v52  ;;  %2678 = vrot.lane.b32.xlu0 %v7352_v40, %s6221_s27 }
 0x3fc   : > { %v7358_v21 = vpop.f32.mrb[92].mxu1  ;;  %v2141_v17 = vpop.permute.xlu0 %2140 }
 0x3fd   : > { %2168 = vrot.lane.b32.xlu1 %v7358_v21, %s6221_s27  ;;  %v7362_v8 = vpop.f32.mrb[93].mxu1  ;;  %v2321_v63 = vmul.f32 0.2, %v2289_v15  ;;  %v2222_v31 = vadd.f32 %v2141_v17, %v7188_v44  ;;  %v2352_v35 = vmax.f32 %v2288_v38, %v2320_v32 }
 0x3fe   : > { %v7365_v46 = vpop.f32.mrb[94].mxu1  ;;  %v2143_v23 = vpop.permute.xlu1 %2142 }
 0x3ff   : > { %v7367_v6 = vpop.f32.mrb[95].mxu1  ;;  %v2353_v20 = vmax.f32 %v2289_v15, %v2321_v63  ;;  %v2254_v37 = vadd.f32 %v2222_v31, %v7216_v43  ;;  %v2223_v10 = vadd.f32 %v2143_v23, %v7194_v30  ;;  %2170 = vrot.lane.b32.xlu0 %v7365_v46, %s6221_s27 }
 0x401   : > { %v2378_v29 = vpack.c.bf16 %v2353_v20, %v2352_v35  ;;  %v2290_v3 = vadd.f32 %v7240_v61, %v2254_v37  ;;  %v2255_v28 = vadd.f32 %v2223_v10, %v7222_v2 }
 0x402   : > { %v7375_v44 = vld [vmem:[#allocation3 + $0x28] sm:$0xff] }
 0x403   : > { %2394 = vst.msk [vmem:[#allocation3 + $0x30] sm:$0xff] %vm1325_vm10, %v2378_v29  ;;  %v2322_v41 = vmul.f32 0.2, %v2290_v3  ;;  %v2291_v53 = vadd.f32 %v7240_v61, %v2255_v28  ;;  %2680 = vrot.lane.b32.xlu1 %v7375_v44, %s6221_s27 }
 0x404   : > { %v2063_v43 = vpop.f32.mrb[96].mxu1  ;;  %v2145_v30 = vpop.permute.xlu0 %2144 }
 0x405   : > { %2172 = vrot.lane.b32.xlu0 %v2063_v43, %s6221_s27  ;;  %v7382_v50 = vpop.f32.mrb[97].mxu1  ;;  %v2323_v57 = vmul.f32 0.2, %v2291_v53  ;;  %v2224_v7 = vadd.f32 %v2145_v30, %v7200_v47  ;;  %v2354_v5 = vmax.f32 %v2290_v3, %v2322_v41 }
 0x406   : > { %v2067_v2 = vpop.f32.mrb[98].mxu1  ;;  %v2147_v42 = vpop.permute.xlu1 %2146 }
 0x407   : > { %v7385_v0 = vpop.f32.mrb[99].mxu1  ;;  %v2355_v38 = vmax.f32 %v2291_v53, %v2323_v57  ;;  %v2256_v52 = vadd.f32 %v2224_v7, %v7228_v60  ;;  %v2225_v32 = vadd.f32 %v2147_v42, %v7206_v62  ;;  %2174 = vrot.lane.b32.xlu1 %v2067_v2, %s6221_s27 }
 0x409   : > { %v2379_v15 = vpack.c.bf16 %v2355_v38, %v2354_v5  ;;  %v2292_v17 = vadd.f32 %v7240_v61, %v2256_v52  ;;  %v2257_v63 = vadd.f32 %v2225_v32, %v7234_v24  ;;  %v2457_v52 = vshll.u32 %v7283_v54, 16 }
 0x40a   : > { %v7392_v31 = vld [vmem:[#allocation3 + $0x30] sm:$0xff] }
 0x40b   : > { %2395 = vst.msk [vmem:[#allocation3 + $0x38] sm:$0xff] %vm1325_vm10, %v2379_v15  ;;  %v2324_v47 = vmul.f32 0.2, %v2292_v17  ;;  %v2293_v23 = vadd.f32 %v7240_v61, %v2257_v63  ;;  %2682 = vrot.lane.b32.xlu0 %v7392_v31, %s6221_s27  ;;  %v2592_v32 = vrot.slane %v2457_v52, 1  ;;  %v2454_v15 = vshrl.u32 %v7283_v54, 16 }
 0x40c   : > { %v2073_v60 = vpop.f32.mrb[100].mxu1  ;;  %v2149_v35 = vpop.permute.xlu0 %2148 }
 0x40d   : > { %v7398_v62 = vpop.f32.mrb[101].mxu1  ;;  %v2325_v20 = vmul.f32 0.2, %v2293_v23  ;;  %v2226_v37 = vadd.f32 %v2149_v35, %v7212_v49  ;;  %v2356_v3 = vmax.f32 %v2292_v17, %v2324_v47  ;;  %v2464_v17 = vshll.u32 %v7306_v18, 16 }
 0x40e   : > { %v2076_v10 = vpop.f32.mrb[102].mxu1  ;;  %v2151_v29 = vpop.permute.xlu1 %2150  ;;  %v2593_v63 = vor.u32 %v2592_v32, %v2454_v15  ;;  %v2456_v60 = vrot.slane %v2454_v15, 7  ;;  %v2468_v15 = vshrl.u32 %v7329_v55, 16 }
 0x40f   : > { %v7401_v24 = vpop.f32.mrb[103].mxu1  ;;  %v2357_v28 = vmax.f32 %v2293_v23, %v2325_v20  ;;  %v2258_v41 = vadd.f32 %v2226_v37, %v7265_v9  ;;  %v2227_v53 = vadd.f32 %v2151_v29, %v7218_v36  ;;  %v2574_v23 = vsel %vm6492_vm6, 0, %v7274_v19 }
 0x410   : > { %v2639_v37 = vsel %vm6322_vm2, %v2593_v63, 0  ;;  %v2594_v10 = vrot.slane %v2464_v17, 1 }
 0x411   : > { %v2380_v43 = vpack.c.bf16 %v2357_v28, %v2356_v3  ;;  %v2294_v30 = vadd.f32 %v7240_v61, %v2258_v41  ;;  %v2259_v57 = vadd.f32 %v2227_v53, %v7272_v48  ;;  %v2459_v3 = vor.u32 %v2457_v52, %v2456_v60 }
 0x412   : > { %v7407_v7 = vld [vmem:[#allocation3 + $0x38] sm:$0xff]  ;;  %v2461_v28 = vshrl.u32 %v7306_v18, 16  ;;  %v2471_v53 = vshll.u32 %v7329_v55, 16 }
 0x413   : > { %2396 = vst.msk [vmem:[#allocation3 + $0x40] sm:$0xff] %vm1325_vm10, %v2380_v43  ;;  %v2326_v49 = vmul.f32 0.2, %v2294_v30  ;;  %v2295_v2 = vadd.f32 %v7240_v61, %v2259_v57  ;;  %2684 = vrot.lane.b32.xlu1 %v7407_v7, %s6221_s27 }
 0x414   : > { %v2595_v43 = vor.u32 %v2594_v10, %v2461_v28 }
 0x415   : > { %v2327_v42 = vmul.f32 0.2, %v2295_v2  ;;  %v2358_v5 = vmax.f32 %v2294_v30, %v2326_v49 }
 0x417   : > { %v2359_v9 = vmax.f32 %v2295_v2, %v2327_v42  ;;  %v2463_v2 = vrot.slane %v2461_v28, 7 }
 0x419   : > { %v2381_v38 = vpack.c.bf16 %v2359_v9, %v2358_v5  ;;  %v2596_v9 = vrot.slane %v2471_v53, 1  ;;  %v2466_v32 = vor.u32 %v2464_v17, %v2463_v2 }
 0x41a   : > { %v7413_v36 = vld [vmem:[#allocation3 + $0x40] sm:$0xff] }
 0x41b   : > { %2397 = vst.msk [vmem:[#allocation3 + $0x48] sm:$0xff] %vm1325_vm10, %v2381_v38  ;;  %2686 = vrot.lane.b32.xlu0 %v7413_v36, %s6221_s27  ;;  %v2576_v17 = vsel %vm6492_vm6, 0, %v2466_v32 }
 0x422   : > { %v7418_v48 = vld [vmem:[#allocation3 + $0x48] sm:$0xff] }
 0x423   : > { %2688 = vrot.lane.b32.xlu1 %v7418_v48, %s6221_s27 }
 0x44d   : > { %v2671_v47 = vpop.permute.xlu0 %2670 }
 0x44e   : > { %v2704_v35 = vsel %vm1325_vm10, %v2574_v23, %v2671_v47 }
 0x44f   : > { %2975 = vmatmul.mubr.bf16.gmra.mrb[44].mxu0 %v2704_v35  ;;  %v2153_v20 = vpop.permute.xlu1 %2152  ;;  %v2478_v35 = vshll.u32 %v7352_v40, 16 }
 0x450   : > { %v2228_v29 = vadd.f32 %v2153_v20, %v7224_v45  ;;  %5855 = vmatprep.mubr.msk.bf16.mxu0 %vm1325_vm10, %v2639_v37  ;;  %v2575_v45 = vsel %vm6492_vm6, 0, %v2459_v3  ;;  %v2597_v20 = vor.u32 %v2596_v9, %v2468_v15 }
 0x451   : > { %v2155_v54 = vpop.permute.xlu0 %2154 }
 0x452   : > { %v2260_v41 = vadd.f32 %v2228_v29, %v7293_v4  ;;  %v2229_v19 = vadd.f32 %v2155_v54, %v7230_v25  ;;  %v2640_v25 = vsel %vm6322_vm2, %v2595_v43, 0  ;;  %v2470_v54 = vrot.slane %v2468_v15, 7 }
 0x453   : > { %v2641_v28 = vsel %vm6322_vm2, %v2597_v20, 0 }
 0x454   : > { %v2296_v30 = vadd.f32 %v7240_v61, %v2260_v41  ;;  %v2261_v57 = vadd.f32 %v2229_v19, %v7300_v26  ;;  %v2598_v41 = vrot.slane %v2478_v35, 1 }
 0x455   : > { %v2673_v49 = vpop.permute.xlu1 %2672 }
 0x456   : > { %v2328_v42 = vmul.f32 0.2, %v2296_v30  ;;  %v2297_v5 = vadd.f32 %v7240_v61, %v2261_v57  ;;  %v2708_v18 = vsel %vm1325_vm10, %v2575_v45, %v2673_v49  ;;  %v2475_v57 = vshrl.u32 %v7352_v40, 16 }
 0x457   : > { %2983 = vmatmul.mubr.bf16.gmra.mrb[48].mxu0 %v2708_v18  ;;  %v2157_v4 = vpop.permute.xlu0 %2156  ;;  %v2485_v18 = vshll.u32 %v7375_v44, 16 }
 0x458   : > { %v2329_v38 = vmul.f32 0.2, %v2297_v5  ;;  %v2230_v52 = vadd.f32 %v2157_v4, %v7261_v56  ;;  %5856 = vmatprep.mubr.msk.bf16.mxu0 %vm1325_vm10, %v2640_v25  ;;  %v2360_v63 = vmax.f32 %v2296_v30, %v2328_v42  ;;  %v2473_v30 = vor.u32 %v2471_v53, %v2470_v54 }
 0x459   : > { %v2159_v26 = vpop.permute.xlu1 %2158 }
 0x45a   : > { %v2361_v47 = vmax.f32 %v2297_v5, %v2329_v38  ;;  %v2262_v23 = vadd.f32 %v2230_v52, %v7316_v34  ;;  %v2231_v60 = vadd.f32 %v2159_v26, %v7268_v58  ;;  %v2599_v5 = vor.u32 %v2598_v41, %v2475_v57 }
 0x45b   : > { %v2477_v38 = vrot.slane %v2475_v57, 7 }
 0x45c   : > { %v2382_v37 = vpack.c.bf16 %v2361_v47, %v2360_v63  ;;  %v2298_v10 = vadd.f32 %v7240_v61, %v2262_v23  ;;  %v2263_v56 = vadd.f32 %v2231_v60, %v7323_v16  ;;  %v2642_v15 = vsel %vm6322_vm2, %v2599_v5, 0 }
 0x45d   : > { %v2675_v29 = vpop.permute.xlu0 %2674  ;;  %v2600_v63 = vrot.slane %v2485_v18, 1  ;;  %v2480_v47 = vor.u32 %v2478_v35, %v2477_v38  ;;  %v2499_v5 = vshll.u32 %v7407_v7, 16 }
 0x45e   : > { %2398 = vst.msk [vmem:[#allocation3 + $0x50] sm:$0xff] %vm1325_vm10, %v2382_v37  ;;  %v2330_v55 = vmul.f32 0.2, %v2298_v10  ;;  %v2299_v34 = vadd.f32 %v7240_v61, %v2263_v56  ;;  %v2712_v58 = vsel %vm1325_vm10, %v2576_v17, %v2675_v29  ;;  %v2492_v29 = vshll.u32 %v7392_v31, 16 }
 0x45f   : > { %2993 = vmatmul.mubr.bf16.gmra.mrb[52].mxu0 %v2712_v58  ;;  %v2161_v3 = vpop.permute.xlu1 %2160 }
 0x460   : > { %v2331_v19 = vmul.f32 0.2, %v2299_v34  ;;  %v2232_v16 = vadd.f32 %v2161_v3, %v7289_v33  ;;  %5857 = vmatprep.mubr.msk.bf16.mxu0 %vm1325_vm10, %v2641_v28  ;;  %v2362_v49 = vmax.f32 %v2298_v10, %v2330_v55  ;;  %v2482_v10 = vshrl.u32 %v7375_v44, 16 }
 0x461   : > { %v2163_v43 = vpop.permute.xlu0 %2162 }
 0x462   : > { %v2363_v45 = vmax.f32 %v2299_v34, %v2331_v19  ;;  %v2264_v2 = vadd.f32 %v2232_v16, %v7339_v22  ;;  %v2233_v42 = vadd.f32 %v2163_v43, %v7296_v27  ;;  %v2577_v27 = vsel %vm6492_vm6, 0, %v2473_v30 }
 0x463   : > { %v2601_v54 = vor.u32 %v2600_v63, %v2482_v10  ;;  %v2602_v19 = vrot.slane %v2492_v29, 1  ;;  %v2496_v63 = vshrl.u32 %v7407_v7, 16 }
 0x464   : > { %v2383_v4 = vpack.c.bf16 %v2363_v45, %v2362_v49  ;;  %v2300_v25 = vadd.f32 %v7240_v61, %v2264_v2  ;;  %v2265_v33 = vadd.f32 %v2233_v42, %v7344_v51  ;;  %v2489_v49 = vshrl.u32 %v7392_v31, 16 }
 0x465   : > { %v7468_v9 = vld [vmem:[#allocation3 + $0x50] sm:$0xff]  ;;  %v2643_v41 = vsel %vm6322_vm2, %v2601_v54, 0 }
 0x466   : > { %2399 = vst.msk [vmem:[#allocation3 + $0x58] sm:$0xff] %vm1325_vm10, %v2383_v4  ;;  %v2332_v40 = vmul.f32 0.2, %v2300_v25  ;;  %v2301_v53 = vadd.f32 %v7240_v61, %v2265_v33  ;;  %v2677_v52 = vpop.permute.xlu1 %2676  ;;  %2690 = vrot.lane.b32.xlu0 %v7468_v9, %s6221_s27  ;;  %v2603_v4 = vor.u32 %v2602_v19, %v2489_v49  ;;  %v2491_v31 = vrot.slane %v2489_v49, 7 }
 0x467   : > { %v2716_v22 = vsel %vm1325_vm10, %v2577_v27, %v2677_v52  ;;  %v2165_v26 = vpop.permute.xlu0 %2164 }
 0x468   : > { %v2333_v32 = vmul.f32 0.2, %v2301_v53  ;;  %3003 = vmatmul.mubr.bf16.gmra.mrb[56].mxu0 %v2716_v22  ;;  %v2234_v51 = vadd.f32 %v2165_v26, %v7312_v14  ;;  %v2364_v23 = vmax.f32 %v2300_v25, %v2332_v40  ;;  %v2644_v27 = vsel %vm6322_vm2, %v2603_v4, 0 }
 0x469   : > { %5858 = vmatprep.mubr.msk.bf16.mxu0 %vm1325_vm10, %v2642_v15  ;;  %v2604_v22 = vrot.slane %v2499_v5, 1  ;;  %v2494_v15 = vor.u32 %v2492_v29, %v2491_v31  ;;  %v2498_v29 = vrot.slane %v2496_v63, 7 }
 0x46a   : > { %v2365_v60 = vmax.f32 %v2301_v53, %v2333_v32  ;;  %v2266_v20 = vadd.f32 %v2234_v51, %v7362_v8  ;;  %v2167_v37 = vpop.permute.xlu1 %2166  ;;  %v2578_v8 = vsel %vm6492_vm6, 0, %v2480_v47 }
 0x46b   : > { %v2235_v56 = vadd.f32 %v2167_v37, %v7319_v1  ;;  %v2484_v1 = vrot.slane %v2482_v10, 7  ;;  %v2605_v37 = vor.u32 %v2604_v22, %v2496_v63 }
 0x46c   : > { %v2384_v17 = vpack.c.bf16 %v2365_v60, %v2364_v23  ;;  %v2302_v14 = vadd.f32 %v7240_v61, %v2266_v20  ;;  %v2506_v20 = vshll.u32 %v7413_v36, 16 }
 0x46d   : > { %v2267_v55 = vadd.f32 %v2235_v56, %v7367_v6  ;;  %v7487_v34 = vld [vmem:[#allocation3 + $0x58] sm:$0xff]  ;;  %v2679_v35 = vpop.permute.xlu0 %2678  ;;  %v2487_v57 = vor.u32 %v2485_v18, %v2484_v1  ;;  %v2503_v1 = vshrl.u32 %v7413_v36, 16 }
 0x46e   : > { %2400 = vst.msk [vmem:[#allocation3 + $0x60] sm:$0xff] %vm1325_vm10, %v2384_v17  ;;  %2692 = vrot.lane.b32.xlu1 %v7487_v34, %s6221_s27  ;;  %v2334_v44 = vmul.f32 0.2, %v2302_v14  ;;  %v2720_v3 = vsel %vm1325_vm10, %v2578_v8, %v2679_v35  ;;  %v2501_v8 = vor.u32 %v2499_v5, %v2498_v29  ;;  %v2510_v5 = vshrl.u32 %v7418_v48, 16 }
 0x46f   : > { %v2303_v58 = vadd.f32 %v7240_v61, %v2267_v55  ;;  %v2169_v28 = vpop.permute.xlu1 %2168  ;;  %v2606_v55 = vrot.slane %v2506_v20, 1 }
 0x470   : > { %3013 = vmatmul.mubr.bf16.gmra.mrb[60].mxu0 %v2720_v3  ;;  %v2236_v6 = vadd.f32 %v2169_v28, %v7335_v39  ;;  %v2366_v45 = vmax.f32 %v2302_v14, %v2334_v44  ;;  %v7538_v3 = vpop.f32.mrb[40].mxu0 }
 0x471   : > { %v2335_v16 = vmul.f32 0.2, %v2303_v58  ;;  %5859 = vmatprep.mubr.msk.bf16.mxu0 %vm1325_vm10, %v2643_v41  ;;  %v2171_v30 = vpop.permute.xlu0 %2170  ;;  %v2607_v28 = vor.u32 %v2606_v55, %v2503_v1 }
 0x472   : > { %v2268_v43 = vadd.f32 %v2236_v6, %v7382_v50  ;;  %v2237_v42 = vadd.f32 %v2171_v30, %v7342_v59  ;;  %v2579_v50 = vsel %vm6492_vm6, 0, %v2487_v57  ;;  %v2970_v6 = vpop.f32.mrb[41].mxu0  ;;  %v2581_v30 = vsel %vm6492_vm6, 0, %v2501_v8 }
 0x473   : > { %v2367_v2 = vmax.f32 %v2303_v58, %v2335_v16  ;;  %v7541_v19 = vpop.f32.mrb[42].mxu0  ;;  %v2505_v57 = vrot.slane %v2503_v1, 7 }
 0x474   : > { %v2304_v39 = vadd.f32 %v7240_v61, %v2268_v43  ;;  %v2269_v33 = vadd.f32 %v2237_v42, %v7385_v0  ;;  %v2973_v49 = vpop.f32.mrb[43].mxu0 }
 0x475   : > { %v2385_v25 = vpack.c.bf16 %v2367_v2, %v2366_v45  ;;  %v7506_v38 = vld [vmem:[#allocation3 + $0x60] sm:$0xff]  ;;  %v2681_v40 = vpop.permute.xlu1 %2680  ;;  %v2646_v45 = vsel %vm6322_vm2, %v2607_v28, 0  ;;  %v2508_v42 = vor.u32 %v2506_v20, %v2505_v57 }
 0x476   : > { %2694 = vrot.lane.b32.xlu0 %v7506_v38, %s6221_s27  ;;  %v2336_v59 = vmul.f32 0.2, %v2304_v39  ;;  %v2305_v18 = vadd.f32 %v7240_v61, %v2269_v33  ;;  %v2724_v53 = vsel %vm1325_vm10, %v2579_v50, %v2681_v40  ;;  %v2512_v50 = vrot.slane %v2510_v5, 7  ;;  %v6103_v57 = vld [vmem:[#allocation4 + $0x180] ss:$8 sps:$4 sm:$0xff]  }
 0x477   : > { %2401 = vst.msk [vmem:[#allocation3 + $0x68] sm:$0xff] %vm1325_vm10, %v2385_v25  ;;  %v2173_v52 = vpop.permute.xlu0 %2172  ;;  %v2582_v40 = vsel %vm6492_vm6, 0, %v2508_v42  ;;  %v6105_v49 = vld [vmem:[#allocation4 + $0x184] ss:$8 sps:$4 sm:$0xff]  }
 0x478   : > { %3023 = vmatmul.mubr.bf16.gmra.mrb[64].mxu0 %v2724_v53  ;;  %v2238_v0 = vadd.f32 %v2173_v52, %v7358_v21  ;;  %v2337_v26 = vmul.f32 0.2, %v2305_v18  ;;  %v2368_v47 = vmax.f32 %v2304_v39, %v2336_v59  ;;  %v2520_v39 = vshll.u32 %v7468_v9, 16  ;;  %3995 = vmatprep.subr.bf16.mxu1 %v6105_v49 }
 0x479   : > { %5860 = vmatprep.mubr.msk.bf16.mxu0 %vm1325_vm10, %v2644_v27  ;;  %v2175_v32 = vpop.permute.xlu1 %2174  ;;  %v2517_v53 = vshrl.u32 %v7468_v9, 16  ;;  %v2524_v9 = vshrl.u32 %v7487_v34, 16  ;;  %3996 = vmatpush1.bf16.msra.mxu1 %v6103_v57 }
 0x47a   : > { %v2270_v51 = vadd.f32 %v2238_v0, %v7398_v62  ;;  %v2369_v23 = vmax.f32 %v2305_v18, %v2337_v26  ;;  %v2239_v60 = vadd.f32 %v2175_v32, %v7365_v46  ;;  %v2580_v62 = vsel %vm6492_vm6, 0, %v2494_v15 }
 0x47b   : > { %v2527_v32 = vshll.u32 %v7487_v34, 16  ;;  %v2531_v34 = vshrl.u32 %v7506_v38, 16 }
 0x47c   : > { %v2306_v21 = vadd.f32 %v7240_v61, %v2270_v51  ;;  %v2386_v10 = vpack.c.bf16 %v2369_v23, %v2368_v47  ;;  %v2271_v56 = vadd.f32 %v2239_v60, %v7401_v24  ;;  %v2645_v24 = vsel %vm6322_vm2, %v2605_v37, 0 }
 0x47d   : > { %v2683_v17 = vpop.permute.xlu0 %2682  ;;  %v2519_v51 = vrot.slane %v2517_v53, 7  ;;  %v2612_v15 = vrot.slane %v2527_v32, 1  ;;  %v2534_v47 = vshll.u32 %v7506_v38, 16 }
 0x47e   : > { %v7525_v14 = vld [vmem:[#allocation3 + $0x68] sm:$0xff]  ;;  %2402 = vst.msk [vmem:[#allocation3 + $0x70] sm:$0xff] %vm1325_vm10, %v2386_v10  ;;  %v2338_v7 = vmul.f32 0.2, %v2306_v21  ;;  %v2307_v46 = vadd.f32 %v7240_v61, %v2271_v56  ;;  %v2728_v54 = vsel %vm1325_vm10, %v2580_v62, %v2683_v17  ;;  %v2513_v61 = vshll.u32 %v7418_v48, 16 }
 0x47f   : > { %2696 = vrot.lane.b32.xlu1 %v7525_v14, %s6221_s27  ;;  %v2610_v48 = vrot.slane %v2520_v39, 1  ;;  %v2522_v63 = vor.u32 %v2520_v39, %v2519_v51  ;;  %v2613_v23 = vor.u32 %v2612_v15, %v2524_v9  ;;  %v2614_v56 = vrot.slane %v2534_v47, 1  ;;  %v6115_v15 = vld [vmem:[#allocation4 + $0x1c0] ss:$8 sps:$4 sm:$0xff]  }
 0x480   : > { %3033 = vmatmul.mubr.bf16.gmra.mrb[68].mxu0 %v2728_v54  ;;  %v2339_v35 = vmul.f32 0.2, %v2307_v46  ;;  %v2370_v44 = vmax.f32 %v2306_v21, %v2338_v7  ;;  %v2608_v2 = vrot.slane %v2513_v61, 1  ;;  %v2515_v18 = vor.u32 %v2513_v61, %v2512_v50 }
 0x481   : > { %5861 = vmatprep.mubr.msk.bf16.mxu0 %vm1325_vm10, %v2645_v24  ;;  %v2611_v52 = vor.u32 %v2610_v48, %v2517_v53  ;;  %v2584_v20 = vsel %vm6492_vm6, 0, %v2522_v63  ;;  %v2526_v21 = vrot.slane %v2524_v9, 7  ;;  %v2649_v10 = vsel %vm6322_vm2, %v2613_v23, 0  ;;  %v6109_v48 = vld [vmem:[#allocation4 + $0x1a0] ss:$8 sps:$4 sm:$0xff]  }
 0x482   : > { %v2371_v58 = vmax.f32 %v2307_v46, %v2339_v35  ;;  %v2609_v4 = vor.u32 %v2608_v2, %v2510_v5  ;;  %v2583_v27 = vsel %vm6492_vm6, 0, %v2515_v18  ;;  %v2541_v62 = vshll.u32 %v7525_v14, 16  ;;  %v6108_v2 = vld [vmem:[#allocation4 + $0x194] ss:$8 sps:$4 sm:$0xff]  }
 0x483   : > { %v2648_v26 = vsel %vm6322_vm2, %v2611_v52, 0  ;;  %v2529_v17 = vor.u32 %v2527_v32, %v2526_v21  ;;  %v2615_v29 = vor.u32 %v2614_v56, %v2531_v34  ;;  %v2533_v54 = vrot.slane %v2531_v34, 7  ;;  %3997 = vmatprep.subr.bf16.mxu1 %v6108_v2  ;;  %v6114_v18 = vld [vmem:[#allocation4 + $0x1b4] ss:$8 sps:$4 sm:$0xff]   ;;  %v6117_v32 = vld [vmem:[#allocation4 + $0x1c4] ss:$8 sps:$4 sm:$0xff]  }
 0x484   : > { %v2387_v41 = vpack.c.bf16 %v2371_v58, %v2370_v44  ;;  %v2647_v59 = vsel %vm6322_vm2, %v2609_v4, 0  ;;  %v2616_v35 = vrot.slane %v2541_v62, 1  ;;  %v2538_v38 = vshrl.u32 %v7525_v14, 16  ;;  %v6106_v4 = vld [vmem:[#allocation4 + $0x190] ss:$8 sps:$4 sm:$0xff]  }
 0x485   : > { %v2685_v16 = vpop.permute.xlu1 %2684  ;;  %v7543_v43 = vld [vmem:[#allocation3 + $0x70] sm:$0xff]  ;;  %v2585_v46 = vsel %vm6492_vm6, 0, %v2529_v17  ;;  %v2650_v55 = vsel %vm6322_vm2, %v2615_v29, 0  ;;  %v2536_v8 = vor.u32 %v2534_v47, %v2533_v54  ;;  %3998 = vmatpush1.bf16.msra.mxu1 %v6106_v4  ;;  %v6121_v21 = vld [vmem:[#allocation4 + $0x1e0] ss:$8 sps:$4 sm:$0xff]  }
 0x486   : > { %2403 = vst.msk [vmem:[#allocation3 + $0x78] sm:$0xff] %vm1325_vm10, %v2387_v41  ;;  %2698 = vrot.lane.b32.xlu0 %v7543_v43, %s6221_s27  ;;  %v2732_v36 = vsel %vm1325_vm10, %v2581_v30, %v2685_v16  ;;  %v2617_v1 = vor.u32 %v2616_v35, %v2538_v38  ;;  %v2548_v44 = vshll.u32 %v7543_v43, 16  ;;  %v2540_v6 = vrot.slane %v2538_v38, 7  ;;  %v6120_v23 = vld [vmem:[#allocation4 + $0x1d4] ss:$8 sps:$4 sm:$0xff]  }
 0x487   : > { %v2586_v61 = vsel %vm6492_vm6, 0, %v2536_v8  ;;  %v2545_v14 = vshrl.u32 %v7543_v43, 16  ;;  %v6129_v17 = vld [vmem:[#allocation4 + $0x204] ss:$8 sps:$4 sm:$0xff]   ;;  %v6130_v54 = vld [vmem:[#allocation4 + $0x210] ss:$8 sps:$4 sm:$0xff]  }
 0x488   : > { %3043 = vmatmul.mubr.bf16.gmra.mrb[72].mxu0 %v2732_v36  ;;  %v2651_v41 = vsel %vm6322_vm2, %v2617_v1, 0  ;;  %v2618_v16 = vrot.slane %v2548_v44, 1  ;;  %v2543_v30 = vor.u32 %v2541_v62, %v2540_v6  ;;  %v6127_v62 = vld [vmem:[#allocation4 + $0x200] ss:$8 sps:$4 sm:$0xff]  }
 0x489   : > { %5862 = vmatprep.mubr.msk.bf16.mxu0 %vm1325_vm10, %v2646_v45  ;;  %v2547_v39 = vrot.slane %v2545_v14, 7  ;;  %v6133_v8 = vld [vmem:[#allocation4 + $0x220] ss:$8 sps:$4 sm:$0xff]  }
 0x48a   : > { %v2619_v45 = vor.u32 %v2618_v16, %v2545_v14  ;;  %v2587_v5 = vsel %vm6492_vm6, 0, %v2543_v30 }
 0x48c   : > { %v2652_v43 = vsel %vm6322_vm2, %v2619_v45, 0 }
 0x48d   : > { %v2687_v25 = vpop.permute.xlu0 %2686  ;;  %v7556_v33 = vld [vmem:[#allocation3 + $0x78] sm:$0xff] }
 0x48e   : > { %2700 = vrot.lane.b32.xlu1 %v7556_v33, %s6221_s27  ;;  %v2736_v31 = vsel %vm1325_vm10, %v2582_v40, %v2687_v25  ;;  %v2555_v36 = vshll.u32 %v7556_v33, 16  ;;  %v6111_v40 = vld [vmem:[#allocation4 + $0x1a4] ss:$8 sps:$4 sm:$0xff]  }
 0x48f   : > { %3999 = vmatprep.subr.bf16.mxu1 %v6111_v40 }
 0x490   : > { %3053 = vmatmul.mubr.bf16.gmra.mrb[76].mxu0 %v2736_v31  ;;  %v2620_v50 = vrot.slane %v2555_v36, 1  ;;  %v2550_v31 = vor.u32 %v2548_v44, %v2547_v39  ;;  %4000 = vmatpush1.bf16.msra.mxu1 %v6109_v48  ;;  %v6138_v44 = vld [vmem:[#allocation4 + $0x234] ss:$8 sps:$4 sm:$0xff]  }
 0x491   : > { %5863 = vmatprep.mubr.msk.bf16.mxu0 %vm1325_vm10, %v2647_v59  ;;  %v2552_v59 = vshrl.u32 %v7556_v33, 16  ;;  %4001 = vmatprep.subr.bf16.mxu1 %v6114_v18 }
 0x493   : > { %v2621_v53 = vor.u32 %v2620_v50, %v2552_v59 }
 0x495   : > { %v2689_v0 = vpop.permute.xlu1 %2688  ;;  %v2653_v33 = vsel %vm6322_vm2, %v2621_v53, 0 }
 0x496   : > { %v2740_v22 = vsel %vm1325_vm10, %v2583_v27, %v2689_v0  ;;  %v2588_v0 = vsel %vm6492_vm6, 0, %v2550_v31  ;;  %v2554_v27 = vrot.slane %v2552_v59, 7 }
 0x498   : > { %3063 = vmatmul.mubr.bf16.gmra.mrb[80].mxu0 %v2740_v22  ;;  %v6112_v22 = vld [vmem:[#allocation4 + $0x1b0] ss:$8 sps:$4 sm:$0xff]   ;;  %v2557_v51 = vor.u32 %v2555_v36, %v2554_v27 }
 0x499   : > { %5864 = vmatprep.mubr.msk.bf16.mxu0 %vm1325_vm10, %v2648_v26  ;;  %4002 = vmatpush1.bf16.msra.mxu1 %v6112_v22 }
 0x49a   : > { %4003 = vmatprep.subr.bf16.mxu1 %v6117_v32  ;;  %v2589_v9 = vsel %vm6492_vm6, 0, %v2557_v51 }
 0x49d   : > { %4004 = vmatpush1.bf16.msra.mxu1 %v6115_v15 }
 0x49e   : > { %4005 = vmatprep.subr.bf16.mxu1 %v6120_v23 }
 0x4d8   : > { %v2691_v60 = vpop.permute.xlu0 %2690 }
 0x4d9   : > { %v2744_v37 = vsel %vm1325_vm10, %v2584_v20, %v2691_v60  ;;  %v6118_v60 = vld [vmem:[#allocation4 + $0x1d0] ss:$8 sps:$4 sm:$0xff]   ;;  %v6123_v20 = vld [vmem:[#allocation4 + $0x1e4] ss:$8 sps:$4 sm:$0xff]  }
 0x4da   : > { %3073 = vmatmul.mubr.bf16.gmra.mrb[84].mxu0 %v2744_v37  ;;  %4006 = vmatpush1.bf16.msra.mxu1 %v6118_v60  ;;  %v6126_v37 = vld [vmem:[#allocation4 + $0x1f4] ss:$8 sps:$4 sm:$0xff]  }
 0x4db   : > { %5865 = vmatprep.mubr.msk.bf16.mxu0 %vm1325_vm10, %v2649_v10  ;;  %4007 = vmatprep.subr.bf16.mxu1 %v6123_v20  ;;  %v6124_v10 = vld [vmem:[#allocation4 + $0x1f0] ss:$8 sps:$4 sm:$0xff]  }
 0x4de   : > { %4008 = vmatpush1.bf16.msra.mxu1 %v6121_v21 }
 0x4df   : > { %4009 = vmatprep.subr.bf16.mxu1 %v6126_v37 }
 0x4e0   : > { %v2693_v7 = vpop.permute.xlu1 %2692 }
 0x4e1   : > { %v2748_v24 = vsel %vm1325_vm10, %v2585_v46, %v2693_v7  ;;  %v6132_v46 = vld [vmem:[#allocation4 + $0x214] ss:$8 sps:$4 sm:$0xff]  }
 0x4e2   : > { %3083 = vmatmul.mubr.bf16.gmra.mrb[88].mxu0 %v2748_v24  ;;  %4010 = vmatpush1.bf16.msra.mxu1 %v6124_v10 }
 0x4e3   : > { %5866 = vmatprep.mubr.msk.bf16.mxu0 %vm1325_vm10, %v2650_v55  ;;  %4011 = vmatprep.subr.bf16.mxu1 %v6129_v17  ;;  %v6135_v55 = vld [vmem:[#allocation4 + $0x224] ss:$8 sps:$4 sm:$0xff]  }
 0x4e6   : > { %4012 = vmatpush1.bf16.msra.mxu1 %v6127_v62 }
 0x4e7   : > { %4013 = vmatprep.subr.bf16.mxu1 %v6132_v46 }
 0x4e8   : > { %v2695_v58 = vpop.permute.xlu0 %2694 }
 0x4e9   : > { %v2752_v28 = vsel %vm1325_vm10, %v2586_v61, %v2695_v58  ;;  %v6136_v58 = vld [vmem:[#allocation4 + $0x230] ss:$8 sps:$4 sm:$0xff]  }
 0x4ea   : > { %3093 = vmatmul.mubr.bf16.gmra.mrb[92].mxu0 %v2752_v28  ;;  %4014 = vmatpush1.bf16.msra.mxu1 %v6130_v54 }
 0x4eb   : > { %5867 = vmatprep.mubr.msk.bf16.mxu0 %vm1325_vm10, %v2651_v41  ;;  %4015 = vmatprep.subr.bf16.mxu1 %v6135_v55 }
 0x4ee   : > { %4016 = vmatpush1.bf16.msra.mxu1 %v6133_v8 }
 0x4ef   : > { %4017 = vmatprep.subr.bf16.mxu1 %v6138_v44 }
 0x4f1   : > { %v2697_v42 = vpop.permute.xlu1 %2696 }
 0x4f2   : > { %v2756_v25 = vsel %vm1325_vm10, %v2587_v5, %v2697_v42  ;;  %4018 = vmatpush1.bf16.msra.mxu1 %v6136_v58 }
 0x4f3   : > { %3103 = vmatmul.mubr.bf16.gmra.mrb[96].mxu0 %v2756_v25 }
 0x4f4   : > { %5868 = vmatprep.mubr.msk.bf16.mxu0 %vm1325_vm10, %v2652_v43 }
 0x4f5   : > { %4028 = vmatmul.mubr.bf16.vlgmr.msra.gmra.mrb[104].mxu1 %v9004_v13 }
 0x4f8   : > { %v2699_v52 = vpop.permute.xlu0 %2698 }
 0x4f9   : > { %v2760_v26 = vsel %vm1325_vm10, %v2588_v0, %v2699_v52 }
 0x4fb   : > { %3113 = vmatmul.mubr.bf16.gmra.mrb[100].mxu0 %v2760_v26 }
 0x4fc   : > { %5869 = vmatprep.mubr.msk.bf16.mxu0 %vm1325_vm10, %v2653_v33 }
 0x500   : > { %v2701_v63 = vpop.permute.xlu1 %2700 }
 0x501   : > { %v2764_v47 = vsel %vm1325_vm10, %v2589_v9, %v2701_v63  ;;  %v7740_v63 = vld [vmem:[%s8942_s4 + $0x2] ss:$0 sm:$0xff] }
 0x503   : > { %3123 = vmatmul.mubr.bf16.gmra.mrb[104].mxu0 %v2764_v47 }
 0x504   : > { %3132 = vmatprep.mubr.bf16.mxu0 %v9004_v13 }
 0x50b   : > { %3133 = vmatmul.mubr.bf16.gmra.mrb[108].mxu0 %v9004_v13 }
 0x50c   : > { %5088 = vmatprep.mubr.bf16.mxu0 %v9004_v13 }
 0x522   : > { %v7619_v56 = vpop.f32.mrb[44].mxu0 }
 0x523   : > { %v2978_v34 = vpop.f32.mrb[45].mxu0  ;;  %3173 = vrot.lane.b32.xlu0 %v7619_v56, %s6221_s27 }
 0x524   : > { %v7623_v29 = vpop.f32.mrb[46].mxu0 }
 0x525   : > { %v2981_v7 = vpop.f32.mrb[47].mxu0  ;;  %3175 = vrot.lane.b32.xlu1 %v7623_v29, %s6221_s27 }
 0x52a   : > { %v7627_v24 = vpop.f32.mrb[48].mxu0 }
 0x52b   : > { %v7629_v35 = vpop.f32.mrb[49].mxu0  ;;  %3177 = vrot.lane.b32.xlu0 %v7627_v24, %s6221_s27 }
 0x52c   : > { %v7633_v38 = vpop.f32.mrb[50].mxu0 }
 0x52d   : > { %v7635_v1 = vpop.f32.mrb[51].mxu0  ;;  %3179 = vrot.lane.b32.xlu1 %v7633_v38, %s6221_s27 }
 0x532   : > { %v7639_v61 = vpop.f32.mrb[52].mxu0 }
 0x533   : > { %v7641_v28 = vpop.f32.mrb[53].mxu0  ;;  %3181 = vrot.lane.b32.xlu0 %v7639_v61, %s6221_s27 }
 0x534   : > { %v7645_v6 = vpop.f32.mrb[54].mxu0 }
 0x535   : > { %v7648_v41 = vpop.f32.mrb[55].mxu0  ;;  %3183 = vrot.lane.b32.xlu1 %v7645_v6, %s6221_s27 }
 0x53b   : > { %v7652_v16 = vpop.f32.mrb[56].mxu0 }
 0x53c   : > { %v7654_v30 = vpop.f32.mrb[57].mxu0  ;;  %3185 = vrot.lane.b32.xlu0 %v7652_v16, %s6221_s27 }
 0x53d   : > { %v7658_v14 = vpop.f32.mrb[58].mxu0 }
 0x53e   : > { %v7660_v57 = vpop.f32.mrb[59].mxu0  ;;  %3187 = vrot.lane.b32.xlu1 %v7658_v14, %s6221_s27 }
 0x543   : > { %v7664_v49 = vpop.f32.mrb[60].mxu0 }
 0x544   : > { %v7666_v36 = vpop.f32.mrb[61].mxu0  ;;  %3189 = vrot.lane.b32.xlu0 %v7664_v49, %s6221_s27 }
 0x545   : > { %v7670_v45 = vpop.f32.mrb[62].mxu0 }
 0x546   : > { %v7672_v2 = vpop.f32.mrb[63].mxu0  ;;  %3191 = vrot.lane.b32.xlu1 %v7670_v45, %s6221_s27 }
 0x54b   : > { %v7676_v42 = vpop.f32.mrb[64].mxu0 }
 0x54c   : > { %v7678_v5 = vpop.f32.mrb[65].mxu0  ;;  %3193 = vrot.lane.b32.xlu0 %v7676_v42, %s6221_s27 }
 0x54d   : > { %v7682_v39 = vpop.f32.mrb[66].mxu0 }
 0x54e   : > { %v7684_v4 = vpop.f32.mrb[67].mxu0  ;;  %3195 = vrot.lane.b32.xlu1 %v7682_v39, %s6221_s27 }
 0x553   : > { %v7688_v25 = vpop.f32.mrb[68].mxu0 }
 0x554   : > { %v7690_v40 = vpop.f32.mrb[69].mxu0  ;;  %3197 = vrot.lane.b32.xlu0 %v7688_v25, %s6221_s27 }
 0x555   : > { %v7694_v43 = vpop.f32.mrb[70].mxu0 }
 0x556   : > { %v7696_v50 = vpop.f32.mrb[71].mxu0  ;;  %3199 = vrot.lane.b32.xlu1 %v7694_v43, %s6221_s27 }
 0x55b   : > { %v7700_v31 = vpop.f32.mrb[72].mxu0 }
 0x55c   : > { %v7702_v59 = vpop.f32.mrb[73].mxu0  ;;  %3201 = vrot.lane.b32.xlu0 %v7700_v31, %s6221_s27 }
 0x55d   : > { %v7706_v48 = vpop.f32.mrb[74].mxu0 }
 0x55e   : > { %v7708_v18 = vpop.f32.mrb[75].mxu0  ;;  %3203 = vrot.lane.b32.xlu1 %v7706_v48, %s6221_s27 }
 0x563   : > { %v7712_v53 = vpop.f32.mrb[76].mxu0 }
 0x564   : > { %v7714_v52 = vpop.f32.mrb[77].mxu0  ;;  %3205 = vrot.lane.b32.xlu0 %v7712_v53, %s6221_s27 }
 0x565   : > { %v7718_v0 = vpop.f32.mrb[78].mxu0 }
 0x566   : > { %v7720_v27 = vpop.f32.mrb[79].mxu0  ;;  %3207 = vrot.lane.b32.xlu1 %v7718_v0, %s6221_s27 }
 0x56b   : > { %v7724_v22 = vpop.f32.mrb[80].mxu0 }
 0x56c   : > { %v7726_v26 = vpop.f32.mrb[81].mxu0  ;;  %3209 = vrot.lane.b32.xlu0 %v7724_v22, %s6221_s27 }
 0x56d   : > { %v7730_v32 = vpop.f32.mrb[82].mxu0 }
 0x56e   : > { %v7732_v33 = vpop.f32.mrb[83].mxu0  ;;  %3211 = vrot.lane.b32.xlu1 %v7730_v32, %s6221_s27 }
 0x595   : > { %v3174_v51 = vpop.permute.xlu0 %3173 }
 0x596   : > { %v3269_v15 = vadd.f32 %v3174_v51, %v7538_v3 }
 0x597   : > { %v3176_v9 = vpop.permute.xlu1 %3175 }
 0x598   : > { %v3301_v47 = vadd.f32 %v3269_v15, %v7629_v35  ;;  %v3270_v23 = vadd.f32 %v3176_v9, %v7541_v19 }
 0x59a   : > { %v3337_v60 = vadd.f32 %v7740_v63, %v3301_v47  ;;  %v3302_v20 = vadd.f32 %v3270_v23, %v7635_v1 }
 0x59c   : > { %v3369_v21 = vmul.f32 0.2, %v3337_v60  ;;  %v3338_v37 = vadd.f32 %v7740_v63, %v3302_v20 }
 0x59d   : > { %v3178_v10 = vpop.permute.xlu0 %3177 }
 0x59e   : > { %v3370_v17 = vmul.f32 0.2, %v3338_v37  ;;  %v3271_v3 = vadd.f32 %v3178_v10, %v7619_v56  ;;  %v3401_v62 = vmax.f32 %v3337_v60, %v3369_v21 }
 0x59f   : > { %v3180_v34 = vpop.permute.xlu1 %3179 }
 0x5a0   : > { %v3402_v7 = vmax.f32 %v3338_v37, %v3370_v17  ;;  %v3303_v46 = vadd.f32 %v3271_v3, %v7641_v28  ;;  %v3272_v54 = vadd.f32 %v3180_v34, %v7623_v29 }
 0x5a2   : > { %v3433_v55 = vpack.c.bf16 %v3402_v7, %v3401_v62  ;;  %v3339_v19 = vadd.f32 %v7740_v63, %v3303_v46  ;;  %v3304_v35 = vadd.f32 %v3272_v54, %v7648_v41 }
 0x5a4   : > { %3449 = vst.msk [vmem:[#allocation2] sm:$0xff] %vm1325_vm10, %v3433_v55  ;;  %v3371_v8 = vmul.f32 0.2, %v3339_v19  ;;  %v3340_v1 = vadd.f32 %v7740_v63, %v3304_v35 }
 0x5a5   : > { %v3182_v44 = vpop.permute.xlu0 %3181 }
 0x5a6   : > { %v3372_v58 = vmul.f32 0.2, %v3340_v1  ;;  %v3273_v56 = vadd.f32 %v3182_v44, %v7627_v24  ;;  %v3403_v15 = vmax.f32 %v3339_v19, %v3371_v8 }
 0x5a7   : > { %v3184_v51 = vpop.permute.xlu1 %3183 }
 0x5a8   : > { %v3404_v9 = vmax.f32 %v3340_v1, %v3372_v58  ;;  %v3305_v28 = vadd.f32 %v3273_v56, %v7654_v30  ;;  %v3274_v29 = vadd.f32 %v3184_v51, %v7633_v38 }
 0x5aa   : > { %v3434_v47 = vpack.c.bf16 %v3404_v9, %v3403_v15  ;;  %v3341_v23 = vadd.f32 %v7740_v63, %v3305_v28  ;;  %v3306_v41 = vadd.f32 %v3274_v29, %v7660_v57 }
 0x5ab   : > { %v3465_v60 = vld [vmem:[#allocation2] sm:$0xff] }
 0x5ac   : > { %3450 = vst.msk [vmem:[#allocation2 + $0x8] sm:$0xff] %vm1325_vm10, %v3434_v47  ;;  %v3373_v20 = vmul.f32 0.2, %v3341_v23  ;;  %v3342_v21 = vadd.f32 %v7740_v63, %v3306_v41  ;;  %3731 = vrot.lane.b32.xlu0 %v3465_v60, %s6221_s27  ;;  %v3508_v24 = vshrl.u32 %v3465_v60, 16  ;;  %v3511_v37 = vshll.u32 %v3465_v60, 16 }
 0x5ad   : > { %v7762_v10 = vpop.f32.mrb[84].mxu0 }
 0x5ae   : > { %v3374_v30 = vmul.f32 0.2, %v3342_v21  ;;  %v3510_v17 = vrot.slane %v3508_v24, 7  ;;  %v3186_v38 = vpop.permute.xlu0 %3185  ;;  %v7764_v3 = vpop.f32.mrb[85].mxu0  ;;  %3213 = vrot.lane.b32.xlu1 %v7762_v10, %s6221_s27  ;;  %v3651_v57 = vrot.slane %v3511_v37, 1  ;;  %v3405_v7 = vmax.f32 %v3341_v23, %v3373_v20 }
 0x5af   : > { %v3275_v34 = vadd.f32 %v3186_v38, %v7639_v61  ;;  %v7769_v62 = vpop.f32.mrb[86].mxu0 }
 0x5b0   : > { %v3406_v46 = vmax.f32 %v3342_v21, %v3374_v30  ;;  %v3188_v54 = vpop.permute.xlu1 %3187  ;;  %v7771_v55 = vpop.f32.mrb[87].mxu0  ;;  %3215 = vrot.lane.b32.xlu0 %v7769_v62, %s6221_s27  ;;  %v3652_v19 = vor.u32 %v3651_v57, %v3508_v24  ;;  %v7775_v35 = vor.u32 %v3511_v37, %v3510_v17 }
 0x5b1   : > { %v3307_v8 = vadd.f32 %v3275_v34, %v7666_v36  ;;  %v3276_v1 = vadd.f32 %v3188_v54, %v7645_v6 }
 0x5b2   : > { %v3435_v44 = vpack.c.bf16 %v3406_v46, %v3405_v7  ;;  %v3699_v61 = vsel %vm6322_vm2, %v3652_v19, 0 }
 0x5b3   : > { %v3343_v58 = vadd.f32 %v7740_v63, %v3307_v8  ;;  %v3308_v56 = vadd.f32 %v3276_v1, %v7672_v2  ;;  %5895 = vmatprep.mubr.msk.bf16.mxu1 %vm1325_vm10, %v3699_v61  ;;  %v7784_v51 = vld [vmem:[#allocation2 + $0x8] sm:$0xff] }
 0x5b4   : > { %3451 = vst.msk [vmem:[#allocation2 + $0x10] sm:$0xff] %vm1325_vm10, %v3435_v44  ;;  %3733 = vrot.lane.b32.xlu1 %v7784_v51, %s6221_s27 }
 0x5b5   : > { %v3375_v36 = vmul.f32 0.2, %v3343_v58  ;;  %v3344_v6 = vadd.f32 %v7740_v63, %v3308_v56  ;;  %v7790_v15 = vpop.f32.mrb[88].mxu0 }
 0x5b6   : > { %v3190_v9 = vpop.permute.xlu0 %3189  ;;  %v7792_v28 = vpop.f32.mrb[89].mxu0  ;;  %3217 = vrot.lane.b32.xlu0 %v7790_v15, %s6221_s27 }
 0x5b7   : > { %v3376_v2 = vmul.f32 0.2, %v3344_v6  ;;  %v3277_v29 = vadd.f32 %v3190_v9, %v7652_v16  ;;  %v7797_v47 = vpop.f32.mrb[90].mxu0  ;;  %v3407_v60 = vmax.f32 %v3343_v58, %v3375_v36 }
 0x5b8   : > { %v3192_v23 = vpop.permute.xlu1 %3191  ;;  %v7799_v41 = vpop.f32.mrb[91].mxu0  ;;  %3219 = vrot.lane.b32.xlu1 %v7797_v47, %s6221_s27 }
 0x5b9   : > { %v3408_v20 = vmax.f32 %v3344_v6, %v3376_v2  ;;  %v3309_v21 = vadd.f32 %v3277_v29, %v7678_v5  ;;  %v3278_v24 = vadd.f32 %v3192_v23, %v7658_v14 }
 0x5bb   : > { %v3436_v37 = vpack.c.bf16 %v3408_v20, %v3407_v60  ;;  %v3345_v30 = vadd.f32 %v7740_v63, %v3309_v21  ;;  %v3310_v17 = vadd.f32 %v3278_v24, %v7684_v4  ;;  %v7807_v16 = vld [vmem:[#allocation2 + $0x10] sm:$0xff] }
 0x5bc   : > { %3735 = vrot.lane.b32.xlu0 %v7807_v16, %s6221_s27 }
 0x5bd   : > { %3452 = vst.msk [vmem:[#allocation2 + $0x18] sm:$0xff] %vm1325_vm10, %v3436_v37  ;;  %v3377_v38 = vmul.f32 0.2, %v3345_v30  ;;  %v3346_v57 = vadd.f32 %v7740_v63, %v3310_v17  ;;  %v7813_v34 = vpop.f32.mrb[92].mxu0 }
 0x5be   : > { %v3194_v5 = vpop.permute.xlu0 %3193  ;;  %v7815_v7 = vpop.f32.mrb[93].mxu0  ;;  %3221 = vrot.lane.b32.xlu1 %v7813_v34, %s6221_s27 }
 0x5bf   : > { %v3378_v14 = vmul.f32 0.2, %v3346_v57  ;;  %v3279_v4 = vadd.f32 %v3194_v5, %v7664_v49  ;;  %v7820_v46 = vpop.f32.mrb[94].mxu0  ;;  %v3409_v8 = vmax.f32 %v3345_v30, %v3377_v38 }
 0x5c0   : > { %v3196_v54 = vpop.permute.xlu1 %3195  ;;  %v7822_v19 = vpop.f32.mrb[95].mxu0  ;;  %3223 = vrot.lane.b32.xlu0 %v7820_v46, %s6221_s27 }
 0x5c1   : > { %v3410_v1 = vmax.f32 %v3346_v57, %v3378_v14  ;;  %v3311_v44 = vadd.f32 %v3279_v4, %v7690_v40  ;;  %v3280_v61 = vadd.f32 %v3196_v54, %v7670_v45 }
 0x5c3   : > { %v3437_v58 = vpack.c.bf16 %v3410_v1, %v3409_v8  ;;  %v3347_v56 = vadd.f32 %v7740_v63, %v3311_v44  ;;  %v3312_v36 = vadd.f32 %v3280_v61, %v7696_v50 }
 0x5c4   : > { %v7830_v49 = vld [vmem:[#allocation2 + $0x18] sm:$0xff] }
 0x5c5   : > { %3453 = vst.msk [vmem:[#allocation2 + $0x20] sm:$0xff] %vm1325_vm10, %v3437_v58  ;;  %v3379_v6 = vmul.f32 0.2, %v3347_v56  ;;  %v3348_v9 = vadd.f32 %v7740_v63, %v3312_v36  ;;  %3737 = vrot.lane.b32.xlu1 %v7830_v49, %s6221_s27 }
 0x5c6   : > { %v7836_v2 = vpop.f32.mrb[96].mxu0  ;;  %v3198_v40 = vpop.permute.xlu0 %3197 }
 0x5c7   : > { %v3380_v29 = vmul.f32 0.2, %v3348_v9  ;;  %v3281_v45 = vadd.f32 %v3198_v40, %v7676_v42  ;;  %v7839_v23 = vpop.f32.mrb[97].mxu0  ;;  %3225 = vrot.lane.b32.xlu0 %v7836_v2, %s6221_s27  ;;  %v3411_v20 = vmax.f32 %v3347_v56, %v3379_v6 }
 0x5c8   : > { %v7843_v50 = vpop.f32.mrb[98].mxu0  ;;  %v3200_v60 = vpop.permute.xlu1 %3199 }
 0x5c9   : > { %v3412_v21 = vmax.f32 %v3348_v9, %v3380_v29  ;;  %v3313_v24 = vadd.f32 %v3281_v45, %v7702_v59  ;;  %v3282_v37 = vadd.f32 %v3200_v60, %v7682_v39  ;;  %v7847_v30 = vpop.f32.mrb[99].mxu0  ;;  %3227 = vrot.lane.b32.xlu1 %v7843_v50, %s6221_s27 }
 0x5cb   : > { %v3438_v42 = vpack.c.bf16 %v3412_v21, %v3411_v20  ;;  %v3349_v17 = vadd.f32 %v7740_v63, %v3313_v24  ;;  %v3314_v38 = vadd.f32 %v3282_v37, %v7708_v18 }
 0x5cc   : > { %v7853_v57 = vld [vmem:[#allocation2 + $0x20] sm:$0xff] }
 0x5cd   : > { %3454 = vst.msk [vmem:[#allocation2 + $0x28] sm:$0xff] %vm1325_vm10, %v3438_v42  ;;  %v3381_v5 = vmul.f32 0.2, %v3349_v17  ;;  %v3350_v14 = vadd.f32 %v7740_v63, %v3314_v38  ;;  %3739 = vrot.lane.b32.xlu0 %v7853_v57, %s6221_s27 }
 0x5ce   : > { %v3202_v39 = vpop.permute.xlu0 %3201  ;;  %v7859_v59 = vpop.f32.mrb[100].mxu0 }
 0x5cf   : > { %v3382_v4 = vmul.f32 0.2, %v3350_v14  ;;  %v3283_v54 = vadd.f32 %v3202_v39, %v7688_v25  ;;  %v7862_v8 = vpop.f32.mrb[101].mxu0  ;;  %3229 = vrot.lane.b32.xlu1 %v7859_v59, %s6221_s27  ;;  %v3413_v44 = vmax.f32 %v3349_v17, %v3381_v5 }
 0x5d0   : > { %v7866_v18 = vpop.f32.mrb[102].mxu0  ;;  %v3204_v1 = vpop.permute.xlu1 %3203 }
 0x5d1   : > { %v3414_v61 = vmax.f32 %v3350_v14, %v3382_v4  ;;  %v3315_v58 = vadd.f32 %v3283_v54, %v7714_v52  ;;  %v3284_v56 = vadd.f32 %v3204_v1, %v7694_v43  ;;  %v7870_v36 = vpop.f32.mrb[103].mxu0  ;;  %3231 = vrot.lane.b32.xlu0 %v7866_v18, %s6221_s27 }
 0x5d3   : > { %v3439_v25 = vpack.c.bf16 %v3414_v61, %v3413_v44  ;;  %v3351_v6 = vadd.f32 %v7740_v63, %v3315_v58  ;;  %v3316_v9 = vadd.f32 %v3284_v56, %v7720_v27 }
 0x5d4   : > { %v7876_v40 = vld [vmem:[#allocation2 + $0x28] sm:$0xff] }
 0x5d5   : > { %3455 = vst.msk [vmem:[#allocation2 + $0x30] sm:$0xff] %vm1325_vm10, %v3439_v25  ;;  %v3383_v29 = vmul.f32 0.2, %v3351_v6  ;;  %v3352_v45 = vadd.f32 %v7740_v63, %v3316_v9  ;;  %3741 = vrot.lane.b32.xlu1 %v7876_v40, %s6221_s27 }
 0x5d6   : > { %v3206_v43 = vpop.permute.xlu0 %3205  ;;  %v3124_v52 = vpop.f32.mrb[104].mxu0 }
 0x5d7   : > { %v3384_v60 = vmul.f32 0.2, %v3352_v45  ;;  %v3285_v20 = vadd.f32 %v3206_v43, %v7700_v31  ;;  %3233 = vrot.lane.b32.xlu0 %v3124_v52, %s6221_s27  ;;  %v7884_v21 = vpop.f32.mrb[105].mxu0  ;;  %v3415_v37 = vmax.f32 %v3351_v6, %v3383_v29 }
 0x5d8   : > { %v3208_v27 = vpop.permute.xlu1 %3207  ;;  %v3128_v24 = vpop.f32.mrb[106].mxu0 }
 0x5d9   : > { %v3416_v42 = vmax.f32 %v3352_v45, %v3384_v60  ;;  %v3317_v17 = vadd.f32 %v3285_v20, %v7726_v26  ;;  %v3286_v38 = vadd.f32 %v3208_v27, %v7706_v48  ;;  %3235 = vrot.lane.b32.xlu1 %v3128_v24, %s6221_s27  ;;  %v7889_v5 = vpop.f32.mrb[107].mxu0 }
 0x5db   : > { %v3440_v14 = vpack.c.bf16 %v3416_v42, %v3415_v37  ;;  %v3353_v39 = vadd.f32 %v7740_v63, %v3317_v17  ;;  %v3318_v31 = vadd.f32 %v3286_v38, %v7732_v33  ;;  %v3518_v17 = vshll.u32 %v7784_v51, 16 }
 0x5dc   : > { %v7893_v4 = vld [vmem:[#allocation2 + $0x30] sm:$0xff] }
 0x5dd   : > { %3456 = vst.msk [vmem:[#allocation2 + $0x38] sm:$0xff] %vm1325_vm10, %v3440_v14  ;;  %v3385_v54 = vmul.f32 0.2, %v3353_v39  ;;  %v3354_v1 = vadd.f32 %v7740_v63, %v3318_v31  ;;  %3743 = vrot.lane.b32.xlu0 %v7893_v4, %s6221_s27  ;;  %v3653_v38 = vrot.slane %v3518_v17, 1  ;;  %v3515_v14 = vshrl.u32 %v7784_v51, 16 }
 0x5de   : > { %v3210_v48 = vpop.permute.xlu0 %3209  ;;  %v3134_v26 = vpop.f32.mrb[108].mxu0  ;;  %v3522_v51 = vshrl.u32 %v7807_v16, 16 }
 0x5df   : > { %v3386_v44 = vmul.f32 0.2, %v3354_v1  ;;  %v3287_v61 = vadd.f32 %v3210_v48, %v7712_v53  ;;  %v7900_v58 = vpop.f32.mrb[109].mxu0  ;;  %v3417_v33 = vmax.f32 %v3353_v39, %v3385_v54  ;;  %v3525_v39 = vshll.u32 %v7807_v16, 16 }
 0x5e0   : > { %v3212_v56 = vpop.permute.xlu1 %3211  ;;  %v3137_v25 = vpop.f32.mrb[110].mxu0  ;;  %v3654_v31 = vor.u32 %v3653_v38, %v3515_v14  ;;  %v3517_v54 = vrot.slane %v3515_v14, 7  ;;  %v3635_v48 = vsel %vm6492_vm6, 0, %v7775_v35 }
 0x5e1   : > { %v3418_v6 = vmax.f32 %v3354_v1, %v3386_v44  ;;  %v3319_v9 = vadd.f32 %v3287_v61, %v7764_v3  ;;  %v3288_v29 = vadd.f32 %v3212_v56, %v7718_v0  ;;  %v7904_v45 = vpop.f32.mrb[111].mxu0  ;;  %v3655_v56 = vrot.slane %v3525_v39, 1 }
 0x5e2   : > { %v3700_v61 = vsel %vm6322_vm2, %v3654_v31, 0 }
 0x5e3   : > { %v3441_v43 = vpack.c.bf16 %v3418_v6, %v3417_v33  ;;  %v3355_v52 = vadd.f32 %v7740_v63, %v3319_v9  ;;  %v3320_v60 = vadd.f32 %v3288_v29, %v7771_v55  ;;  %v3520_v6 = vor.u32 %v3518_v17, %v3517_v54 }
 0x5e4   : > { %v7908_v20 = vld [vmem:[#allocation2 + $0x38] sm:$0xff]  ;;  %v3532_v29 = vshll.u32 %v7830_v49, 16 }
 0x5e5   : > { %3457 = vst.msk [vmem:[#allocation2 + $0x40] sm:$0xff] %vm1325_vm10, %v3441_v43  ;;  %v3387_v53 = vmul.f32 0.2, %v3355_v52  ;;  %v3356_v27 = vadd.f32 %v7740_v63, %v3320_v60  ;;  %3745 = vrot.lane.b32.xlu1 %v7908_v20, %s6221_s27  ;;  %v3656_v43 = vor.u32 %v3655_v56, %v3522_v51 }
 0x5e7   : > { %v3388_v3 = vmul.f32 0.2, %v3356_v27  ;;  %v3419_v24 = vmax.f32 %v3355_v52, %v3387_v53  ;;  %v3524_v53 = vrot.slane %v3522_v51, 7 }
 0x5e9   : > { %v3420_v0 = vmax.f32 %v3356_v27, %v3388_v3  ;;  %v3527_v14 = vor.u32 %v3525_v39, %v3524_v53 }
 0x5eb   : > { %v3442_v37 = vpack.c.bf16 %v3420_v0, %v3419_v24  ;;  %v3657_v0 = vrot.slane %v3532_v29, 1 }
 0x5ec   : > { %v7914_v42 = vld [vmem:[#allocation2 + $0x40] sm:$0xff] }
 0x5ed   : > { %3458 = vst.msk [vmem:[#allocation2 + $0x48] sm:$0xff] %vm1325_vm10, %v3442_v37  ;;  %3747 = vrot.lane.b32.xlu0 %v7914_v42, %s6221_s27 }
 0x5f4   : > { %v7919_v55 = vld [vmem:[#allocation2 + $0x48] sm:$0xff] }
 0x5f5   : > { %3749 = vrot.lane.b32.xlu1 %v7919_v55, %s6221_s27 }
 0x61e   : > { %v3732_v1 = vpop.permute.xlu0 %3731 }
 0x61f   : > { %v3765_v26 = vsel %vm1325_vm10, %v3635_v48, %v3732_v1 }
 0x620   : > { %4036 = vmatmul.mubr.bf16.gmra.mrb[108].mxu1 %v3765_v26  ;;  %v3214_v44 = vpop.permute.xlu1 %3213  ;;  %v3539_v26 = vshll.u32 %v7853_v57, 16 }
 0x621   : > { %v3289_v25 = vadd.f32 %v3214_v44, %v7724_v22  ;;  %5896 = vmatprep.mubr.msk.bf16.mxu1 %vm1325_vm10, %v3700_v61  ;;  %v3636_v22 = vsel %vm6492_vm6, 0, %v3520_v6 }
 0x622   : > { %v3216_v33 = vpop.permute.xlu0 %3215 }
 0x623   : > { %v3321_v9 = vadd.f32 %v3289_v25, %v7792_v28  ;;  %v3290_v35 = vadd.f32 %v3216_v33, %v7730_v32  ;;  %v3701_v32 = vsel %vm6322_vm2, %v3656_v43, 0  ;;  %v3536_v43 = vshrl.u32 %v7853_v57, 16 }
 0x625   : > { %v3357_v52 = vadd.f32 %v7740_v63, %v3321_v9  ;;  %v3322_v60 = vadd.f32 %v3290_v35, %v7799_v41  ;;  %v3529_v41 = vshrl.u32 %v7830_v49, 16  ;;  %v3637_v49 = vsel %vm6492_vm6, 0, %v3527_v14 }
 0x626   : > { %v3734_v27 = vpop.permute.xlu1 %3733  ;;  %v3659_v9 = vrot.slane %v3539_v26, 1 }
 0x627   : > { %v3389_v3 = vmul.f32 0.2, %v3357_v52  ;;  %v3358_v16 = vadd.f32 %v7740_v63, %v3322_v60  ;;  %v3769_v24 = vsel %vm1325_vm10, %v3636_v22, %v3734_v27  ;;  %v3658_v44 = vor.u32 %v3657_v0, %v3529_v41 }
 0x628   : > { %v3218_v28 = vpop.permute.xlu0 %3217  ;;  %4044 = vmatmul.mubr.bf16.gmra.mrb[112].mxu1 %v3769_v24  ;;  %v3531_v25 = vrot.slane %v3529_v41, 7  ;;  %v3546_v24 = vshll.u32 %v7876_v40, 16 }
 0x629   : > { %v3390_v37 = vmul.f32 0.2, %v3358_v16  ;;  %v3291_v17 = vadd.f32 %v3218_v28, %v7762_v10  ;;  %5897 = vmatprep.mubr.msk.bf16.mxu1 %vm1325_vm10, %v3701_v32  ;;  %v3421_v31 = vmax.f32 %v3357_v52, %v3389_v3  ;;  %v3702_v6 = vsel %vm6322_vm2, %v3658_v44, 0 }
 0x62a   : > { %v3220_v38 = vpop.permute.xlu1 %3219  ;;  %v3534_v60 = vor.u32 %v3532_v29, %v3531_v25  ;;  %v3661_v14 = vrot.slane %v3546_v24, 1  ;;  %v3553_v25 = vshll.u32 %v7893_v4, 16 }
 0x62b   : > { %v3422_v54 = vmax.f32 %v3358_v16, %v3390_v37  ;;  %v3323_v1 = vadd.f32 %v3291_v17, %v7815_v7  ;;  %v3292_v48 = vadd.f32 %v3220_v38, %v7769_v62  ;;  %v3660_v16 = vor.u32 %v3659_v9, %v3536_v43 }
 0x62c   : > { %v3538_v37 = vrot.slane %v3536_v43, 7  ;;  %v3663_v9 = vrot.slane %v3553_v25, 1  ;;  %v3550_v43 = vshrl.u32 %v7893_v4, 16 }
 0x62d   : > { %v3443_v61 = vpack.c.bf16 %v3422_v54, %v3421_v31  ;;  %v3359_v56 = vadd.f32 %v7740_v63, %v3323_v1  ;;  %v3324_v10 = vadd.f32 %v3292_v48, %v7822_v19  ;;  %v3543_v54 = vshrl.u32 %v7876_v40, 16 }
 0x62e   : > { %v3736_v51 = vpop.permute.xlu0 %3735 }
 0x62f   : > { %3459 = vst.msk [vmem:[#allocation2 + $0x50] sm:$0xff] %vm1325_vm10, %v3443_v61  ;;  %v3391_v39 = vmul.f32 0.2, %v3359_v56  ;;  %v3360_v7 = vadd.f32 %v7740_v63, %v3324_v10  ;;  %v3773_v62 = vsel %vm1325_vm10, %v3637_v49, %v3736_v51  ;;  %v3541_v61 = vor.u32 %v3539_v26, %v3538_v37 }
 0x630   : > { %4054 = vmatmul.mubr.bf16.gmra.mrb[116].mxu1 %v3773_v62  ;;  %v3222_v33 = vpop.permute.xlu1 %3221  ;;  %v3662_v49 = vor.u32 %v3661_v14, %v3543_v54  ;;  %v3545_v62 = vrot.slane %v3543_v54, 7 }
 0x631   : > { %v3392_v35 = vmul.f32 0.2, %v3360_v7  ;;  %v3293_v19 = vadd.f32 %v3222_v33, %v7790_v15  ;;  %5898 = vmatprep.mubr.msk.bf16.mxu1 %vm1325_vm10, %v3702_v6  ;;  %v3423_v53 = vmax.f32 %v3359_v56, %v3391_v39 }
 0x632   : > { %v3224_v52 = vpop.permute.xlu0 %3223 }
 0x633   : > { %v3424_v27 = vmax.f32 %v3360_v7, %v3392_v35  ;;  %v3325_v22 = vadd.f32 %v3293_v19, %v7839_v23  ;;  %v3294_v3 = vadd.f32 %v3224_v52, %v7797_v47  ;;  %v3638_v47 = vsel %vm6492_vm6, 0, %v3534_v60 }
 0x634   : > { %v3548_v60 = vor.u32 %v3546_v24, %v3545_v62 }
 0x635   : > { %v3444_v28 = vpack.c.bf16 %v3424_v27, %v3423_v53  ;;  %v3361_v32 = vadd.f32 %v7740_v63, %v3325_v22  ;;  %v3326_v15 = vadd.f32 %v3294_v3, %v7847_v30  ;;  %v3703_v30 = vsel %vm6322_vm2, %v3660_v16, 0 }
 0x636   : > { %v7969_v0 = vld [vmem:[#allocation2 + $0x50] sm:$0xff]  ;;  %v3560_v16 = vshll.u32 %v7908_v20, 16 }
 0x637   : > { %3460 = vst.msk [vmem:[#allocation2 + $0x58] sm:$0xff] %vm1325_vm10, %v3444_v28  ;;  %v3393_v57 = vmul.f32 0.2, %v3361_v32  ;;  %v3362_v29 = vadd.f32 %v7740_v63, %v3326_v15  ;;  %v3738_v17 = vpop.permute.xlu1 %3737  ;;  %3751 = vrot.lane.b32.xlu0 %v7969_v0, %s6221_s27  ;;  %v3664_v28 = vor.u32 %v3663_v9, %v3550_v43 }
 0x638   : > { %v3777_v23 = vsel %vm1325_vm10, %v3638_v47, %v3738_v17  ;;  %v3665_v47 = vrot.slane %v3560_v16, 1 }
 0x639   : > { %v3394_v41 = vmul.f32 0.2, %v3362_v29  ;;  %v3226_v38 = vpop.permute.xlu0 %3225  ;;  %4064 = vmatmul.mubr.bf16.gmra.mrb[120].mxu1 %v3777_v23  ;;  %v3425_v1 = vmax.f32 %v3361_v32, %v3393_v57  ;;  %v3552_v57 = vrot.slane %v3550_v43, 7 }
 0x63a   : > { %v3295_v31 = vadd.f32 %v3226_v38, %v7813_v34  ;;  %5899 = vmatprep.mubr.msk.bf16.mxu1 %vm1325_vm10, %v3703_v30  ;;  %v3557_v38 = vshrl.u32 %v7908_v20, 16 }
 0x63b   : > { %v3426_v48 = vmax.f32 %v3362_v29, %v3394_v41  ;;  %v3228_v44 = vpop.permute.xlu1 %3227  ;;  %v3555_v14 = vor.u32 %v3553_v25, %v3552_v57 }
 0x63c   : > { %v3327_v56 = vadd.f32 %v3295_v31, %v7862_v8  ;;  %v3296_v10 = vadd.f32 %v3228_v44, %v7820_v46  ;;  %v3639_v46 = vsel %vm6492_vm6, 0, %v3541_v61  ;;  %v3666_v44 = vor.u32 %v3665_v47, %v3557_v38 }
 0x63d   : > { %v3445_v51 = vpack.c.bf16 %v3426_v48, %v3425_v1  ;;  %v3567_v61 = vshll.u32 %v7914_v42, 16 }
 0x63e   : > { %v3363_v39 = vadd.f32 %v7740_v63, %v3327_v56  ;;  %v3328_v34 = vadd.f32 %v3296_v10, %v7870_v36  ;;  %v7988_v7 = vld [vmem:[#allocation2 + $0x58] sm:$0xff]  ;;  %v3704_v36 = vsel %vm6322_vm2, %v3662_v49, 0 }
 0x63f   : > { %3461 = vst.msk [vmem:[#allocation2 + $0x60] sm:$0xff] %vm1325_vm10, %v3445_v51  ;;  %v3740_v40 = vpop.permute.xlu0 %3739  ;;  %3753 = vrot.lane.b32.xlu1 %v7988_v7, %s6221_s27  ;;  %v3559_v51 = vrot.slane %v3557_v38, 7  ;;  %v3667_v62 = vrot.slane %v3567_v61, 1  ;;  %v3588_v38 = vshll.u32 %v7988_v7, 16 }
 0x640   : > { %v3395_v8 = vmul.f32 0.2, %v3363_v39  ;;  %v3364_v26 = vadd.f32 %v7740_v63, %v3328_v34  ;;  %v3781_v33 = vsel %vm1325_vm10, %v3639_v46, %v3740_v40  ;;  %v3564_v40 = vshrl.u32 %v7914_v42, 16 }
 0x641   : > { %4074 = vmatmul.mubr.bf16.gmra.mrb[124].mxu1 %v3781_v33  ;;  %v3230_v6 = vpop.permute.xlu1 %3229  ;;  %v3562_v46 = vor.u32 %v3560_v16, %v3559_v51 }
 0x642   : > { %v3396_v35 = vmul.f32 0.2, %v3364_v26  ;;  %v3297_v19 = vadd.f32 %v3230_v6, %v7836_v2  ;;  %5900 = vmatprep.mubr.msk.bf16.mxu1 %vm1325_vm10, %v3704_v36  ;;  %v3427_v53 = vmax.f32 %v3363_v39, %v3395_v8  ;;  %v3574_v6 = vshll.u32 %v7919_v55, 16 }
 0x643   : > { %v3232_v52 = vpop.permute.xlu0 %3231  ;;  %v3668_v9 = vor.u32 %v3667_v62, %v3564_v40  ;;  %v3642_v42 = vsel %vm6492_vm6, 0, %v3562_v46 }
 0x644   : > { %v3428_v27 = vmax.f32 %v3364_v26, %v3396_v35  ;;  %v3329_v22 = vadd.f32 %v3297_v19, %v7884_v21  ;;  %v3298_v3 = vadd.f32 %v3232_v52, %v7843_v50  ;;  %v3640_v21 = vsel %vm6492_vm6, 0, %v3548_v60  ;;  %v8039_v26 = vpop.f32.mrb[104].mxu1 }
 0x645   : > { %v4031_v33 = vpop.f32.mrb[105].mxu1  ;;  %v3566_v19 = vrot.slane %v3564_v40, 7 }
 0x646   : > { %v3446_v32 = vpack.c.bf16 %v3428_v27, %v3427_v53  ;;  %v3365_v15 = vadd.f32 %v7740_v63, %v3329_v22  ;;  %v3330_v2 = vadd.f32 %v3298_v3, %v7889_v5  ;;  %v8007_v37 = vld [vmem:[#allocation2 + $0x60] sm:$0xff]  ;;  %v3705_v5 = vsel %vm6322_vm2, %v3664_v28, 0  ;;  %v8042_v35 = vpop.f32.mrb[106].mxu1 }
 0x647   : > { %v3742_v4 = vpop.permute.xlu1 %3741  ;;  %3755 = vrot.lane.b32.xlu0 %v8007_v37, %s6221_s27  ;;  %v4034_v60 = vpop.f32.mrb[107].mxu1  ;;  %v3707_v27 = vsel %vm6322_vm2, %v3668_v9, 0  ;;  %v3669_v22 = vrot.slane %v3574_v6, 1  ;;  %v3571_v3 = vshrl.u32 %v7919_v55, 16  ;;  %v3569_v16 = vor.u32 %v3567_v61, %v3566_v19 }
 0x648   : > { %3462 = vst.msk [vmem:[#allocation2 + $0x68] sm:$0xff] %vm1325_vm10, %v3446_v32  ;;  %v3397_v50 = vmul.f32 0.2, %v3365_v15  ;;  %v3366_v24 = vadd.f32 %v7740_v63, %v3330_v2  ;;  %v3785_v29 = vsel %vm1325_vm10, %v3640_v21, %v3742_v4  ;;  %v3581_v28 = vshll.u32 %v7969_v0, 16 }
 0x649   : > { %4084 = vmatmul.mubr.bf16.gmra.mrb[128].mxu1 %v3785_v29  ;;  %v3234_v17 = vpop.permute.xlu0 %3233  ;;  %v3670_v32 = vor.u32 %v3669_v22, %v3571_v3  ;;  %v3643_v4 = vsel %vm6492_vm6, 0, %v3569_v16  ;;  %v3578_v29 = vshrl.u32 %v7969_v0, 16  ;;  %v6144_v22 = vld [vmem:[#allocation4 + $0x254] ss:$8 sps:$4 sm:$0xff]  }
 0x64a   : > { %v3398_v23 = vmul.f32 0.2, %v3366_v24  ;;  %v3299_v41 = vadd.f32 %v3234_v17, %v7859_v59  ;;  %5901 = vmatprep.mubr.msk.bf16.mxu1 %vm1325_vm10, %v3705_v5  ;;  %v3429_v31 = vmax.f32 %v3365_v15, %v3397_v50  ;;  %v3573_v15 = vrot.slane %v3571_v3, 7 }
 0x64b   : > { %v3236_v30 = vpop.permute.xlu1 %3235  ;;  %v3708_v55 = vsel %vm6322_vm2, %v3670_v32, 0  ;;  %v3671_v50 = vrot.slane %v3581_v28, 1 }
 0x64c   : > { %v3430_v54 = vmax.f32 %v3366_v24, %v3398_v23  ;;  %v3300_v1 = vadd.f32 %v3236_v30, %v7866_v18  ;;  %v3331_v48 = vadd.f32 %v3299_v41, %v7900_v58  ;;  %v3641_v18 = vsel %vm6492_vm6, 0, %v3555_v14 }
 0x64d   : > { %v3576_v24 = vor.u32 %v3574_v6, %v3573_v15  ;;  %v3672_v17 = vor.u32 %v3671_v50, %v3578_v29  ;;  %v3580_v30 = vrot.slane %v3578_v29, 7  ;;  %v3673_v14 = vrot.slane %v3588_v38, 1  ;;  %v6142_v15 = vld [vmem:[#allocation4 + $0x250] ss:$8 sps:$4 sm:$0xff]   ;;  %v6145_v50 = vld [vmem:[#allocation4 + $0x260] ss:$8 sps:$4 sm:$0xff]  }
 0x64e   : > { %v3447_v56 = vpack.c.bf16 %v3430_v54, %v3429_v31  ;;  %v3367_v10 = vadd.f32 %v7740_v63, %v3331_v48  ;;  %v3332_v59 = vadd.f32 %v3300_v1, %v7904_v45  ;;  %v3706_v45 = vsel %vm6322_vm2, %v3666_v44, 0  ;;  %v6150_v29 = vld [vmem:[#allocation4 + $0x274] ss:$8 sps:$4 sm:$0xff]  }
 0x64f   : > { %v3744_v49 = vpop.permute.xlu0 %3743  ;;  %v8026_v39 = vld [vmem:[#allocation2 + $0x68] sm:$0xff]  ;;  %v3644_v47 = vsel %vm6492_vm6, 0, %v3576_v24  ;;  %v3709_v41 = vsel %vm6322_vm2, %v3672_v17, 0  ;;  %v3585_v31 = vshrl.u32 %v7988_v7, 16  ;;  %v3583_v0 = vor.u32 %v3581_v28, %v3580_v30 }
 0x650   : > { %3463 = vst.msk [vmem:[#allocation2 + $0x70] sm:$0xff] %vm1325_vm10, %v3447_v56  ;;  %v3399_v20 = vmul.f32 0.2, %v3367_v10  ;;  %v3368_v25 = vadd.f32 %v7740_v63, %v3332_v59  ;;  %3757 = vrot.lane.b32.xlu1 %v8026_v39, %s6221_s27  ;;  %v3789_v58 = vsel %vm1325_vm10, %v3641_v18, %v3744_v49  ;;  %v3595_v54 = vshll.u32 %v8007_v37, 16 }
 0x651   : > { %4094 = vmatmul.mubr.bf16.gmra.mrb[132].mxu1 %v3789_v58  ;;  %v3674_v1 = vor.u32 %v3673_v14, %v3585_v31  ;;  %v3587_v48 = vrot.slane %v3585_v31, 7  ;;  %v3645_v61 = vsel %vm6492_vm6, 0, %v3583_v0  ;;  %v3592_v7 = vshrl.u32 %v8007_v37, 16  ;;  %v6151_v14 = vld [vmem:[#allocation4 + $0x280] ss:$8 sps:$4 sm:$0xff]  }
 0x652   : > { %v3400_v34 = vmul.f32 0.2, %v3368_v25  ;;  %5902 = vmatprep.mubr.msk.bf16.mxu1 %vm1325_vm10, %v3706_v45  ;;  %v3431_v63 = vmax.f32 %v3367_v10, %v3399_v20  ;;  %v3675_v59 = vrot.slane %v3595_v54, 1  ;;  %v3602_v49 = vshll.u32 %v8026_v39, 16 }
 0x653   : > { %v3710_v10 = vsel %vm6322_vm2, %v3674_v1, 0  ;;  %v3590_v51 = vor.u32 %v3588_v38, %v3587_v48  ;;  %v3599_v37 = vshrl.u32 %v8026_v39, 16  ;;  %v6156_v1 = vld [vmem:[#allocation4 + $0x294] ss:$8 sps:$4 sm:$0xff]   ;;  %v6154_v48 = vld [vmem:[#allocation4 + $0x290] ss:$8 sps:$4 sm:$0xff]  }
 0x654   : > { %v3432_v8 = vmax.f32 %v3368_v25, %v3400_v34  ;;  %v3676_v20 = vor.u32 %v3675_v59, %v3592_v7  ;;  %v3594_v25 = vrot.slane %v3592_v7, 7  ;;  %v3677_v62 = vrot.slane %v3602_v49, 1  ;;  %v6165_v7 = vld [vmem:[#allocation4 + $0x2c4] ss:$8 sps:$4 sm:$0xff]  }
 0x655   : > { %v3646_v58 = vsel %vm6492_vm6, 0, %v3590_v51  ;;  %v3601_v6 = vrot.slane %v3599_v37, 7 }
 0x656   : > { %v3448_v36 = vpack.c.bf16 %v3432_v8, %v3431_v63  ;;  %v3711_v45 = vsel %vm6322_vm2, %v3676_v20, 0  ;;  %v3597_v40 = vor.u32 %v3595_v54, %v3594_v25  ;;  %v3678_v46 = vor.u32 %v3677_v62, %v3599_v37  ;;  %v6169_v37 = vld [vmem:[#allocation4 + $0x2e0] ss:$8 sps:$4 sm:$0xff]  }
 0x657   : > { %v3746_v43 = vpop.permute.xlu1 %3745  ;;  %v8044_v52 = vld [vmem:[#allocation2 + $0x70] sm:$0xff] }
 0x658   : > { %3464 = vst.msk [vmem:[#allocation2 + $0x78] sm:$0xff] %vm1325_vm10, %v3448_v36  ;;  %3759 = vrot.lane.b32.xlu0 %v8044_v52, %s6221_s27  ;;  %v3793_v53 = vsel %vm1325_vm10, %v3642_v42, %v3746_v43  ;;  %v3609_v63 = vshll.u32 %v8044_v52, 16  ;;  %v3647_v33 = vsel %vm6492_vm6, 0, %v3597_v40  ;;  %v3712_v9 = vsel %vm6322_vm2, %v3678_v46, 0 }
 0x659   : > { %4104 = vmatmul.mubr.bf16.gmra.mrb[136].mxu1 %v3793_v53  ;;  %v3606_v39 = vshrl.u32 %v8044_v52, 16  ;;  %v3604_v43 = vor.u32 %v3602_v49, %v3601_v6  ;;  %v6139_v53 = vld [vmem:[#allocation4 + $0x240] ss:$8 sps:$4 sm:$0xff]  }
 0x65a   : > { %5903 = vmatprep.mubr.msk.bf16.mxu1 %vm1325_vm10, %v3707_v27  ;;  %v3679_v19 = vrot.slane %v3609_v63, 1  ;;  %v6141_v27 = vld [vmem:[#allocation4 + $0x244] ss:$8 sps:$4 sm:$0xff]   ;;  %v6163_v49 = vld [vmem:[#allocation4 + $0x2c0] ss:$8 sps:$4 sm:$0xff]  }
 0x65b   : > { %v3608_v3 = vrot.slane %v3606_v39, 7  ;;  %v3648_v28 = vsel %vm6492_vm6, 0, %v3604_v43  ;;  %5056 = vmatprep.subr.bf16.mxu0 %v6141_v27 }
 0x65c   : > { %v3680_v60 = vor.u32 %v3679_v19, %v3606_v39  ;;  %5057 = vmatpush1.bf16.msra.mxu0 %v6139_v53 }
 0x65d   : > { %5058 = vmatprep.subr.bf16.mxu0 %v6144_v22 }
 0x65e   : > { %v3713_v52 = vsel %vm6322_vm2, %v3680_v60, 0 }
 0x65f   : > { %v3748_v2 = vpop.permute.xlu0 %3747  ;;  %v8057_v57 = vld [vmem:[#allocation2 + $0x78] sm:$0xff] }
 0x660   : > { %3761 = vrot.lane.b32.xlu1 %v8057_v57, %s6221_s27  ;;  %v3797_v21 = vsel %vm1325_vm10, %v3643_v4, %v3748_v2  ;;  %v3616_v42 = vshll.u32 %v8057_v57, 16  ;;  %v6147_v4 = vld [vmem:[#allocation4 + $0x264] ss:$8 sps:$4 sm:$0xff]   ;;  %5059 = vmatpush1.bf16.msra.mxu0 %v6142_v15 }
 0x661   : > { %4114 = vmatmul.mubr.bf16.gmra.mrb[140].mxu1 %v3797_v21  ;;  %v3613_v21 = vshrl.u32 %v8057_v57, 16  ;;  %5060 = vmatprep.subr.bf16.mxu0 %v6147_v4  ;;  %v6153_v57 = vld [vmem:[#allocation4 + $0x284] ss:$8 sps:$4 sm:$0xff]  }
 0x662   : > { %5904 = vmatprep.mubr.msk.bf16.mxu1 %vm1325_vm10, %v3708_v55  ;;  %v3681_v2 = vrot.slane %v3616_v42, 1  ;;  %v3611_v55 = vor.u32 %v3609_v63, %v3608_v3  ;;  %v6174_v63 = vld [vmem:[#allocation4 + $0x2f4] ss:$8 sps:$4 sm:$0xff]  }
 0x663   : > { %v3615_v17 = vrot.slane %v3613_v21, 7 }
 0x664   : > { %v3682_v24 = vor.u32 %v3681_v2, %v3613_v21  ;;  %5061 = vmatpush1.bf16.msra.mxu0 %v6145_v50 }
 0x665   : > { %5062 = vmatprep.subr.bf16.mxu0 %v6150_v29  ;;  %v3618_v30 = vor.u32 %v3616_v42, %v3615_v17 }
 0x666   : > { %v3714_v38 = vsel %vm6322_vm2, %v3682_v24, 0 }
 0x667   : > { %v3750_v5 = vpop.permute.xlu1 %3749  ;;  %v3650_v0 = vsel %vm6492_vm6, 0, %v3618_v30 }
 0x668   : > { %v3801_v23 = vsel %vm1325_vm10, %v3644_v47, %v3750_v5  ;;  %v3649_v47 = vsel %vm6492_vm6, 0, %v3611_v55 }
 0x669   : > { %4124 = vmatmul.mubr.bf16.gmra.mrb[144].mxu1 %v3801_v23 }
 0x66a   : > { %5905 = vmatprep.mubr.msk.bf16.mxu1 %vm1325_vm10, %v3709_v41  ;;  %v6148_v41 = vld [vmem:[#allocation4 + $0x270] ss:$8 sps:$4 sm:$0xff]  }
 0x66b   : > { %5063 = vmatpush1.bf16.msra.mxu0 %v6148_v41 }
 0x66c   : > { %5064 = vmatprep.subr.bf16.mxu0 %v6153_v57 }
 0x66f   : > { %5065 = vmatpush1.bf16.msra.mxu0 %v6151_v14 }
 0x670   : > { %5066 = vmatprep.subr.bf16.mxu0 %v6156_v1 }
 0x673   : > { %5067 = vmatpush1.bf16.msra.mxu0 %v6154_v48 }
 0x6a9   : > { %v3752_v44 = vpop.permute.xlu0 %3751 }
 0x6aa   : > { %v3805_v56 = vsel %vm1325_vm10, %v3645_v61, %v3752_v44  ;;  %v6159_v44 = vld [vmem:[#allocation4 + $0x2a4] ss:$8 sps:$4 sm:$0xff]   ;;  %v6157_v61 = vld [vmem:[#allocation4 + $0x2a0] ss:$8 sps:$4 sm:$0xff]  }
 0x6ab   : > { %4134 = vmatmul.mubr.bf16.gmra.mrb[148].mxu1 %v3805_v56  ;;  %5068 = vmatprep.subr.bf16.mxu0 %v6159_v44  ;;  %v6162_v56 = vld [vmem:[#allocation4 + $0x2b4] ss:$8 sps:$4 sm:$0xff]  }
 0x6ac   : > { %5906 = vmatprep.mubr.msk.bf16.mxu1 %vm1325_vm10, %v3710_v10  ;;  %5069 = vmatpush1.bf16.msra.mxu0 %v6157_v61  ;;  %v6160_v10 = vld [vmem:[#allocation4 + $0x2b0] ss:$8 sps:$4 sm:$0xff]  }
 0x6ad   : > { %5070 = vmatprep.subr.bf16.mxu0 %v6162_v56 }
 0x6b0   : > { %5071 = vmatpush1.bf16.msra.mxu0 %v6160_v10 }
 0x6b1   : > { %v3754_v18 = vpop.permute.xlu1 %3753  ;;  %5072 = vmatprep.subr.bf16.mxu0 %v6165_v7 }
 0x6b2   : > { %v3809_v34 = vsel %vm1325_vm10, %v3646_v58, %v3754_v18  ;;  %v6168_v18 = vld [vmem:[#allocation4 + $0x2d4] ss:$8 sps:$4 sm:$0xff]   ;;  %v6166_v58 = vld [vmem:[#allocation4 + $0x2d0] ss:$8 sps:$4 sm:$0xff]  }
 0x6b3   : > { %4144 = vmatmul.mubr.bf16.gmra.mrb[152].mxu1 %v3809_v34 }
 0x6b4   : > { %5907 = vmatprep.mubr.msk.bf16.mxu1 %vm1325_vm10, %v3711_v45  ;;  %5073 = vmatpush1.bf16.msra.mxu0 %v6163_v49  ;;  %v6171_v45 = vld [vmem:[#allocation4 + $0x2e4] ss:$8 sps:$4 sm:$0xff]  }
 0x6b5   : > { %5074 = vmatprep.subr.bf16.mxu0 %v6168_v18 }
 0x6b8   : > { %5075 = vmatpush1.bf16.msra.mxu0 %v6166_v58 }
 0x6b9   : > { %v3756_v8 = vpop.permute.xlu0 %3755  ;;  %5076 = vmatprep.subr.bf16.mxu0 %v6171_v45 }
 0x6ba   : > { %v3813_v36 = vsel %vm1325_vm10, %v3647_v33, %v3756_v8  ;;  %v6172_v8 = vld [vmem:[#allocation4 + $0x2f0] ss:$8 sps:$4 sm:$0xff]  }
 0x6bb   : > { %4154 = vmatmul.mubr.bf16.gmra.mrb[156].mxu1 %v3813_v36 }
 0x6bc   : > { %5908 = vmatprep.mubr.msk.bf16.mxu1 %vm1325_vm10, %v3712_v9  ;;  %5077 = vmatpush1.bf16.msra.mxu0 %v6169_v37 }
 0x6bd   : > { %5078 = vmatprep.subr.bf16.mxu0 %v6174_v63 }
 0x6c0   : > { %5079 = vmatpush1.bf16.msra.mxu0 %v6172_v8 }
 0x6c2   : > { %v3758_v16 = vpop.permute.xlu1 %3757 }
 0x6c3   : > { %v3817_v32 = vsel %vm1325_vm10, %v3648_v28, %v3758_v16  ;;  %5089 = vmatmul.mubr.bf16.vlgmr.msra.gmra.mrb[112].mxu0 %v9004_v13 }
 0x6c4   : > { %4164 = vmatmul.mubr.bf16.gmra.mrb[160].mxu1 %v3817_v32 }
 0x6c5   : > { %5909 = vmatprep.mubr.msk.bf16.mxu1 %vm1325_vm10, %v3713_v52 }
 0x6ca   : > { %v3760_v5 = vpop.permute.xlu0 %3759 }
 0x6cb   : > { %v3821_v23 = vsel %vm1325_vm10, %v3649_v47, %v3760_v5 }
 0x6cc   : > { %4174 = vmatmul.mubr.bf16.gmra.mrb[164].mxu1 %v3821_v23 }
 0x6cd   : > { %5910 = vmatprep.mubr.msk.bf16.mxu1 %vm1325_vm10, %v3714_v38 }
 0x6d2   : > { %v3762_v31 = vpop.permute.xlu1 %3761 }
 0x6d3   : > { %v3825_v54 = vsel %vm1325_vm10, %v3650_v0, %v3762_v31  ;;  %v8240_v31 = vld [vmem:[%s8942_s4 + $0x3] ss:$0 sm:$0xff] }
 0x6d4   : > { %4184 = vmatmul.mubr.bf16.gmra.mrb[168].mxu1 %v3825_v54 }
 0x6d5   : > { %4193 = vmatprep.mubr.bf16.mxu1 %v9004_v13 }
 0x6dc   : > { %4194 = vmatmul.mubr.bf16.gmra.mrb[172].mxu1 %v9004_v13 }
 0x6f3   : > { %v8119_v59 = vpop.f32.mrb[108].mxu1 }
 0x6f4   : > { %v4039_v51 = vpop.f32.mrb[109].mxu1  ;;  %4234 = vrot.lane.b32.xlu0 %v8119_v59, %s6221_s27 }
 0x6f5   : > { %v8123_v20 = vpop.f32.mrb[110].mxu1 }
 0x6f6   : > { %v4042_v25 = vpop.f32.mrb[111].mxu1  ;;  %4236 = vrot.lane.b32.xlu1 %v8123_v20, %s6221_s27 }
 0x6fb   : > { %v8127_v34 = vpop.f32.mrb[112].mxu1 }
 0x6fc   : > { %v8129_v62 = vpop.f32.mrb[113].mxu1  ;;  %4238 = vrot.lane.b32.xlu0 %v8127_v34, %s6221_s27 }
 0x6fd   : > { %v8133_v40 = vpop.f32.mrb[114].mxu1 }
 0x6fe   : > { %v8135_v46 = vpop.f32.mrb[115].mxu1  ;;  %4240 = vrot.lane.b32.xlu1 %v8133_v40, %s6221_s27 }
 0x703   : > { %v8139_v33 = vpop.f32.mrb[116].mxu1 }
 0x704   : > { %v8141_v6 = vpop.f32.mrb[117].mxu1  ;;  %4242 = vrot.lane.b32.xlu0 %v8139_v33, %s6221_s27 }
 0x705   : > { %v8145_v36 = vpop.f32.mrb[118].mxu1 }
 0x706   : > { %v8148_v9 = vpop.f32.mrb[119].mxu1  ;;  %4244 = vrot.lane.b32.xlu1 %v8145_v36, %s6221_s27 }
 0x70c   : > { %v8152_v19 = vpop.f32.mrb[120].mxu1 }
 0x70d   : > { %v8154_v39 = vpop.f32.mrb[121].mxu1  ;;  %4246 = vrot.lane.b32.xlu0 %v8152_v19, %s6221_s27 }
 0x70e   : > { %v8158_v43 = vpop.f32.mrb[122].mxu1 }
 0x70f   : > { %v8160_v42 = vpop.f32.mrb[123].mxu1  ;;  %4248 = vrot.lane.b32.xlu1 %v8158_v43, %s6221_s27 }
 0x714   : > { %v8164_v60 = vpop.f32.mrb[124].mxu1 }
 0x715   : > { %v8166_v53 = vpop.f32.mrb[125].mxu1  ;;  %4250 = vrot.lane.b32.xlu0 %v8164_v60, %s6221_s27 }
 0x716   : > { %v8170_v27 = vpop.f32.mrb[126].mxu1 }
 0x717   : > { %v8172_v22 = vpop.f32.mrb[127].mxu1  ;;  %4252 = vrot.lane.b32.xlu1 %v8170_v27, %s6221_s27 }
 0x71c   : > { %v8176_v3 = vpop.f32.mrb[128].mxu1 }
 0x71d   : > { %v8178_v16 = vpop.f32.mrb[129].mxu1  ;;  %4254 = vrot.lane.b32.xlu0 %v8176_v3, %s6221_s27 }
 0x71e   : > { %v8182_v28 = vpop.f32.mrb[130].mxu1 }
 0x71f   : > { %v8184_v32 = vpop.f32.mrb[131].mxu1  ;;  %4256 = vrot.lane.b32.xlu1 %v8182_v28, %s6221_s27 }
 0x724   : > { %v8188_v15 = vpop.f32.mrb[132].mxu1 }
 0x725   : > { %v8190_v52 = vpop.f32.mrb[133].mxu1  ;;  %4258 = vrot.lane.b32.xlu0 %v8188_v15, %s6221_s27 }
 0x726   : > { %v8194_v2 = vpop.f32.mrb[134].mxu1 }
 0x727   : > { %v8196_v4 = vpop.f32.mrb[135].mxu1  ;;  %4260 = vrot.lane.b32.xlu1 %v8194_v2, %s6221_s27 }
 0x72c   : > { %v8200_v21 = vpop.f32.mrb[136].mxu1 }
 0x72d   : > { %v8202_v55 = vpop.f32.mrb[137].mxu1  ;;  %4262 = vrot.lane.b32.xlu0 %v8200_v21, %s6221_s27 }
 0x72e   : > { %v8206_v50 = vpop.f32.mrb[138].mxu1 }
 0x72f   : > { %v8208_v24 = vpop.f32.mrb[139].mxu1  ;;  %4264 = vrot.lane.b32.xlu1 %v8206_v50, %s6221_s27 }
 0x734   : > { %v8212_v29 = vpop.f32.mrb[140].mxu1 }
 0x735   : > { %v8214_v17 = vpop.f32.mrb[141].mxu1  ;;  %4266 = vrot.lane.b32.xlu0 %v8212_v29, %s6221_s27 }
 0x736   : > { %v8218_v5 = vpop.f32.mrb[142].mxu1 }
 0x737   : > { %v8220_v47 = vpop.f32.mrb[143].mxu1  ;;  %4268 = vrot.lane.b32.xlu1 %v8218_v5, %s6221_s27 }
 0x73c   : > { %v8224_v23 = vpop.f32.mrb[144].mxu1 }
 0x73d   : > { %v8226_v41 = vpop.f32.mrb[145].mxu1  ;;  %4270 = vrot.lane.b32.xlu0 %v8224_v23, %s6221_s27 }
 0x73e   : > { %v8230_v38 = vpop.f32.mrb[146].mxu1 }
 0x73f   : > { %v8232_v57 = vpop.f32.mrb[147].mxu1  ;;  %4272 = vrot.lane.b32.xlu1 %v8230_v38, %s6221_s27 }
 0x766   : > { %v4235_v30 = vpop.permute.xlu0 %4234 }
 0x767   : > { %v4330_v14 = vadd.f32 %v4235_v30, %v8039_v26 }
 0x768   : > { %v4237_v0 = vpop.permute.xlu1 %4236 }
 0x769   : > { %v4362_v54 = vadd.f32 %v4330_v14, %v8129_v62  ;;  %v4331_v1 = vadd.f32 %v4237_v0, %v8042_v35 }
 0x76b   : > { %v4398_v48 = vadd.f32 %v8240_v31, %v4362_v54  ;;  %v4363_v44 = vadd.f32 %v4331_v1, %v8135_v46 }
 0x76d   : > { %v4430_v61 = vmul.f32 0.2, %v4398_v48  ;;  %v4399_v56 = vadd.f32 %v8240_v31, %v4363_v44 }
 0x76e   : > { %v4239_v10 = vpop.permute.xlu0 %4238 }
 0x76f   : > { %v4431_v7 = vmul.f32 0.2, %v4399_v56  ;;  %v4332_v26 = vadd.f32 %v4239_v10, %v8119_v59  ;;  %v4462_v49 = vmax.f32 %v4398_v48, %v4430_v61 }
 0x770   : > { %v4241_v51 = vpop.permute.xlu1 %4240 }
 0x771   : > { %v4463_v25 = vmax.f32 %v4399_v56, %v4431_v7  ;;  %v4364_v18 = vadd.f32 %v4332_v26, %v8141_v6  ;;  %v4333_v58 = vadd.f32 %v4241_v51, %v8123_v20 }
 0x773   : > { %v4494_v45 = vpack.c.bf16 %v4463_v25, %v4462_v49  ;;  %v4400_v35 = vadd.f32 %v8240_v31, %v4364_v18  ;;  %v4365_v62 = vadd.f32 %v4333_v58, %v8148_v9 }
 0x775   : > { %4510 = vst.msk [vmem:[#allocation3] sm:$0xff] %vm1325_vm10, %v4494_v45  ;;  %v4432_v37 = vmul.f32 0.2, %v4400_v35  ;;  %v4401_v46 = vadd.f32 %v8240_v31, %v4365_v62 }
 0x776   : > { %v4243_v63 = vpop.permute.xlu0 %4242 }
 0x777   : > { %v4433_v8 = vmul.f32 0.2, %v4401_v46  ;;  %v4334_v59 = vadd.f32 %v4243_v63, %v8127_v34  ;;  %v4464_v14 = vmax.f32 %v4400_v35, %v4432_v37 }
 0x778   : > { %v4245_v30 = vpop.permute.xlu1 %4244 }
 0x779   : > { %v4465_v0 = vmax.f32 %v4401_v46, %v4433_v8  ;;  %v4366_v6 = vadd.f32 %v4334_v59, %v8154_v39  ;;  %v4335_v20 = vadd.f32 %v4245_v30, %v8133_v40 }
 0x77b   : > { %v4495_v54 = vpack.c.bf16 %v4465_v0, %v4464_v14  ;;  %v4402_v1 = vadd.f32 %v8240_v31, %v4366_v6  ;;  %v4367_v9 = vadd.f32 %v4335_v20, %v8160_v42 }
 0x77c   : > { %v4526_v48 = vld [vmem:[#allocation3] sm:$0xff] }
 0x77d   : > { %4511 = vst.msk [vmem:[#allocation3 + $0x8] sm:$0xff] %vm1325_vm10, %v4495_v54  ;;  %v4434_v44 = vmul.f32 0.2, %v4402_v1  ;;  %v4403_v61 = vadd.f32 %v8240_v31, %v4367_v9  ;;  %4792 = vrot.lane.b32.xlu0 %v4526_v48, %s6221_s27  ;;  %v4569_v34 = vshrl.u32 %v4526_v48, 16  ;;  %v4572_v56 = vshll.u32 %v4526_v48, 16 }
 0x77e   : > { %v8262_v10 = vpop.f32.mrb[148].mxu1 }
 0x77f   : > { %v4435_v39 = vmul.f32 0.2, %v4403_v61  ;;  %v4571_v7 = vrot.slane %v4569_v34, 7  ;;  %v4247_v40 = vpop.permute.xlu0 %4246  ;;  %v8264_v26 = vpop.f32.mrb[149].mxu1  ;;  %4274 = vrot.lane.b32.xlu1 %v8262_v10, %s6221_s27  ;;  %v4712_v42 = vrot.slane %v4572_v56, 1  ;;  %v4466_v25 = vmax.f32 %v4402_v1, %v4434_v44 }
 0x780   : > { %v4336_v51 = vadd.f32 %v4247_v40, %v8139_v33  ;;  %v8269_v49 = vpop.f32.mrb[150].mxu1 }
 0x781   : > { %v4467_v18 = vmax.f32 %v4403_v61, %v4435_v39  ;;  %v4249_v58 = vpop.permute.xlu1 %4248  ;;  %v8271_v45 = vpop.f32.mrb[151].mxu1  ;;  %4276 = vrot.lane.b32.xlu0 %v8269_v49, %s6221_s27  ;;  %v4713_v35 = vor.u32 %v4712_v42, %v4569_v34  ;;  %v8275_v62 = vor.u32 %v4572_v56, %v4571_v7 }
 0x782   : > { %v4368_v37 = vadd.f32 %v4336_v51, %v8166_v53  ;;  %v4337_v46 = vadd.f32 %v4249_v58, %v8145_v36 }
 0x783   : > { %v4496_v63 = vpack.c.bf16 %v4467_v18, %v4466_v25  ;;  %v4760_v33 = vsel %vm6322_vm2, %v4713_v35, 0 }
 0x784   : > { %v4404_v8 = vadd.f32 %v8240_v31, %v4368_v37  ;;  %v4369_v59 = vadd.f32 %v4337_v46, %v8172_v22  ;;  %5936 = vmatprep.mubr.msk.bf16.mxu0 %vm1325_vm10, %v4760_v33  ;;  %v8284_v30 = vld [vmem:[#allocation3 + $0x8] sm:$0xff] }
 0x785   : > { %4512 = vst.msk [vmem:[#allocation3 + $0x10] sm:$0xff] %vm1325_vm10, %v4496_v63  ;;  %4794 = vrot.lane.b32.xlu1 %v8284_v30, %s6221_s27 }
 0x786   : > { %v4436_v53 = vmul.f32 0.2, %v4404_v8  ;;  %v4405_v36 = vadd.f32 %v8240_v31, %v4369_v59  ;;  %v8290_v14 = vpop.f32.mrb[152].mxu1 }
 0x787   : > { %v4251_v0 = vpop.permute.xlu0 %4250  ;;  %v8292_v6 = vpop.f32.mrb[153].mxu1  ;;  %4278 = vrot.lane.b32.xlu0 %v8290_v14, %s6221_s27 }
 0x788   : > { %v4437_v22 = vmul.f32 0.2, %v4405_v36  ;;  %v4338_v20 = vadd.f32 %v4251_v0, %v8152_v19  ;;  %v8297_v54 = vpop.f32.mrb[154].mxu1  ;;  %v4468_v48 = vmax.f32 %v4404_v8, %v4436_v53 }
 0x789   : > { %v4253_v1 = vpop.permute.xlu1 %4252  ;;  %v8299_v9 = vpop.f32.mrb[155].mxu1  ;;  %4280 = vrot.lane.b32.xlu1 %v8297_v54, %s6221_s27 }
 0x78a   : > { %v4469_v44 = vmax.f32 %v4405_v36, %v4437_v22  ;;  %v4370_v61 = vadd.f32 %v4338_v20, %v8178_v16  ;;  %v4339_v34 = vadd.f32 %v4253_v1, %v8158_v43 }
 0x78c   : > { %v4497_v56 = vpack.c.bf16 %v4469_v44, %v4468_v48  ;;  %v4406_v39 = vadd.f32 %v8240_v31, %v4370_v61  ;;  %v4371_v7 = vadd.f32 %v4339_v34, %v8184_v32  ;;  %v8307_v19 = vld [vmem:[#allocation3 + $0x10] sm:$0xff] }
 0x78d   : > { %4796 = vrot.lane.b32.xlu0 %v8307_v19, %s6221_s27 }
 0x78e   : > { %4513 = vst.msk [vmem:[#allocation3 + $0x18] sm:$0xff] %vm1325_vm10, %v4497_v56  ;;  %v4438_v40 = vmul.f32 0.2, %v4406_v39  ;;  %v4407_v42 = vadd.f32 %v8240_v31, %v4371_v7  ;;  %v8313_v51 = vpop.f32.mrb[156].mxu1 }
 0x78f   : > { %v4255_v16 = vpop.permute.xlu0 %4254  ;;  %v8315_v25 = vpop.f32.mrb[157].mxu1  ;;  %4282 = vrot.lane.b32.xlu1 %v8313_v51, %s6221_s27 }
 0x790   : > { %v4439_v43 = vmul.f32 0.2, %v4407_v42  ;;  %v4340_v32 = vadd.f32 %v4255_v16, %v8164_v60  ;;  %v8320_v18 = vpop.f32.mrb[158].mxu1  ;;  %v4470_v37 = vmax.f32 %v4406_v39, %v4438_v40 }
 0x791   : > { %v4257_v58 = vpop.permute.xlu1 %4256  ;;  %v8322_v35 = vpop.f32.mrb[159].mxu1  ;;  %4284 = vrot.lane.b32.xlu0 %v8320_v18, %s6221_s27 }
 0x792   : > { %v4471_v46 = vmax.f32 %v4407_v42, %v4439_v43  ;;  %v4372_v63 = vadd.f32 %v4340_v32, %v8190_v52  ;;  %v4341_v33 = vadd.f32 %v4257_v58, %v8170_v27 }
 0x794   : > { %v4498_v8 = vpack.c.bf16 %v4471_v46, %v4470_v37  ;;  %v4408_v59 = vadd.f32 %v8240_v31, %v4372_v63  ;;  %v4373_v53 = vadd.f32 %v4341_v33, %v8196_v4 }
 0x795   : > { %v8330_v60 = vld [vmem:[#allocation3 + $0x18] sm:$0xff] }
 0x796   : > { %4514 = vst.msk [vmem:[#allocation3 + $0x20] sm:$0xff] %vm1325_vm10, %v4498_v8  ;;  %v4440_v36 = vmul.f32 0.2, %v4408_v59  ;;  %v4409_v0 = vadd.f32 %v8240_v31, %v4373_v53  ;;  %4798 = vrot.lane.b32.xlu1 %v8330_v60, %s6221_s27 }
 0x797   : > { %v8336_v22 = vpop.f32.mrb[160].mxu1  ;;  %v4259_v20 = vpop.permute.xlu0 %4258 }
 0x798   : > { %v4441_v52 = vmul.f32 0.2, %v4409_v0  ;;  %v8338_v27 = vpop.f32.mrb[161].mxu1  ;;  %4286 = vrot.lane.b32.xlu0 %v8336_v22, %s6221_s27  ;;  %v4342_v4 = vadd.f32 %v4259_v20, %v8176_v3  ;;  %v4472_v48 = vmax.f32 %v4408_v59, %v4440_v36 }
 0x799   : > { %v8343_v1 = vpop.f32.mrb[162].mxu1  ;;  %v4261_v61 = vpop.permute.xlu1 %4260 }
 0x79a   : > { %v4473_v44 = vmax.f32 %v4409_v0, %v4441_v52  ;;  %v8345_v34 = vpop.f32.mrb[163].mxu1  ;;  %4288 = vrot.lane.b32.xlu1 %v8343_v1, %s6221_s27  ;;  %v4374_v56 = vadd.f32 %v4342_v4, %v8202_v55  ;;  %v4343_v39 = vadd.f32 %v4261_v61, %v8182_v28 }
 0x79c   : > { %v4499_v7 = vpack.c.bf16 %v4473_v44, %v4472_v48  ;;  %v4410_v40 = vadd.f32 %v8240_v31, %v4374_v56  ;;  %v4375_v42 = vadd.f32 %v4343_v39, %v8208_v24 }
 0x79d   : > { %v8353_v3 = vld [vmem:[#allocation3 + $0x20] sm:$0xff] }
 0x79e   : > { %4515 = vst.msk [vmem:[#allocation3 + $0x28] sm:$0xff] %vm1325_vm10, %v4499_v7  ;;  %4800 = vrot.lane.b32.xlu0 %v8353_v3, %s6221_s27  ;;  %v4442_v16 = vmul.f32 0.2, %v4410_v40  ;;  %v4411_v43 = vadd.f32 %v8240_v31, %v4375_v42 }
 0x79f   : > { %v8359_v32 = vpop.f32.mrb[164].mxu1  ;;  %v4263_v55 = vpop.permute.xlu0 %4262 }
 0x7a0   : > { %v8361_v58 = vpop.f32.mrb[165].mxu1  ;;  %4290 = vrot.lane.b32.xlu1 %v8359_v32, %s6221_s27  ;;  %v4443_v28 = vmul.f32 0.2, %v4411_v43  ;;  %v4344_v24 = vadd.f32 %v4263_v55, %v8188_v15  ;;  %v4474_v33 = vmax.f32 %v4410_v40, %v4442_v16 }
 0x7a1   : > { %v8366_v37 = vpop.f32.mrb[166].mxu1  ;;  %v4265_v46 = vpop.permute.xlu1 %4264 }
 0x7a2   : > { %v8368_v63 = vpop.f32.mrb[167].mxu1  ;;  %4292 = vrot.lane.b32.xlu0 %v8366_v37, %s6221_s27  ;;  %v4475_v8 = vmax.f32 %v4411_v43, %v4443_v28  ;;  %v4376_v59 = vadd.f32 %v4344_v24, %v8214_v17  ;;  %v4345_v53 = vadd.f32 %v4265_v46, %v8194_v2 }
 0x7a4   : > { %v4500_v36 = vpack.c.bf16 %v4475_v8, %v4474_v33  ;;  %v4412_v0 = vadd.f32 %v8240_v31, %v4376_v59  ;;  %v4377_v52 = vadd.f32 %v4345_v53, %v8220_v47 }
 0x7a5   : > { %v8376_v15 = vld [vmem:[#allocation3 + $0x28] sm:$0xff] }
 0x7a6   : > { %4802 = vrot.lane.b32.xlu1 %v8376_v15, %s6221_s27  ;;  %4516 = vst.msk [vmem:[#allocation3 + $0x30] sm:$0xff] %vm1325_vm10, %v4500_v36  ;;  %v4444_v20 = vmul.f32 0.2, %v4412_v0  ;;  %v4413_v4 = vadd.f32 %v8240_v31, %v4377_v52 }
 0x7a7   : > { %v4185_v48 = vpop.f32.mrb[168].mxu1  ;;  %v4267_v44 = vpop.permute.xlu0 %4266 }
 0x7a8   : > { %4294 = vrot.lane.b32.xlu0 %v4185_v48, %s6221_s27  ;;  %v8383_v2 = vpop.f32.mrb[169].mxu1  ;;  %v4445_v17 = vmul.f32 0.2, %v4413_v4  ;;  %v4346_v61 = vadd.f32 %v4267_v44, %v8200_v21  ;;  %v4476_v7 = vmax.f32 %v4412_v0, %v4444_v20 }
 0x7a9   : > { %v4189_v47 = vpop.f32.mrb[170].mxu1  ;;  %v4269_v56 = vpop.permute.xlu1 %4268 }
 0x7aa   : > { %4296 = vrot.lane.b32.xlu1 %v4189_v47, %s6221_s27  ;;  %v8387_v39 = vpop.f32.mrb[171].mxu1  ;;  %v4477_v40 = vmax.f32 %v4413_v4, %v4445_v17  ;;  %v4378_v42 = vadd.f32 %v4346_v61, %v8226_v41  ;;  %v4347_v16 = vadd.f32 %v4269_v56, %v8206_v50 }
 0x7ac   : > { %v4501_v43 = vpack.c.bf16 %v4477_v40, %v4476_v7  ;;  %v4414_v55 = vadd.f32 %v8240_v31, %v4378_v42  ;;  %v4379_v28 = vadd.f32 %v4347_v16, %v8232_v57  ;;  %v4579_v42 = vshll.u32 %v8284_v30, 16 }
 0x7ad   : > { %v8393_v24 = vld [vmem:[#allocation3 + $0x30] sm:$0xff] }
 0x7ae   : > { %4517 = vst.msk [vmem:[#allocation3 + $0x38] sm:$0xff] %vm1325_vm10, %v4501_v43  ;;  %v4446_v21 = vmul.f32 0.2, %v4414_v55  ;;  %v4415_v46 = vadd.f32 %v8240_v31, %v4379_v28  ;;  %4804 = vrot.lane.b32.xlu0 %v8393_v24, %s6221_s27  ;;  %v4714_v16 = vrot.slane %v4579_v42, 1  ;;  %v4576_v43 = vshrl.u32 %v8284_v30, 16 }
 0x7af   : > { %v4195_v33 = vpop.f32.mrb[172].mxu1  ;;  %v4271_v8 = vpop.permute.xlu0 %4270  ;;  %v4583_v30 = vshrl.u32 %v8307_v19, 16 }
 0x7b0   : > { %v8399_v41 = vpop.f32.mrb[173].mxu1  ;;  %v4447_v50 = vmul.f32 0.2, %v4415_v46  ;;  %v4348_v59 = vadd.f32 %v4271_v8, %v8212_v29  ;;  %v4478_v0 = vmax.f32 %v4414_v55, %v4446_v21  ;;  %v4586_v55 = vshll.u32 %v8307_v19, 16 }
 0x7b1   : > { %v4198_v53 = vpop.f32.mrb[174].mxu1  ;;  %v4273_v36 = vpop.permute.xlu1 %4272  ;;  %v4715_v28 = vor.u32 %v4714_v16, %v4576_v43  ;;  %v4578_v21 = vrot.slane %v4576_v43, 7  ;;  %v4696_v33 = vsel %vm6492_vm6, 0, %v8275_v62 }
 0x7b2   : > { %v8402_v57 = vpop.f32.mrb[175].mxu1  ;;  %v4479_v52 = vmax.f32 %v4415_v46, %v4447_v50  ;;  %v4380_v20 = vadd.f32 %v4348_v59, %v8264_v26  ;;  %v4349_v4 = vadd.f32 %v4273_v36, %v8218_v5  ;;  %v4716_v53 = vrot.slane %v4586_v55, 1 }
 0x7b3   : > { %v4761_v59 = vsel %vm6322_vm2, %v4715_v28, 0 }
 0x7b4   : > { %v4502_v48 = vpack.c.bf16 %v4479_v52, %v4478_v0  ;;  %v4416_v44 = vadd.f32 %v8240_v31, %v4380_v20  ;;  %v4381_v17 = vadd.f32 %v4349_v4, %v8271_v45  ;;  %v4581_v52 = vor.u32 %v4579_v42, %v4578_v21 }
 0x7b5   : > { %v8408_v61 = vld [vmem:[#allocation3 + $0x38] sm:$0xff]  ;;  %v4593_v4 = vshll.u32 %v8330_v60, 16 }
 0x7b6   : > { %4518 = vst.msk [vmem:[#allocation3 + $0x40] sm:$0xff] %vm1325_vm10, %v4502_v48  ;;  %v4448_v29 = vmul.f32 0.2, %v4416_v44  ;;  %v4417_v47 = vadd.f32 %v8240_v31, %v4381_v17  ;;  %4806 = vrot.lane.b32.xlu1 %v8408_v61, %s6221_s27  ;;  %v4717_v48 = vor.u32 %v4716_v53, %v4583_v30 }
 0x7b8   : > { %v4449_v56 = vmul.f32 0.2, %v4417_v47  ;;  %v4480_v7 = vmax.f32 %v4416_v44, %v4448_v29  ;;  %v4585_v29 = vrot.slane %v4583_v30, 7 }
 0x7ba   : > { %v4481_v26 = vmax.f32 %v4417_v47, %v4449_v56  ;;  %v4588_v43 = vor.u32 %v4586_v55, %v4585_v29 }
 0x7bc   : > { %v4503_v40 = vpack.c.bf16 %v4481_v26, %v4480_v7  ;;  %v4718_v26 = vrot.slane %v4593_v4, 1 }
 0x7bd   : > { %v8414_v5 = vld [vmem:[#allocation3 + $0x40] sm:$0xff] }
 0x7be   : > { %4519 = vst.msk [vmem:[#allocation3 + $0x48] sm:$0xff] %vm1325_vm10, %v4503_v40  ;;  %4808 = vrot.lane.b32.xlu0 %v8414_v5, %s6221_s27 }
 0x7c5   : > { %v8419_v45 = vld [vmem:[#allocation3 + $0x48] sm:$0xff] }
 0x7c6   : > { %4810 = vrot.lane.b32.xlu1 %v8419_v45, %s6221_s27 }
 0x7ef   : > { %v4793_v46 = vpop.permute.xlu0 %4792 }
 0x7f0   : > { %v4826_v8 = vsel %vm1325_vm10, %v4696_v33, %v4793_v46 }
 0x7f1   : > { %5097 = vmatmul.mubr.bf16.gmra.mrb[116].mxu0 %v4826_v8  ;;  %v4275_v50 = vpop.permute.xlu1 %4274  ;;  %v4600_v8 = vshll.u32 %v8353_v3, 16 }
 0x7f2   : > { %v4350_v36 = vadd.f32 %v4275_v50, %v8224_v23  ;;  %5937 = vmatprep.mubr.msk.bf16.mxu0 %vm1325_vm10, %v4761_v59  ;;  %v4697_v23 = vsel %vm6492_vm6, 0, %v4581_v52 }
 0x7f3   : > { %v4277_v0 = vpop.permute.xlu0 %4276 }
 0x7f4   : > { %v4382_v20 = vadd.f32 %v4350_v36, %v8292_v6  ;;  %v4351_v62 = vadd.f32 %v4277_v0, %v8230_v38  ;;  %v4762_v38 = vsel %vm6322_vm2, %v4717_v48, 0  ;;  %v4597_v48 = vshrl.u32 %v8353_v3, 16 }
 0x7f6   : > { %v4418_v44 = vadd.f32 %v8240_v31, %v4382_v20  ;;  %v4383_v17 = vadd.f32 %v4351_v62, %v8299_v9  ;;  %v4590_v9 = vshrl.u32 %v8330_v60, 16  ;;  %v4698_v60 = vsel %vm6492_vm6, 0, %v4588_v43 }
 0x7f7   : > { %v4795_v47 = vpop.permute.xlu1 %4794  ;;  %v4720_v20 = vrot.slane %v4600_v8, 1 }
 0x7f8   : > { %v4450_v56 = vmul.f32 0.2, %v4418_v44  ;;  %v4419_v19 = vadd.f32 %v8240_v31, %v4383_v17  ;;  %v4830_v7 = vsel %vm1325_vm10, %v4697_v23, %v4795_v47  ;;  %v4719_v50 = vor.u32 %v4718_v26, %v4590_v9 }
 0x7f9   : > { %v4279_v6 = vpop.permute.xlu0 %4278  ;;  %5105 = vmatmul.mubr.bf16.gmra.mrb[120].mxu0 %v4830_v7  ;;  %v4592_v36 = vrot.slane %v4590_v9, 7  ;;  %v4607_v7 = vshll.u32 %v8376_v15, 16 }
 0x7fa   : > { %v4451_v40 = vmul.f32 0.2, %v4419_v19  ;;  %v4352_v42 = vadd.f32 %v4279_v6, %v8262_v10  ;;  %5938 = vmatprep.mubr.msk.bf16.mxu0 %vm1325_vm10, %v4762_v38  ;;  %v4482_v28 = vmax.f32 %v4418_v44, %v4450_v56  ;;  %v4763_v52 = vsel %vm6322_vm2, %v4719_v50, 0 }
 0x7fb   : > { %v4281_v16 = vpop.permute.xlu1 %4280  ;;  %v4595_v17 = vor.u32 %v4593_v4, %v4592_v36  ;;  %v4722_v43 = vrot.slane %v4607_v7, 1  ;;  %v4614_v36 = vshll.u32 %v8393_v24, 16 }
 0x7fc   : > { %v4483_v21 = vmax.f32 %v4419_v19, %v4451_v40  ;;  %v4384_v46 = vadd.f32 %v4352_v42, %v8315_v25  ;;  %v4353_v33 = vadd.f32 %v4281_v16, %v8269_v49  ;;  %v4721_v19 = vor.u32 %v4720_v20, %v4597_v48 }
 0x7fd   : > { %v4599_v40 = vrot.slane %v4597_v48, 7  ;;  %v4724_v20 = vrot.slane %v4614_v36, 1  ;;  %v4611_v48 = vshrl.u32 %v8393_v24, 16 }
 0x7fe   : > { %v4504_v59 = vpack.c.bf16 %v4483_v21, %v4482_v28  ;;  %v4420_v53 = vadd.f32 %v8240_v31, %v4384_v46  ;;  %v4385_v10 = vadd.f32 %v4353_v33, %v8322_v35  ;;  %v4604_v21 = vshrl.u32 %v8376_v15, 16 }
 0x7ff   : > { %v4797_v30 = vpop.permute.xlu0 %4796 }
 0x800   : > { %4520 = vst.msk [vmem:[#allocation3 + $0x50] sm:$0xff] %vm1325_vm10, %v4504_v59  ;;  %v4452_v55 = vmul.f32 0.2, %v4420_v53  ;;  %v4421_v25 = vadd.f32 %v8240_v31, %v4385_v10  ;;  %v4834_v49 = vsel %vm1325_vm10, %v4698_v60, %v4797_v30  ;;  %v4602_v59 = vor.u32 %v4600_v8, %v4599_v40 }
 0x801   : > { %5115 = vmatmul.mubr.bf16.gmra.mrb[124].mxu0 %v4834_v49  ;;  %v4283_v0 = vpop.permute.xlu1 %4282  ;;  %v4723_v60 = vor.u32 %v4722_v43, %v4604_v21  ;;  %v4606_v49 = vrot.slane %v4604_v21, 7 }
 0x802   : > { %v4453_v62 = vmul.f32 0.2, %v4421_v25  ;;  %v4354_v35 = vadd.f32 %v4283_v0, %v8290_v14  ;;  %5939 = vmatprep.mubr.msk.bf16.mxu0 %vm1325_vm10, %v4763_v52  ;;  %v4484_v29 = vmax.f32 %v4420_v53, %v4452_v55 }
 0x803   : > { %v4285_v44 = vpop.permute.xlu0 %4284 }
 0x804   : > { %v4485_v47 = vmax.f32 %v4421_v25, %v4453_v62  ;;  %v4386_v23 = vadd.f32 %v4354_v35, %v8338_v27  ;;  %v4355_v56 = vadd.f32 %v4285_v44, %v8297_v54  ;;  %v4699_v54 = vsel %vm6492_vm6, 0, %v4595_v17 }
 0x805   : > { %v4609_v17 = vor.u32 %v4607_v7, %v4606_v49 }
 0x806   : > { %v4505_v6 = vpack.c.bf16 %v4485_v47, %v4484_v29  ;;  %v4422_v38 = vadd.f32 %v8240_v31, %v4386_v23  ;;  %v4387_v14 = vadd.f32 %v4355_v56, %v8345_v34  ;;  %v4764_v34 = vsel %vm6322_vm2, %v4721_v19, 0 }
 0x807   : > { %v8469_v26 = vld [vmem:[#allocation3 + $0x50] sm:$0xff]  ;;  %v4621_v19 = vshll.u32 %v8408_v61, 16 }
 0x808   : > { %4521 = vst.msk [vmem:[#allocation3 + $0x58] sm:$0xff] %vm1325_vm10, %v4505_v6  ;;  %v4454_v3 = vmul.f32 0.2, %v4422_v38  ;;  %v4423_v4 = vadd.f32 %v8240_v31, %v4387_v14  ;;  %v4799_v42 = vpop.permute.xlu1 %4798  ;;  %4812 = vrot.lane.b32.xlu0 %v8469_v26, %s6221_s27  ;;  %v4725_v6 = vor.u32 %v4724_v20, %v4611_v48 }
 0x809   : > { %v4838_v27 = vsel %vm1325_vm10, %v4699_v54, %v4799_v42  ;;  %v4726_v54 = vrot.slane %v4621_v19, 1 }
 0x80a   : > { %v4455_v9 = vmul.f32 0.2, %v4423_v4  ;;  %v4287_v16 = vpop.permute.xlu0 %4286  ;;  %5125 = vmatmul.mubr.bf16.gmra.mrb[128].mxu0 %v4838_v27  ;;  %v4486_v46 = vmax.f32 %v4422_v38, %v4454_v3  ;;  %v4613_v3 = vrot.slane %v4611_v48, 7 }
 0x80b   : > { %v4356_v28 = vadd.f32 %v4287_v16, %v8313_v51  ;;  %5940 = vmatprep.mubr.msk.bf16.mxu0 %vm1325_vm10, %v4764_v34  ;;  %v4618_v16 = vshrl.u32 %v8408_v61, 16 }
 0x80c   : > { %v4487_v33 = vmax.f32 %v4423_v4, %v4455_v9  ;;  %v4289_v50 = vpop.permute.xlu1 %4288  ;;  %v4616_v43 = vor.u32 %v4614_v36, %v4613_v3 }
 0x80d   : > { %v4388_v53 = vadd.f32 %v4356_v28, %v8361_v58  ;;  %v4357_v10 = vadd.f32 %v4289_v50, %v8320_v18  ;;  %v4700_v18 = vsel %vm6492_vm6, 0, %v4602_v59  ;;  %v4727_v50 = vor.u32 %v4726_v54, %v4618_v16 }
 0x80e   : > { %v4506_v30 = vpack.c.bf16 %v4487_v33, %v4486_v46  ;;  %v4628_v59 = vshll.u32 %v8414_v5, 16 }
 0x80f   : > { %v4424_v55 = vadd.f32 %v8240_v31, %v4388_v53  ;;  %v4389_v51 = vadd.f32 %v4357_v10, %v8368_v63  ;;  %v8488_v25 = vld [vmem:[#allocation3 + $0x58] sm:$0xff]  ;;  %v4765_v63 = vsel %vm6322_vm2, %v4723_v60, 0  ;;  %v4620_v60 = vrot.slane %v4618_v16, 7 }
 0x810   : > { %4522 = vst.msk [vmem:[#allocation3 + $0x60] sm:$0xff] %vm1325_vm10, %v4506_v30  ;;  %v4801_v15 = vpop.permute.xlu0 %4800  ;;  %4814 = vrot.lane.b32.xlu1 %v8488_v25, %s6221_s27  ;;  %v4728_v49 = vrot.slane %v4628_v59, 1  ;;  %v4649_v16 = vshll.u32 %v8488_v25, 16 }
 0x811   : > { %v4456_v58 = vmul.f32 0.2, %v4424_v55  ;;  %v4425_v8 = vadd.f32 %v8240_v31, %v4389_v51  ;;  %v4842_v0 = vsel %vm1325_vm10, %v4700_v18, %v4801_v15  ;;  %v4625_v15 = vshrl.u32 %v8414_v5, 16 }
 0x812   : > { %5135 = vmatmul.mubr.bf16.gmra.mrb[132].mxu0 %v4842_v0  ;;  %v4291_v52 = vpop.permute.xlu1 %4290 }
 0x813   : > { %v4457_v62 = vmul.f32 0.2, %v4425_v8  ;;  %v4358_v35 = vadd.f32 %v4291_v52, %v8336_v22  ;;  %5941 = vmatprep.mubr.msk.bf16.mxu0 %vm1325_vm10, %v4765_v63  ;;  %v4488_v29 = vmax.f32 %v4424_v55, %v4456_v58  ;;  %v4623_v58 = vor.u32 %v4621_v19, %v4620_v60 }
 0x814   : > { %v4293_v44 = vpop.permute.xlu0 %4292  ;;  %v4635_v52 = vshll.u32 %v8419_v45, 16  ;;  %v4729_v20 = vor.u32 %v4728_v49, %v4625_v15 }
 0x815   : > { %v4489_v47 = vmax.f32 %v4425_v8, %v4457_v62  ;;  %v4390_v23 = vadd.f32 %v4358_v35, %v8383_v2  ;;  %v4359_v56 = vadd.f32 %v4293_v44, %v8343_v1  ;;  %v4701_v2 = vsel %vm6492_vm6, 0, %v4609_v17  ;;  %v8539_v8 = vpop.f32.mrb[112].mxu0 }
 0x816   : > { %v5092_v0 = vpop.f32.mrb[113].mxu0  ;;  %v4627_v44 = vrot.slane %v4625_v15, 7  ;;  %v4703_v5 = vsel %vm6492_vm6, 0, %v4623_v58 }
 0x817   : > { %v4507_v38 = vpack.c.bf16 %v4489_v47, %v4488_v29  ;;  %v4426_v14 = vadd.f32 %v8240_v31, %v4390_v23  ;;  %v4391_v22 = vadd.f32 %v4359_v56, %v8387_v39  ;;  %v8507_v40 = vld [vmem:[#allocation3 + $0x60] sm:$0xff]  ;;  %v4766_v39 = vsel %vm6322_vm2, %v4725_v6, 0  ;;  %v8542_v62 = vpop.f32.mrb[114].mxu0 }
 0x818   : > { %v4803_v24 = vpop.permute.xlu1 %4802  ;;  %4816 = vrot.lane.b32.xlu0 %v8507_v40, %s6221_s27  ;;  %v5095_v48 = vpop.f32.mrb[115].mxu0  ;;  %v4768_v47 = vsel %vm6322_vm2, %v4729_v20, 0  ;;  %v4730_v23 = vrot.slane %v4635_v52, 1  ;;  %v4632_v56 = vshrl.u32 %v8419_v45, 16  ;;  %v4630_v19 = vor.u32 %v4628_v59, %v4627_v44 }
 0x819   : > { %4523 = vst.msk [vmem:[#allocation3 + $0x68] sm:$0xff] %vm1325_vm10, %v4507_v38  ;;  %v4458_v1 = vmul.f32 0.2, %v4426_v14  ;;  %v4427_v7 = vadd.f32 %v8240_v31, %v4391_v22  ;;  %v4846_v4 = vsel %vm1325_vm10, %v4701_v2, %v4803_v24  ;;  %v4642_v6 = vshll.u32 %v8469_v26, 16 }
 0x81a   : > { %5145 = vmatmul.mubr.bf16.gmra.mrb[136].mxu0 %v4846_v4  ;;  %v4295_v42 = vpop.permute.xlu0 %4294  ;;  %v4731_v38 = vor.u32 %v4730_v23, %v4632_v56  ;;  %v4634_v22 = vrot.slane %v4632_v56, 7  ;;  %v4704_v24 = vsel %vm6492_vm6, 0, %v4630_v19 }
 0x81b   : > { %v4459_v27 = vmul.f32 0.2, %v4427_v7  ;;  %v4360_v9 = vadd.f32 %v4295_v42, %v8359_v32  ;;  %5942 = vmatprep.mubr.msk.bf16.mxu0 %vm1325_vm10, %v4766_v39  ;;  %v4490_v28 = vmax.f32 %v4426_v14, %v4458_v1  ;;  %v4732_v1 = vrot.slane %v4642_v6, 1 }
 0x81c   : > { %v4297_v34 = vpop.permute.xlu1 %4296  ;;  %v4769_v45 = vsel %vm6322_vm2, %v4731_v38, 0  ;;  %v4637_v4 = vor.u32 %v4635_v52, %v4634_v22 }
 0x81d   : > { %v4491_v21 = vmax.f32 %v4427_v7, %v4459_v27  ;;  %v4361_v46 = vadd.f32 %v4297_v34, %v8366_v37  ;;  %v4392_v33 = vadd.f32 %v4360_v9, %v8399_v41  ;;  %v4702_v37 = vsel %vm6492_vm6, 0, %v4616_v43 }
 0x81e   : > { %v4639_v7 = vshrl.u32 %v8469_v26, 16  ;;  %v4705_v54 = vsel %vm6492_vm6, 0, %v4637_v4  ;;  %v4734_v43 = vrot.slane %v4649_v16, 1  ;;  %v4646_v26 = vshrl.u32 %v8488_v25, 16 }
 0x81f   : > { %v4508_v53 = vpack.c.bf16 %v4491_v21, %v4490_v28  ;;  %v4428_v10 = vadd.f32 %v8240_v31, %v4392_v33  ;;  %v4393_v32 = vadd.f32 %v4361_v46, %v8402_v57  ;;  %v4767_v57 = vsel %vm6322_vm2, %v4727_v50, 0 }
 0x820   : > { %v8526_v30 = vld [vmem:[#allocation3 + $0x68] sm:$0xff]  ;;  %v4805_v55 = vpop.permute.xlu0 %4804  ;;  %v4733_v42 = vor.u32 %v4732_v1, %v4639_v7  ;;  %v4641_v34 = vrot.slane %v4639_v7, 7  ;;  %v4656_v21 = vshll.u32 %v8507_v40, 16  ;;  %v4735_v46 = vor.u32 %v4734_v43, %v4646_v26 }
 0x821   : > { %4524 = vst.msk [vmem:[#allocation3 + $0x70] sm:$0xff] %vm1325_vm10, %v4508_v53  ;;  %v4460_v61 = vmul.f32 0.2, %v4428_v10  ;;  %v4429_v36 = vadd.f32 %v8240_v31, %v4393_v32  ;;  %4818 = vrot.lane.b32.xlu1 %v8526_v30, %s6221_s27  ;;  %v4850_v41 = vsel %vm1325_vm10, %v4702_v37, %v4805_v55  ;;  %v4648_v33 = vrot.slane %v4646_v26, 7 }
 0x822   : > { %5155 = vmatmul.mubr.bf16.gmra.mrb[140].mxu0 %v4850_v41  ;;  %v4770_v9 = vsel %vm6322_vm2, %v4733_v42, 0  ;;  %v4644_v28 = vor.u32 %v4642_v6, %v4641_v34  ;;  %v4736_v32 = vrot.slane %v4656_v21, 1  ;;  %v4653_v25 = vshrl.u32 %v8507_v40, 16 }
 0x823   : > { %v4461_v51 = vmul.f32 0.2, %v4429_v36  ;;  %5943 = vmatprep.mubr.msk.bf16.mxu0 %vm1325_vm10, %v4767_v57  ;;  %v4492_v31 = vmax.f32 %v4428_v10, %v4460_v61  ;;  %v4771_v10 = vsel %vm6322_vm2, %v4735_v46, 0  ;;  %v4651_v60 = vor.u32 %v4649_v16, %v4648_v33 }
 0x824   : > { %v4706_v59 = vsel %vm6492_vm6, 0, %v4644_v28  ;;  %v4663_v61 = vshll.u32 %v8526_v30, 16  ;;  %v4655_v55 = vrot.slane %v4653_v25, 7  ;;  %v4660_v40 = vshrl.u32 %v8526_v30, 16 }
 0x825   : > { %v4493_v18 = vmax.f32 %v4429_v36, %v4461_v51  ;;  %v4737_v36 = vor.u32 %v4736_v32, %v4653_v25  ;;  %v4707_v41 = vsel %vm6492_vm6, 0, %v4651_v60 }
 0x826   : > { %v4738_v49 = vrot.slane %v4663_v61, 1  ;;  %v4658_v15 = vor.u32 %v4656_v21, %v4655_v55  ;;  %v4662_v52 = vrot.slane %v4660_v40, 7 }
 0x827   : > { %v4509_v63 = vpack.c.bf16 %v4493_v18, %v4492_v31  ;;  %v4772_v57 = vsel %vm6322_vm2, %v4737_v36, 0 }
 0x828   : > { %v8544_v35 = vld [vmem:[#allocation3 + $0x70] sm:$0xff]  ;;  %v4807_v17 = vpop.permute.xlu1 %4806  ;;  %v4739_v31 = vor.u32 %v4738_v49, %v4660_v40  ;;  %v4708_v0 = vsel %vm6492_vm6, 0, %v4658_v15  ;;  %v4665_v44 = vor.u32 %v4663_v61, %v4662_v52 }
 0x829   : > { %4525 = vst.msk [vmem:[#allocation3 + $0x78] sm:$0xff] %vm1325_vm10, %v4509_v63  ;;  %4820 = vrot.lane.b32.xlu0 %v8544_v35, %s6221_s27  ;;  %v4854_v29 = vsel %vm1325_vm10, %v4703_v5, %v4807_v17  ;;  %v4670_v18 = vshll.u32 %v8544_v35, 16  ;;  %v4667_v30 = vshrl.u32 %v8544_v35, 16 }
 0x82a   : > { %5165 = vmatmul.mubr.bf16.gmra.mrb[144].mxu0 %v4854_v29  ;;  %v4773_v20 = vsel %vm6322_vm2, %v4739_v31, 0  ;;  %v4709_v23 = vsel %vm6492_vm6, 0, %v4665_v44 }
 0x82b   : > { %5944 = vmatprep.mubr.msk.bf16.mxu0 %vm1325_vm10, %v4768_v47  ;;  %v4740_v48 = vrot.slane %v4670_v18, 1  ;;  %v4669_v29 = vrot.slane %v4667_v30, 7 }
 0x82d   : > { %v4741_v5 = vor.u32 %v4740_v48, %v4667_v30  ;;  %v4672_v38 = vor.u32 %v4670_v18, %v4669_v29 }
 0x82f   : > { %v4774_v19 = vsel %vm6322_vm2, %v4741_v5, 0 }
 0x830   : > { %v8557_v14 = vld [vmem:[#allocation3 + $0x78] sm:$0xff]  ;;  %v4809_v3 = vpop.permute.xlu0 %4808 }
 0x831   : > { %4822 = vrot.lane.b32.xlu1 %v8557_v14, %s6221_s27  ;;  %v4858_v2 = vsel %vm1325_vm10, %v4704_v24, %v4809_v3  ;;  %v4677_v17 = vshll.u32 %v8557_v14, 16  ;;  %v4674_v35 = vshrl.u32 %v8557_v14, 16 }
 0x832   : > { %5175 = vmatmul.mubr.bf16.gmra.mrb[148].mxu0 %v4858_v2  ;;  %v4710_v2 = vsel %vm6492_vm6, 0, %v4672_v38 }
 0x833   : > { %5945 = vmatprep.mubr.msk.bf16.mxu0 %vm1325_vm10, %v4769_v45  ;;  %v4742_v6 = vrot.slane %v4677_v17, 1  ;;  %v4676_v3 = vrot.slane %v4674_v35, 7 }
 0x835   : > { %v4743_v22 = vor.u32 %v4742_v6, %v4674_v35  ;;  %v4679_v7 = vor.u32 %v4677_v17, %v4676_v3  ;;  %v8715_v17 = vld [vmem:[%s8942_s4 + $0x4] ss:$0 sm:$0xff] }
 0x837   : > { %v4775_v1 = vsel %vm6322_vm2, %v4743_v22, 0  ;;  %v4711_v14 = vsel %vm6492_vm6, 0, %v4679_v7 }
 0x838   : > { %v4811_v39 = vpop.permute.xlu1 %4810 }
 0x839   : > { %v4862_v27 = vsel %vm1325_vm10, %v4705_v54, %v4811_v39 }
 0x83a   : > { %5185 = vmatmul.mubr.bf16.gmra.mrb[152].mxu0 %v4862_v27 }
 0x83b   : > { %5946 = vmatprep.mubr.msk.bf16.mxu0 %vm1325_vm10, %v4770_v9 }
 0x87a   : > { %v4813_v50 = vpop.permute.xlu0 %4812 }
 0x87b   : > { %v4866_v53 = vsel %vm1325_vm10, %v4706_v59, %v4813_v50 }
 0x87c   : > { %5195 = vmatmul.mubr.bf16.gmra.mrb[156].mxu0 %v4866_v53 }
 0x87d   : > { %5947 = vmatprep.mubr.msk.bf16.mxu0 %vm1325_vm10, %v4771_v10 }
 0x882   : > { %v4815_v37 = vpop.permute.xlu1 %4814 }
 0x883   : > { %v4870_v51 = vsel %vm1325_vm10, %v4707_v41, %v4815_v37 }
 0x884   : > { %5205 = vmatmul.mubr.bf16.gmra.mrb[160].mxu0 %v4870_v51 }
 0x885   : > { %5948 = vmatprep.mubr.msk.bf16.mxu0 %vm1325_vm10, %v4772_v57 }
 0x88a   : > { %v4817_v58 = vpop.permute.xlu0 %4816 }
 0x88b   : > { %v4874_v63 = vsel %vm1325_vm10, %v4708_v0, %v4817_v58 }
 0x88c   : > { %5215 = vmatmul.mubr.bf16.gmra.mrb[164].mxu0 %v4874_v63 }
 0x88d   : > { %5949 = vmatprep.mubr.msk.bf16.mxu0 %vm1325_vm10, %v4773_v20 }
 0x893   : > { %v4819_v47 = vpop.permute.xlu1 %4818 }
 0x894   : > { %v4878_v56 = vsel %vm1325_vm10, %v4709_v23, %v4819_v47 }
 0x895   : > { %5225 = vmatmul.mubr.bf16.gmra.mrb[168].mxu0 %v4878_v56 }
 0x896   : > { %5950 = vmatprep.mubr.msk.bf16.mxu0 %vm1325_vm10, %v4774_v19 }
 0x89b   : > { %v4821_v24 = vpop.permute.xlu0 %4820 }
 0x89c   : > { %v4882_v45 = vsel %vm1325_vm10, %v4710_v2, %v4821_v24 }
 0x89d   : > { %5235 = vmatmul.mubr.bf16.gmra.mrb[172].mxu0 %v4882_v45 }
 0x89e   : > { %5951 = vmatprep.mubr.msk.bf16.mxu0 %vm1325_vm10, %v4775_v1 }
 0x8a3   : > { %v4823_v4 = vpop.permute.xlu1 %4822 }
 0x8a4   : > { %v4886_v42 = vsel %vm1325_vm10, %v4711_v14, %v4823_v4 }
 0x8a5   : > { %5245 = vmatmul.mubr.bf16.gmra.mrb[176].mxu0 %v4886_v42 }
 0x8a6   : > { %5254 = vmatprep.mubr.bf16.mxu0 %v9004_v13 }
 0x8ad   : > { %5255 = vmatmul.mubr.bf16.gmra.mrb[180].mxu0 %v9004_v13 }
 0x8c4   : > { %v8619_v39 = vpop.f32.mrb[116].mxu0 }
 0x8c5   : > { %v5100_v54 = vpop.f32.mrb[117].mxu0  ;;  %5295 = vrot.lane.b32.xlu0 %v8619_v39, %s6221_s27 }
 0x8c6   : > { %v8623_v11 = vpop.f32.mrb[118].mxu0 }
 0x8c7   : > { %v5103_v27 = vpop.f32.mrb[119].mxu0  ;;  %5297 = vrot.lane.b32.xlu1 %v8623_v11, %s6221_s27 }
 0x8cc   : > { %v8627_v12 = vpop.f32.mrb[120].mxu0 }
 0x8cd   : > { %v5108_v9 = vpop.f32.mrb[121].mxu0 }
 0x8ce   : > { %v8629_v16 = vpop.f32.mrb[122].mxu0 }
 0x8cf   : > { %v5112_v34 = vpop.f32.mrb[123].mxu0 }
 0x8d4   : > { %v8631_v43 = vpop.f32.mrb[124].mxu0 }
 0x8d5   : > { %v8633_v13 = vpop.f32.mrb[125].mxu0 }
 0x8d6   : > { %v8635_v26 = vpop.f32.mrb[126].mxu0 }
 0x8d7   : > { %v8637_v28 = vpop.f32.mrb[127].mxu0 }
 0x8dd   : > { %v8639_v21 = vpop.f32.mrb[128].mxu0 }
 0x8de   : > { %v8641_v46 = vpop.f32.mrb[129].mxu0 }
 0x8df   : > { %v8643_v33 = vpop.f32.mrb[130].mxu0 }
 0x8e0   : > { %v8645_v50 = vpop.f32.mrb[131].mxu0 }
 0x8e5   : > { %v8647_v59 = vpop.f32.mrb[132].mxu0 }
 0x8e6   : > { %v8649_v53 = vpop.f32.mrb[133].mxu0 }
 0x8e7   : > { %v8651_v10 = vpop.f32.mrb[134].mxu0 }
 0x8e8   : > { %v8653_v32 = vpop.f32.mrb[135].mxu0 }
 0x8ed   : > { %v8655_v25 = vpop.f32.mrb[136].mxu0 }
 0x8ee   : > { %v8657_v60 = vpop.f32.mrb[137].mxu0 }
 0x8ef   : > { %v8659_v61 = vpop.f32.mrb[138].mxu0 }
 0x8f0   : > { %v8661_v36 = vpop.f32.mrb[139].mxu0 }
 0x8f5   : > { %v8663_v55 = vpop.f32.mrb[140].mxu0 }
 0x8f6   : > { %9005 = vst [vmem:[#allocation11_spill] sm:$0xff] %v8663_v55  ;;  %v8665_v37 = vpop.f32.mrb[141].mxu0 }
 0x8f7   : > { %v8667_v41 = vpop.f32.mrb[142].mxu0 }
 0x8f8   : > { %9006 = vst [vmem:[#allocation17_spill] sm:$0xff] %v8667_v41  ;;  %v8669_v51 = vpop.f32.mrb[143].mxu0 }
 0x8fd   : > { %v8671_v57 = vpop.f32.mrb[144].mxu0 }
 0x8fe   : > { %v8673_v49 = vpop.f32.mrb[145].mxu0 }
 0x8ff   : > { %v8675_v40 = vpop.f32.mrb[146].mxu0 }
 0x900   : > { %v8677_v15 = vpop.f32.mrb[147].mxu0 }
 0x905   : > { %v8679_v31 = vpop.f32.mrb[148].mxu0 }
 0x906   : > { %v8681_v18 = vpop.f32.mrb[149].mxu0  ;;  %5327 = vrot.lane.b32.xlu0 %v8679_v31, %s6221_s27 }
 0x907   : > { %9007 = vst [vmem:[#allocation12_spill] sm:$0xff] %v8681_v18  ;;  %v8685_v58 = vpop.f32.mrb[150].mxu0 }
 0x908   : > { %v8687_v0 = vpop.f32.mrb[151].mxu0  ;;  %5329 = vrot.lane.b32.xlu1 %v8685_v58, %s6221_s27 }
 0x909   : > { %9008 = vst [vmem:[#allocation8_spill] sm:$0xff] %v8687_v0 }
 0x90a   : > { %5299 = vrot.lane.b32.xlu0 %v8627_v12, %s6221_s27 }
 0x90c   : > { %5301 = vrot.lane.b32.xlu1 %v8629_v16, %s6221_s27 }
 0x90d   : > { %v8695_v52 = vpop.f32.mrb[152].mxu0 }
 0x90e   : > { %v8697_v63 = vpop.f32.mrb[153].mxu0  ;;  %5331 = vrot.lane.b32.xlu0 %v8695_v52, %s6221_s27 }
 0x90f   : > { %v8701_v20 = vpop.f32.mrb[154].mxu0 }
 0x910   : > { %v8703_v48 = vpop.f32.mrb[155].mxu0  ;;  %5333 = vrot.lane.b32.xlu1 %v8701_v20, %s6221_s27 }
 0x912   : > { %5303 = vrot.lane.b32.xlu0 %v8631_v43, %s6221_s27 }
 0x914   : > { %5305 = vrot.lane.b32.xlu1 %v8635_v26, %s6221_s27 }
 0x937   : > { %v5296_v30 = vpop.permute.xlu0 %5295 }
 0x938   : > { %v5391_v44 = vadd.f32 %v5296_v30, %v8539_v8 }
 0x939   : > { %v5298_v5 = vpop.permute.xlu1 %5297 }
 0x93a   : > { %v5423_v29 = vadd.f32 %v5391_v44, %v5108_v9  ;;  %v5392_v47 = vadd.f32 %v5298_v5, %v8542_v62 }
 0x93c   : > { %v5459_v23 = vadd.f32 %v8715_v17, %v5423_v29  ;;  %v5424_v56 = vadd.f32 %v5392_v47, %v5112_v34 }
 0x93e   : > { %v5491_v19 = vmul.f32 0.2, %v5459_v23  ;;  %v5460_v6 = vadd.f32 %v8715_v17, %v5424_v56 }
 0x940   : > { %v5492_v35 = vmul.f32 0.2, %v5460_v6  ;;  %v5523_v38 = vmax.f32 %v5459_v23, %v5491_v19 }
 0x942   : > { %v5524_v22 = vmax.f32 %v5460_v6, %v5492_v35 }
 0x944   : > { %v8720_v3 = vpack.c.bf16 %v5524_v22, %v5523_v38 }
 0x94f   : > { %v8722_v8 = vpop.f32.mrb[156].mxu0 }
 0x950   : > { %v8724_v24 = vpop.f32.mrb[157].mxu0  ;;  %5335 = vrot.lane.b32.xlu0 %v8722_v8, %s6221_s27 }
 0x951   : > { %v8728_v2 = vpop.f32.mrb[158].mxu0 }
 0x952   : > { %v8730_v62 = vpop.f32.mrb[159].mxu0  ;;  %5337 = vrot.lane.b32.xlu1 %v8728_v2, %s6221_s27 }
 0x954   : > { %5307 = vrot.lane.b32.xlu0 %v8639_v21, %s6221_s27 }
 0x956   : > { %5309 = vrot.lane.b32.xlu1 %v8643_v33, %s6221_s27 }
 0x957   : > { %v8738_v45 = vpop.f32.mrb[160].mxu0 }
 0x958   : > { %v8740_v1 = vpop.f32.mrb[161].mxu0  ;;  %5339 = vrot.lane.b32.xlu0 %v8738_v45, %s6221_s27 }
 0x959   : > { %v8744_v7 = vpop.f32.mrb[162].mxu0 }
 0x95a   : > { %v8746_v4 = vpop.f32.mrb[163].mxu0  ;;  %5341 = vrot.lane.b32.xlu1 %v8744_v7, %s6221_s27 }
 0x95c   : > { %5311 = vrot.lane.b32.xlu0 %v8647_v59, %s6221_s27 }
 0x95e   : > { %5313 = vrot.lane.b32.xlu1 %v8651_v10, %s6221_s27 }
 0x95f   : > { %v8754_v14 = vpop.f32.mrb[164].mxu0 }
 0x960   : > { %v8756_v42 = vpop.f32.mrb[165].mxu0  ;;  %5343 = vrot.lane.b32.xlu0 %v8754_v14, %s6221_s27 }
 0x961   : > { %v8760_v54 = vpop.f32.mrb[166].mxu0 }
 0x962   : > { %v8762_v27 = vpop.f32.mrb[167].mxu0  ;;  %5345 = vrot.lane.b32.xlu1 %v8760_v54, %s6221_s27 }
 0x964   : > { %5315 = vrot.lane.b32.xlu0 %v8655_v25, %s6221_s27 }
 0x966   : > { %5317 = vrot.lane.b32.xlu1 %v8659_v61, %s6221_s27 }
 0x968   : > { %v8770_v9 = vpop.f32.mrb[168].mxu0 }
 0x969   : > { %v8772_v34 = vpop.f32.mrb[169].mxu0  ;;  %5347 = vrot.lane.b32.xlu0 %v8770_v9, %s6221_s27 }
 0x96a   : > { %v8776_v30 = vpop.f32.mrb[170].mxu0 }
 0x96b   : > { %9009 = vst [vmem:[#allocation13_spill] sm:$0xff] %v8776_v30  ;;  %v8778_v44 = vpop.f32.mrb[171].mxu0  ;;  %5349 = vrot.lane.b32.xlu1 %v8776_v30, %s6221_s27 }
 0x96d   : > { %5319 = vrot.lane.b32.xlu0 %v8663_v55, %s6221_s27 }
 0x96f   : > { %5321 = vrot.lane.b32.xlu1 %v8667_v41, %s6221_s27  ;;  %v8814_v41 = vld [vmem:[%s8941_s3] sm:$0x3] }
 0x970   : > { %v8786_v5 = vpop.f32.mrb[172].mxu0  ;;  %9014 = vst [vmem:[#allocation15_spill] sm:$0xff] %v8814_v41  ;;  %5974 = vmatprep.mubr.msk.bf16.mxu1 %vm1325_vm10, %v8814_v41 }
 0x971   : > { %9010 = vst [vmem:[#allocation7_spill] sm:$0xff] %v8786_v5  ;;  %5351 = vrot.lane.b32.xlu0 %v8786_v5, %s6221_s27  ;;  %v8790_v29 = vpop.f32.mrb[173].mxu0 }
 0x972   : > { %v8792_v47 = vpop.f32.mrb[174].mxu0 }
 0x973   : > { %9011 = vst [vmem:[#allocation9_spill] sm:$0xff] %v8792_v47  ;;  %v8794_v23 = vpop.f32.mrb[175].mxu0  ;;  %5353 = vrot.lane.b32.xlu1 %v8792_v47, %s6221_s27 }
 0x975   : > { %5323 = vrot.lane.b32.xlu0 %v8671_v57, %s6221_s27 }
 0x977   : > { %5325 = vrot.lane.b32.xlu1 %v8675_v40, %s6221_s27 }
 0x978   : > { %v5246_v56 = vpop.f32.mrb[176].mxu0  ;;  %v5328_v19 = vpop.permute.xlu0 %5327 }
 0x979   : > { %5355 = vrot.lane.b32.xlu0 %v5246_v56, %s6221_s27  ;;  %v8803_v6 = vpop.f32.mrb[177].mxu0  ;;  %v5407_v35 = vadd.f32 %v5328_v19, %v8671_v57 }
 0x97a   : > { %9012 = vst [vmem:[#allocation14_spill] sm:$0xff] %v8803_v6  ;;  %v5250_v38 = vpop.f32.mrb[178].mxu0  ;;  %v5330_v22 = vpop.permute.xlu1 %5329 }
 0x97b   : > { %5357 = vrot.lane.b32.xlu1 %v5250_v38, %s6221_s27  ;;  %v8807_v5 = vpop.f32.mrb[179].mxu0  ;;  %v5439_v47 = vadd.f32 %v5407_v35, %v8697_v63  ;;  %v5408_v0 = vadd.f32 %v5330_v22, %v8675_v40 }
 0x97c   : > { %9013 = vst [vmem:[#allocation10_spill] sm:$0xff] %v8807_v5  ;;  %v5300_v56 = vpop.permute.xlu0 %5299 }
 0x97d   : > { %v5475_v57 = vadd.f32 %v8715_v17, %v5439_v47  ;;  %v5440_v19 = vadd.f32 %v5408_v0, %v8703_v48  ;;  %v5393_v38 = vadd.f32 %v5300_v56, %v8619_v39 }
 0x97e   : > { %v5302_v18 = vpop.permute.xlu1 %5301 }
 0x97f   : > { %v5476_v63 = vadd.f32 %v8715_v17, %v5440_v19  ;;  %v5425_v40 = vadd.f32 %v5393_v38, %v8633_v13  ;;  %v5394_v35 = vadd.f32 %v5302_v18, %v8623_v11  ;;  %v5507_v55 = vmul.f32 0.2, %v5475_v57  ;;  %v5572_v11 = vld [vmem:[%s8943_s5] sm:$0xf] }
 0x980   : > { %v5256_v22 = vpop.f32.mrb[180].mxu0  ;;  %v5332_v5 = vpop.permute.xlu0 %5331  ;;  %5575 = vperm.xlu0 %6011, %v5572_v11  }
 0x981   : > { %v8824_v6 = vpop.f32.mrb[181].mxu0  ;;  %v5508_v30 = vmul.f32 0.2, %v5476_v63  ;;  %v5461_v41 = vadd.f32 %v8715_v17, %v5425_v40  ;;  %v5426_v47 = vadd.f32 %v5394_v35, %v8637_v28  ;;  %v5409_v39 = vadd.f32 %v5332_v5, %v8679_v31 }
 0x982   : > { %9015 = vst [vmem:[#allocation16_spill] sm:$0xff] %v8824_v6  ;;  %v5259_v0 = vpop.f32.mrb[182].mxu0  ;;  %v5334_v48 = vpop.permute.xlu1 %5333  ;;  %v5539_v40 = vmax.f32 %v5475_v57, %v5507_v55 }
 0x983   : > { %v8829_v56 = vpop.f32.mrb[183].mxu0  ;;  %v5540_v13 = vmax.f32 %v5476_v63, %v5508_v30  ;;  %v5493_v18 = vmul.f32 0.2, %v5461_v41  ;;  %v5462_v19 = vadd.f32 %v8715_v17, %v5426_v47  ;;  %v5410_v38 = vadd.f32 %v5334_v48, %v8685_v58 }
 0x984   : > { %9016 = vst [vmem:[#allocation18_spill] sm:$0xff] %v8829_v56  ;;  %v5441_v28 = vadd.f32 %v5409_v39, %v8724_v24  ;;  %v5304_v35 = vpop.permute.xlu0 %5303  ;;  %v5582_v24 = vsel %vm1325_vm10, %v8720_v3, 0 }
 0x985   : > { %v5494_v22 = vmul.f32 0.2, %v5462_v19  ;;  %v5442_v31 = vadd.f32 %v5410_v38, %v8730_v62  ;;  %v5395_v5 = vadd.f32 %v5304_v35, %v8627_v12  ;;  %v5525_v0 = vmax.f32 %v5461_v41, %v5493_v18 }
 0x986   : > { %v5477_v56 = vadd.f32 %v8715_v17, %v5441_v28  ;;  %v5306_v6 = vpop.permute.xlu1 %5305  ;;  %v5564_v30 = vpack.c.bf16 %v5540_v13, %v5539_v40 }
 0x987   : > { %v5526_v63 = vmax.f32 %v5462_v19, %v5494_v22  ;;  %v5478_v47 = vadd.f32 %v8715_v17, %v5442_v31  ;;  %v5427_v58 = vadd.f32 %v5395_v5, %v8641_v46  ;;  %v5396_v55 = vadd.f32 %v5306_v6, %v8629_v16 }
 0x988   : > { %v5509_v57 = vmul.f32 0.2, %v5477_v56  ;;  %5978 = vmatprep.subr.msk.bf16.mxu1 %vm1325_vm10, %v5564_v30 }
 0x989   : > { %v5510_v62 = vmul.f32 0.2, %v5478_v47  ;;  %v5463_v12 = vadd.f32 %v8715_v17, %v5427_v58  ;;  %v5428_v41 = vadd.f32 %v5396_v55, %v8645_v50  ;;  %5959 = vmatpush3.bf16.xpose.msra.mxu1 %v5582_v24  ;;  %v5557_v39 = vpack.c.bf16 %v5526_v63, %v5525_v0 }
 0x98a   : > { %v5541_v48 = vmax.f32 %v5477_v56, %v5509_v57 }
 0x98b   : > { %v5542_v11 = vmax.f32 %v5478_v47, %v5510_v62  ;;  %v5495_v13 = vmul.f32 0.2, %v5463_v12  ;;  %v5464_v46 = vadd.f32 %v8715_v17, %v5428_v41  ;;  %v5585_v3 = vsel %vm1325_vm10, %v5557_v39, 0 }
 0x98d   : > { %v5496_v18 = vmul.f32 0.2, %v5464_v46  ;;  %v5565_v16 = vpack.c.bf16 %v5542_v11, %v5541_v48  ;;  %v5527_v6 = vmax.f32 %v5463_v12, %v5495_v13 }
 0x98f   : > { %v5528_v19 = vmax.f32 %v5464_v46, %v5496_v18  ;;  %5979 = vmatprep.subr.msk.bf16.mxu1 %vm1325_vm10, %v5565_v16 }
 0x991   : > { %5961 = vmatpush3.bf16.xpose.msra.mxu1 %v5585_v3  ;;  %v5558_v38 = vpack.c.bf16 %v5528_v19, %v5527_v6 }
 0x9c2   : > { %v5336_v40 = vpop.permute.xlu0 %5335 }
 0x9c3   : > { %v5411_v50 = vadd.f32 %v5336_v40, %v8695_v52 }
 0x9c4   : > { %v5338_v28 = vpop.permute.xlu1 %5337 }
 0x9c5   : > { %v5443_v56 = vadd.f32 %v5411_v50, %v8740_v1  ;;  %v5412_v35 = vadd.f32 %v5338_v28, %v8701_v20 }
 0x9c6   : > { %v5308_v22 = vpop.permute.xlu0 %5307 }
 0x9c7   : > { %v5479_v31 = vadd.f32 %v8715_v17, %v5443_v56  ;;  %v5444_v5 = vadd.f32 %v5412_v35, %v8746_v4  ;;  %v5397_v0 = vadd.f32 %v5308_v22, %v8631_v43 }
 0x9c8   : > { %v5310_v30 = vpop.permute.xlu1 %5309 }
 0x9c9   : > { %v5480_v63 = vadd.f32 %v8715_v17, %v5444_v5  ;;  %v5429_v47 = vadd.f32 %v5397_v0, %v8649_v53  ;;  %v5398_v58 = vadd.f32 %v5310_v30, %v8635_v26  ;;  %v5511_v52 = vmul.f32 0.2, %v5479_v31 }
 0x9ca   : > { %v5340_v55 = vpop.permute.xlu0 %5339 }
 0x9cb   : > { %v5512_v57 = vmul.f32 0.2, %v5480_v63  ;;  %v5465_v1 = vadd.f32 %v8715_v17, %v5429_v47  ;;  %v5430_v20 = vadd.f32 %v5398_v58, %v8653_v32  ;;  %v5413_v24 = vadd.f32 %v5340_v55, %v8722_v8 }
 0x9cc   : > { %v5342_v62 = vpop.permute.xlu1 %5341  ;;  %v5543_v41 = vmax.f32 %v5479_v31, %v5511_v52 }
 0x9cd   : > { %v5544_v4 = vmax.f32 %v5480_v63, %v5512_v57  ;;  %v5466_v43 = vadd.f32 %v8715_v17, %v5430_v20  ;;  %v5414_v12 = vadd.f32 %v5342_v62, %v8728_v2  ;;  %v5497_v39 = vmul.f32 0.2, %v5465_v1 }
 0x9ce   : > { %v5445_v53 = vadd.f32 %v5413_v24, %v8756_v42  ;;  %v5312_v26 = vpop.permute.xlu0 %5311 }
 0x9cf   : > { %v5498_v48 = vmul.f32 0.2, %v5466_v43  ;;  %v5446_v11 = vadd.f32 %v5414_v12, %v8762_v27  ;;  %v5399_v13 = vadd.f32 %v5312_v26, %v8639_v21  ;;  %v5566_v8 = vpack.c.bf16 %v5544_v4, %v5543_v41 }
 0x9d0   : > { %v5481_v32 = vadd.f32 %v8715_v17, %v5445_v53  ;;  %v5314_v46 = vpop.permute.xlu1 %5313  ;;  %v5529_v19 = vmax.f32 %v5465_v1, %v5497_v39  ;;  %v5588_v27 = vsel %vm1325_vm10, %v5558_v38, 0 }
 0x9d1   : > { %v5530_v18 = vmax.f32 %v5466_v43, %v5498_v48  ;;  %v5482_v16 = vadd.f32 %v8715_v17, %v5446_v11  ;;  %v5431_v6 = vadd.f32 %v5399_v13, %v8657_v60  ;;  %v5400_v2 = vadd.f32 %v5314_v46, %v8643_v33  ;;  %5980 = vmatprep.subr.msk.bf16.mxu1 %vm1325_vm10, %v5566_v8 }
 0x9d2   : > { %v5513_v3 = vmul.f32 0.2, %v5481_v32  ;;  %v5344_v42 = vpop.permute.xlu0 %5343  ;;  %5963 = vmatpush3.bf16.xpose.msra.mxu1 %v5588_v27 }
 0x9d3   : > { %v5514_v40 = vmul.f32 0.2, %v5482_v16  ;;  %v5467_v21 = vadd.f32 %v8715_v17, %v5431_v6  ;;  %v5432_v50 = vadd.f32 %v5400_v2, %v8661_v36  ;;  %v5415_v28 = vadd.f32 %v5344_v42, %v8738_v45 }
 0x9d4   : > { %v5346_v56 = vpop.permute.xlu1 %5345  ;;  %v5559_v35 = vpack.c.bf16 %v5530_v18, %v5529_v19  ;;  %v5545_v5 = vmax.f32 %v5481_v32, %v5513_v3 }
 0x9d5   : > { %v5546_v60 = vmax.f32 %v5482_v16, %v5514_v40  ;;  %v5499_v22 = vmul.f32 0.2, %v5467_v21  ;;  %v5468_v33 = vadd.f32 %v8715_v17, %v5432_v50  ;;  %v5447_v31 = vadd.f32 %v5415_v28, %v8772_v34 }
 0x9d6   : > { %v5416_v0 = vadd.f32 %v5346_v56, %v8744_v7  ;;  %v5316_v38 = vpop.permute.xlu0 %5315  ;;  %v5591_v7 = vsel %vm1325_vm10, %v5559_v35, 0  ;;  %v9018_v35 = vld [vmem:[#allocation14_spill] sm:$0xff] }
 0x9d7   : > { %v5500_v30 = vmul.f32 0.2, %v5468_v33  ;;  %v5483_v63 = vadd.f32 %v8715_v17, %v5447_v31  ;;  %v5401_v36 = vadd.f32 %v5316_v38, %v8647_v59  ;;  %v5567_v58 = vpack.c.bf16 %v5546_v60, %v5545_v5  ;;  %v9019_v31 = vld [vmem:[#allocation10_spill] sm:$0xff] }
 0x9d8   : > { %v5448_v45 = vadd.f32 %v5416_v0, %v8778_v44  ;;  %v5318_v47 = vpop.permute.xlu1 %5317  ;;  %v5531_v52 = vmax.f32 %v5467_v21, %v5499_v22  ;;  %v9020_v0 = vld [vmem:[#allocation11_spill] sm:$0xff] }
 0x9d9   : > { %v5532_v55 = vmax.f32 %v5468_v33, %v5500_v30  ;;  %v5433_v57 = vadd.f32 %v5401_v36, %v8665_v37  ;;  %v5402_v1 = vadd.f32 %v5318_v47, %v8651_v10  ;;  %v5515_v34 = vmul.f32 0.2, %v5483_v63  ;;  %5981 = vmatprep.subr.msk.bf16.mxu1 %vm1325_vm10, %v5567_v58  ;;  %v9022_v58 = vld [vmem:[#allocation17_spill] sm:$0xff] }
 0x9da   : > { %v5484_v20 = vadd.f32 %v8715_v17, %v5448_v45  ;;  %5965 = vmatpush3.bf16.xpose.msra.mxu1 %v5591_v7  ;;  %v9021_v45 = vld [vmem:[#allocation12_spill] sm:$0xff] }
 0x9db   : > { %v5469_v24 = vadd.f32 %v8715_v17, %v5433_v57  ;;  %v5434_v59 = vadd.f32 %v5402_v1, %v8669_v51  ;;  %v5348_v44 = vpop.permute.xlu0 %5347  ;;  %v5560_v62 = vpack.c.bf16 %v5532_v55, %v5531_v52  ;;  %v5547_v41 = vmax.f32 %v5483_v63, %v5515_v34 }
 0x9dc   : > { %v5516_v4 = vmul.f32 0.2, %v5484_v20  ;;  %v5417_v43 = vadd.f32 %v5348_v44, %v8754_v14  ;;  %v9024_v44 = vld [vmem:[#allocation7_spill] sm:$0xff] }
 0x9dd   : > { %v5501_v37 = vmul.f32 0.2, %v5469_v24  ;;  %v5470_v10 = vadd.f32 %v8715_v17, %v5434_v59  ;;  %v5350_v12 = vpop.permute.xlu1 %5349 }
 0x9de   : > { %v5548_v39 = vmax.f32 %v5484_v20, %v5516_v4  ;;  %v5449_v53 = vadd.f32 %v5417_v43, %v8790_v29  ;;  %v5418_v26 = vadd.f32 %v5350_v12, %v8760_v54  ;;  %v5594_v54 = vsel %vm1325_vm10, %v5560_v62, 0 }
 0x9df   : > { %v5502_v48 = vmul.f32 0.2, %v5470_v10  ;;  %v5320_v11 = vpop.permute.xlu0 %5319  ;;  %v5533_v14 = vmax.f32 %v5469_v24, %v5501_v37  ;;  %v9023_v24 = vld [vmem:[#allocation8_spill] sm:$0xff] }
 0x9e0   : > { %v5485_v51 = vadd.f32 %v8715_v17, %v5449_v53  ;;  %v5450_v13 = vadd.f32 %v5418_v26, %v8794_v23  ;;  %v5403_v32 = vadd.f32 %v5320_v11, %v8655_v25  ;;  %v5568_v46 = vpack.c.bf16 %v5548_v39, %v5547_v41  ;;  %v9025_v39 = vld [vmem:[#allocation9_spill] sm:$0xff]  ;;  %v9026_v26 = vld [vmem:[#allocation16_spill] sm:$0xff] }
 0x9e1   : > { %v5534_v8 = vmax.f32 %v5470_v10, %v5502_v48  ;;  %v5322_v18 = vpop.permute.xlu1 %5321 }
 0x9e2   : > { %v5486_v16 = vadd.f32 %v8715_v17, %v5450_v13  ;;  %v5435_v6 = vadd.f32 %v5403_v32, %v8673_v49  ;;  %v5404_v29 = vadd.f32 %v5322_v18, %v8659_v61  ;;  %5982 = vmatprep.subr.msk.bf16.mxu1 %vm1325_vm10, %v5568_v46  ;;  %v5517_v2 = vmul.f32 0.2, %v5485_v51  ;;  %v9017_v61 = vld [vmem:[#allocation13_spill] sm:$0xff] }
 0x9e3   : > { %v5352_v19 = vpop.permute.xlu0 %5351  ;;  %5967 = vmatpush3.bf16.xpose.msra.mxu1 %v5594_v54  ;;  %v5561_v23 = vpack.c.bf16 %v5534_v8, %v5533_v14 }
 0x9e4   : > { %v5518_v3 = vmul.f32 0.2, %v5486_v16  ;;  %v5471_v25 = vadd.f32 %v8715_v17, %v5435_v6  ;;  %v5436_v42 = vadd.f32 %v5404_v29, %v8677_v15  ;;  %v5419_v27 = vadd.f32 %v5352_v19, %v8770_v9 }
 0x9e5   : > { %v5354_v40 = vpop.permute.xlu1 %5353  ;;  %v5549_v28 = vmax.f32 %v5485_v51, %v5517_v2  ;;  %v5597_v1 = vsel %vm1325_vm10, %v5561_v23, 0  ;;  %v9027_v51 = vld [vmem:[#allocation18_spill] sm:$0xff] }
 0x9e6   : > { %v5550_v21 = vmax.f32 %v5486_v16, %v5518_v3  ;;  %v5472_v49 = vadd.f32 %v8715_v17, %v5436_v42  ;;  %v5420_v50 = vadd.f32 %v5354_v40, %v9017_v61  ;;  %v5503_v56 = vmul.f32 0.2, %v5471_v25 }
 0x9e7   : > { %v5451_v60 = vadd.f32 %v5419_v27, %v9018_v35  ;;  %v5324_v22 = vpop.permute.xlu0 %5323 }
 0x9e8   : > { %v5504_v33 = vmul.f32 0.2, %v5472_v49  ;;  %v5452_v5 = vadd.f32 %v5420_v50, %v9019_v31  ;;  %v5405_v38 = vadd.f32 %v5324_v22, %v9020_v0  ;;  %v5569_v9 = vpack.c.bf16 %v5550_v21, %v5549_v28 }
 0x9e9   : > { %v5487_v15 = vadd.f32 %v8715_v17, %v5451_v60  ;;  %v5326_v30 = vpop.permute.xlu1 %5325  ;;  %v5535_v55 = vmax.f32 %v5471_v25, %v5503_v56  ;;  %v9028_v25 = vld [vmem:[#allocation15_spill] sm:$0xff] }
 0x9ea   : > { %v5536_v63 = vmax.f32 %v5472_v49, %v5504_v33  ;;  %v5488_v36 = vadd.f32 %v8715_v17, %v5452_v5  ;;  %v5437_v47 = vadd.f32 %v5405_v38, %v9021_v45  ;;  %v5406_v52 = vadd.f32 %v5326_v30, %v9022_v58  ;;  %5983 = vmatprep.subr.msk.bf16.mxu1 %vm1325_vm10, %v5569_v9 }
 0x9eb   : > { %v5519_v57 = vmul.f32 0.2, %v5487_v15  ;;  %v5356_v34 = vpop.permute.xlu0 %5355  ;;  %5969 = vmatpush3.bf16.xpose.msra.mxu1 %v5597_v1 }
 0x9ec   : > { %v5520_v20 = vmul.f32 0.2, %v5488_v36  ;;  %v5473_v7 = vadd.f32 %v8715_v17, %v5437_v47  ;;  %v5438_v59 = vadd.f32 %v5406_v52, %v9023_v24  ;;  %v5421_v62 = vadd.f32 %v5356_v34, %v9024_v44 }
 0x9ed   : > { %v5551_v4 = vmax.f32 %v5487_v15, %v5519_v57  ;;  %v5358_v43 = vpop.permute.xlu1 %5357  ;;  %v5562_v37 = vpack.c.bf16 %v5536_v63, %v5535_v55 }
 0x9ee   : > { %v5552_v10 = vmax.f32 %v5488_v36, %v5520_v20  ;;  %v5505_v12 = vmul.f32 0.2, %v5473_v7  ;;  %v5474_v41 = vadd.f32 %v8715_v17, %v5438_v59  ;;  %v5422_v53 = vadd.f32 %v5358_v43, %v9025_v39 }
 0x9ef   : > { %v5453_v48 = vadd.f32 %v5421_v62, %v9026_v26  ;;  %v5600_v6 = vsel %vm1325_vm10, %v5562_v37, 0 }
 0x9f0   : > { %v5506_v11 = vmul.f32 0.2, %v5474_v41  ;;  %v5454_v13 = vadd.f32 %v5422_v53, %v9027_v51  ;;  %v5570_v32 = vpack.c.bf16 %v5552_v10, %v5551_v4  ;;  %v5537_v14 = vmax.f32 %v5473_v7, %v5505_v12 }
 0x9f1   : > { %v5489_v46 = vadd.f32 %v8715_v17, %v5453_v48 }
 0x9f2   : > { %v5538_v8 = vmax.f32 %v5474_v41, %v5506_v11  ;;  %v5490_v18 = vadd.f32 %v8715_v17, %v5454_v13  ;;  %5984 = vmatprep.subr.msk.bf16.mxu1 %vm1325_vm10, %v5570_v32 }
 0x9f3   : > { %v5521_v16 = vmul.f32 0.2, %v5489_v46  ;;  %5971 = vmatpush3.bf16.xpose.msra.mxu1 %v5600_v6 }
 0x9f4   : > { %v5522_v29 = vmul.f32 0.2, %v5490_v18  ;;  %v5563_v54 = vpack.c.bf16 %v5538_v8, %v5537_v14 }
 0x9f5   : > { %v5553_v2 = vmax.f32 %v5489_v46, %v5521_v16 }
 0x9f6   : > { %v5554_v19 = vmax.f32 %v5490_v18, %v5522_v29  ;;  %v5603_v3 = vsel %vm1325_vm10, %v5563_v54, 0 }
 0x9f8   : > { %v5571_v23 = vpack.c.bf16 %v5554_v19, %v5553_v2 }
 0x9fa   : > { %5985 = vmatprep.subr.msk.bf16.mxu1 %vm1325_vm10, %v5571_v23 }
 0x9fb   : > { %5973 = vmatpush3.bf16.xpose.msra.mxu1 %v5603_v3 }
 0x9ff   : > { %v5576_v17 = vpop.permute.xlu0 %5575 }
 0xa02   : > { %5975 = vmatmul.mubr.msk.bf16.vlgmr.msra.gmra.mrb[176].mxu1 %vm1325_vm10, %v9028_v25 }
 0xad5   : > { %v5663_v42 = vpop.f32.mrb[176].mxu1 }
 0xad6   : > { %v5665_v27 = vpop.f32.mrb[177].mxu1  ;;  %v5664_v40 = vadd.f32 %v5663_v42, %v5576_v17 }
 0xad7   : > { %v5667_v21 = vpop.f32.mrb[178].mxu1  ;;  %v5666_v49 = vadd.f32 %v5665_v27, %v5576_v17 }
 0xad8   : > { %v5668_v61 = vpop.f32.mrb[179].mxu1 }
 0xad9   : > { %v5672_v50 = vcombine.low %v5664_v40, %v5666_v49 }
 0xadb   : > { %5674 = vst [vmem:[%s266_s23] sm:$0xff] %v5672_v50 }
 0xadc PF: > { %s17_s21 = sadd.s32 1, %s6213_s21  }
 0xadd   : > { %p14_p3 = scmp.ge.s32.totalorder %s17_s21, 4  }
 0xadf   :  { %16 = sbr.rel (!%p14_p3) target bundleno = 1 (0x1), region = 82 }
 0xae6   :  { %5696 = vsyncpa [#allocation5], 1 }
 0xae7   :  { %5698 = vsyncpa [#allocation5 + $0x1], 1 }

</bundles_post_ra>
